<compile_context>
chip_gen: v6e
topology: v6e:2x2x1
jax: 0.10.0
libtpu: 0.0.40
codegen_flags: <defaults>
</compile_context>

<pallas_src>
import functools

import jax
import jax.numpy as jnp
from jax.experimental import pallas as pl
from jax.experimental.pallas import tpu as pltpu


def _fused_input_cv_kernel(xcol_ref, w1_ref, w2_ref, out_ref, hpad_ref,
                           *, H, W, Cmid, Cout):
    """Fused (conv3x3 -> ReLU -> conv3x3 -> ReLU) for one batch element.

    xcol_ref: (1, H*W, 9*Cin)   im2col'd input            (VMEM)
    w1_ref:   (9*Cin, Cmid)     conv1 weights, taps folded into K
    w2_ref:   (9*Cmid, Cout)    conv2 weights, taps folded into K
    out_ref:  (1, H, W*Cout)    lane-dense output block
    hpad_ref: (H+2, W+2, Cmid)  VMEM scratch: zero-padded intermediate (never hits HBM)
    """
    # ---- conv1 + ReLU: a single MXU matmul with K = 9*Cin -----------------------
    h = jnp.dot(xcol_ref[0], w1_ref[...], preferred_element_type=jnp.float32)
    h = jnp.maximum(h, 0.0)                                    # (H*W, Cmid), f32

    # ---- in-kernel "same" zero padding of the intermediate (stays in VMEM) ------
    hpad_ref[...] = jnp.zeros_like(hpad_ref)
    hpad_ref[1:H + 1, 1:W + 1, :] = h.reshape(H, W, Cmid)

    # ---- conv2 + ReLU: build im2col ONCE (9 shifted windows, one concatenate), --
    # ---- then a single MXU matmul with K = 9*Cmid --------------------------------
    taps = [hpad_ref[ky:ky + H, kx:kx + W, :]                   # each (H, W, Cmid)
            for ky in range(3) for kx in range(3)]
    hcol = jnp.concatenate(taps, axis=-1)                       # (H, W, 9*Cmid)
    y = jnp.dot(hcol.reshape(H * W, 9 * Cmid), w2_ref[...],
                preferred_element_type=jnp.float32)
    y = jnp.maximum(y, 0.0)                                     # (H*W, Cout), f32

    # ---- lane-dense store: present the result as (H, W*Cout) so vst is unmasked --
    y3 = y.reshape(H, W, Cout)                                  # split leading dim only
    out_row = jnp.concatenate([y3[:, w, :] for w in range(W)], axis=-1)  # (H, W*Cout)
    out_ref[0] = out_row.astype(out_ref.dtype)


def input_cv_block_forward(x_nchw, w1_hwio, w2_hwio):
    """Fused InputCvBlock forward.  x: (N, Cin, H, W) -> (N, Cout, H, W)."""
    N, Cin, H, W = x_nchw.shape
    Cmid = w1_hwio.shape[-1]
    Cout = w2_hwio.shape[-1]

    # --- glue: NCHW -> NHWC and im2col for conv1 (lane dim becomes 9*Cin, not Cin) ---
    x = jnp.transpose(x_nchw, (0, 2, 3, 1))
    xpad = jnp.pad(x, ((0, 0), (1, 1), (1, 1), (0, 0)))
    cols = [xpad[:, ky:ky + H, kx:kx + W, :] for ky in range(3) for kx in range(3)]
    x_col = jnp.concatenate(cols, axis=-1).reshape(N, H * W, 9 * Cin)

    # Weight taps folded into the contraction dim, (ky, kx, cin) order matches im2col.
    w1f = w1_hwio.reshape(9 * Cin, Cmid)
    w2f = w2_hwio.reshape(9 * Cmid, Cout)

    kernel = functools.partial(_fused_input_cv_kernel, H=H, W=W, Cmid=Cmid, Cout=Cout)

    bytes_accessed = 4 * (N * H * W * 9 * Cin + 9 * Cin * Cmid
                          + 9 * Cmid * Cout + N * H * W * Cout)
    cost = pl.CostEstimate(
        flops=2 * N * H * W * 9 * (Cin * Cmid + Cmid * Cout),
        transcendentals=0,
        bytes_accessed=bytes_accessed)

    out = pl.pallas_call(
        kernel,
        out_shape=jax.ShapeDtypeStruct((N, H, W * Cout), x.dtype),
        grid_spec=pltpu.PrefetchScalarGridSpec(
            num_scalar_prefetch=0,
            grid=(N,),
            in_specs=[
                pl.BlockSpec((1, H * W, 9 * Cin), lambda n: (n, 0, 0)),
                pl.BlockSpec((9 * Cin, Cmid), lambda n: (0, 0)),
                pl.BlockSpec((9 * Cmid, Cout), lambda n: (0, 0)),
            ],
            out_specs=pl.BlockSpec((1, H, W * Cout), lambda n: (n, 0, 0)),
            scratch_shapes=[pltpu.VMEM((H + 2, W + 2, Cmid), jnp.float32)],
        ),
        compiler_params=pltpu.CompilerParams(
            dimension_semantics=("parallel",)),
        cost_estimate=cost,
    )(x_col, w1f, w2f)

    # --- glue: (N, H, W*Cout) -> NHWC -> NCHW (pure layout, free under jit) ---
    return jnp.transpose(out.reshape(N, H, W, Cout), (0, 3, 1, 2))


class InputCvBlockPallas:
    """(Conv3x3 no-bias => ReLU) + (Conv3x3 no-bias => ReLU), matching the PyTorch module."""

    def __init__(self, num_in_frames, out_ch, key):
        self.interm_ch = 4
        cin, cmid, cout = num_in_frames, out_ch * self.interm_ch, out_ch
        k1, k2 = jax.random.split(key)
        # Deterministic synthetic weights, HWIO layout (3, 3, Cin, Cout).
        # (For v6e/v7x production these would be stored as bf16, accumulation kept f32.)
        self.w1 = jax.random.normal(k1, (3, 3, cin, cmid), jnp.float32) * 0.1
        self.w2 = jax.random.normal(k2, (3, 3, cmid, cout), jnp.float32) * 0.1
        self._fwd = jax.jit(input_cv_block_forward)

    def __call__(self, x_nchw):
        return self._fwd(x_nchw, self.w1, self.w2)


def _reference_forward(x_nchw, w1, w2):
    """Pure-JAX reference (lax conv) for a correctness check."""
    dn = ("NHWC", "HWIO", "NHWC")
    x = jnp.transpose(x_nchw, (0, 2, 3, 1))
    h = jax.nn.relu(jax.lax.conv_general_dilated(
        x, w1, window_strides=(1, 1), padding="SAME", dimension_numbers=dn))
    y = jax.nn.relu(jax.lax.conv_general_dilated(
        h, w2, window_strides=(1, 1), padding="SAME", dimension_numbers=dn))
    return jnp.transpose(y, (0, 3, 1, 2))


if __name__ == "__main__":
    key = jax.random.PRNGKey(0)
    k_in, k_par = jax.random.split(key)

    num_in_frames = 4
    out_ch = 8
    N, H, W = 2, 16, 16

    x = jax.random.normal(k_in, (N, num_in_frames, H, W), jnp.float32)

    block = InputCvBlockPallas(num_in_frames, out_ch, k_par)

    out = block(x)
    out = jax.block_until_ready(out)

    ref = _reference_forward(x, block.w1, block.w2)
    assert out.shape == (N, out_ch, H, W)
    assert jnp.allclose(out, ref, atol=1e-4, rtol=1e-4)

    print("KERNEL_OK")
</pallas_src>

<mosaic_0001>
module attributes {stable_mosaic.version = 11 : i64} {
  func.func @_fused_input_cv_kernel(%arg0: i32, %arg1: memref<1x256x36xf32, #tpu.memory_space<vmem>>, %arg2: memref<36x32xf32, #tpu.memory_space<vmem>>, %arg3: memref<288x8xf32, #tpu.memory_space<vmem>>, %arg4: memref<1x16x128xf32, #tpu.memory_space<vmem>>, %arg5: memref<18x18x32xf32, #tpu.memory_space<vmem>>) attributes {dimension_semantics = [#tpu.dimension_semantics<parallel>], iteration_bounds = array<i64: 2>, scalar_prefetch = 0 : i64, scratch_operands = 1 : i64, tpu.core_type = #tpu.core_type<tc>, window_params = [{transform_indices = @transform_0, window_bounds = array<i64: 1, 256, 36>}, {pipeline_mode = #tpu.pipeline_mode<synchronous>, transform_indices = @transform_1, window_bounds = array<i64: 36, 32>}, {pipeline_mode = #tpu.pipeline_mode<synchronous>, transform_indices = @transform_2, window_bounds = array<i64: 288, 8>}, {transform_indices = @transform_3, window_bounds = array<i64: 1, 16, 128>}]} {
    %c0 = arith.constant 0 : index
    %c0_0 = arith.constant 0 : index
    %c0_1 = arith.constant 0 : index
    %0 = vector.load %arg1[%c0, %c0_0, %c0_1] : memref<1x256x36xf32, #tpu.memory_space<vmem>>, vector<1x256x36xf32>
    %1 = vector.shape_cast %0 : vector<1x256x36xf32> to vector<256x36xf32>
    %c0_2 = arith.constant 0 : index
    %c0_3 = arith.constant 0 : index
    %2 = vector.load %arg2[%c0_2, %c0_3] : memref<36x32xf32, #tpu.memory_space<vmem>>, vector<36x32xf32>
    %cst = arith.constant dense<0.000000e+00> : vector<256x32xf32>
    %3 = tpu.matmul %1, %2, %cst {dimension_numbers = #tpu.dot_dimension_numbers<[1], [0], [0], [1], [0, 0, 1, 1], [], []>} : vector<256x36xf32>, vector<36x32xf32>, vector<256x32xf32> -> vector<256x32xf32>
    %cst_4 = arith.constant 0.000000e+00 : f32
    %4 = vector.broadcast %cst_4 : f32 to vector<256x32xf32>
    %5 = arith.maximumf %3, %4 : vector<256x32xf32>
    %cst_5 = arith.constant 0.000000e+00 : f32
    %6 = vector.broadcast %cst_5 : f32 to vector<18x18x32xf32>
    %c0_6 = arith.constant 0 : index
    %c0_7 = arith.constant 0 : index
    %c0_8 = arith.constant 0 : index
    %7 = vector.load %arg5[%c0_6, %c0_7, %c0_8] : memref<18x18x32xf32, #tpu.memory_space<vmem>>, vector<18x18x32xf32>
    tpu.vector_store %arg5[%c0_6, %c0_7, %c0_8], %6 {strides = array<i32>} : memref<18x18x32xf32, #tpu.memory_space<vmem>>, vector<18x18x32xf32>,
    %8 = vector.shape_cast %5 : vector<256x32xf32> to vector<16x16x32xf32>
    %c1 = arith.constant 1 : index
    %c1_9 = arith.constant 1 : index
    %c0_10 = arith.constant 0 : index
    %9 = vector.load %arg5[%c1, %c1_9, %c0_10] : memref<18x18x32xf32, #tpu.memory_space<vmem>>, vector<16x16x32xf32>
    tpu.vector_store %arg5[%c1, %c1_9, %c0_10], %8 {strides = array<i32>} : memref<18x18x32xf32, #tpu.memory_space<vmem>>, vector<16x16x32xf32>,
    %c0_11 = arith.constant 0 : index
    %c0_12 = arith.constant 0 : index
    %c0_13 = arith.constant 0 : index
    %10 = vector.load %arg5[%c0_11, %c0_12, %c0_13] : memref<18x18x32xf32, #tpu.memory_space<vmem>>, vector<16x16x32xf32>
    %c0_14 = arith.constant 0 : index
    %c1_15 = arith.constant 1 : index
    %c0_16 = arith.constant 0 : index
    %11 = vector.load %arg5[%c0_14, %c1_15, %c0_16] : memref<18x18x32xf32, #tpu.memory_space<vmem>>, vector<16x16x32xf32>
    %c0_17 = arith.constant 0 : index
    %c2 = arith.constant 2 : index
    %c0_18 = arith.constant 0 : index
    %12 = vector.load %arg5[%c0_17, %c2, %c0_18] : memref<18x18x32xf32, #tpu.memory_space<vmem>>, vector<16x16x32xf32>
    %c1_19 = arith.constant 1 : index
    %c0_20 = arith.constant 0 : index
    %c0_21 = arith.constant 0 : index
    %13 = vector.load %arg5[%c1_19, %c0_20, %c0_21] : memref<18x18x32xf32, #tpu.memory_space<vmem>>, vector<16x16x32xf32>
    %c1_22 = arith.constant 1 : index
    %c1_23 = arith.constant 1 : index
    %c0_24 = arith.constant 0 : index
    %14 = vector.load %arg5[%c1_22, %c1_23, %c0_24] : memref<18x18x32xf32, #tpu.memory_space<vmem>>, vector<16x16x32xf32>
    %c1_25 = arith.constant 1 : index
    %c2_26 = arith.constant 2 : index
    %c0_27 = arith.constant 0 : index
    %15 = vector.load %arg5[%c1_25, %c2_26, %c0_27] : memref<18x18x32xf32, #tpu.memory_space<vmem>>, vector<16x16x32xf32>
    %c2_28 = arith.constant 2 : index
    %c0_29 = arith.constant 0 : index
    %c0_30 = arith.constant 0 : index
    %16 = vector.load %arg5[%c2_28, %c0_29, %c0_30] : memref<18x18x32xf32, #tpu.memory_space<vmem>>, vector<16x16x32xf32>
    %c2_31 = arith.constant 2 : index
    %c1_32 = arith.constant 1 : index
    %c0_33 = arith.constant 0 : index
    %17 = vector.load %arg5[%c2_31, %c1_32, %c0_33] : memref<18x18x32xf32, #tpu.memory_space<vmem>>, vector<16x16x32xf32>
    %c2_34 = arith.constant 2 : index
    %c2_35 = arith.constant 2 : index
    %c0_36 = arith.constant 0 : index
    %18 = vector.load %arg5[%c2_34, %c2_35, %c0_36] : memref<18x18x32xf32, #tpu.memory_space<vmem>>, vector<16x16x32xf32>
    %19 = tpu.concatenate %10, %11, %12, %13, %14, %15, %16, %17, %18 in 2 : vector<16x16x32xf32>, vector<16x16x32xf32>, vector<16x16x32xf32>, vector<16x16x32xf32>, vector<16x16x32xf32>, vector<16x16x32xf32>, vector<16x16x32xf32>, vector<16x16x32xf32>, vector<16x16x32xf32> -> vector<16x16x288xf32>
    %20 = vector.shape_cast %19 : vector<16x16x288xf32> to vector<256x288xf32>
    %c0_37 = arith.constant 0 : index
    %c0_38 = arith.constant 0 : index
    %21 = vector.load %arg3[%c0_37, %c0_38] : memref<288x8xf32, #tpu.memory_space<vmem>>, vector<288x8xf32>
    %cst_39 = arith.constant dense<0.000000e+00> : vector<256x8xf32>
    %22 = tpu.matmul %20, %21, %cst_39 {dimension_numbers = #tpu.dot_dimension_numbers<[1], [0], [0], [1], [0, 0, 1, 1], [], []>} : vector<256x288xf32>, vector<288x8xf32>, vector<256x8xf32> -> vector<256x8xf32>
    %cst_40 = arith.constant 0.000000e+00 : f32
    %23 = vector.broadcast %cst_40 : f32 to vector<256x8xf32>
    %24 = arith.maximumf %22, %23 : vector<256x8xf32>
    %25 = vector.shape_cast %24 : vector<256x8xf32> to vector<16x16x8xf32>
    %26 = vector.extract_strided_slice %25 {offsets = [0, 0, 0], sizes = [16, 1, 8], strides = [1, 1, 1]} : vector<16x16x8xf32> to vector<16x1x8xf32>
    %27 = vector.shape_cast %26 : vector<16x1x8xf32> to vector<16x8xf32>
    %28 = vector.extract_strided_slice %25 {offsets = [0, 1, 0], sizes = [16, 1, 8], strides = [1, 1, 1]} : vector<16x16x8xf32> to vector<16x1x8xf32>
    %29 = vector.shape_cast %28 : vector<16x1x8xf32> to vector<16x8xf32>
    %30 = vector.extract_strided_slice %25 {offsets = [0, 2, 0], sizes = [16, 1, 8], strides = [1, 1, 1]} : vector<16x16x8xf32> to vector<16x1x8xf32>
    %31 = vector.shape_cast %30 : vector<16x1x8xf32> to vector<16x8xf32>
    %32 = vector.extract_strided_slice %25 {offsets = [0, 3, 0], sizes = [16, 1, 8], strides = [1, 1, 1]} : vector<16x16x8xf32> to vector<16x1x8xf32>
    %33 = vector.shape_cast %32 : vector<16x1x8xf32> to vector<16x8xf32>
    %34 = vector.extract_strided_slice %25 {offsets = [0, 4, 0], sizes = [16, 1, 8], strides = [1, 1, 1]} : vector<16x16x8xf32> to vector<16x1x8xf32>
    %35 = vector.shape_cast %34 : vector<16x1x8xf32> to vector<16x8xf32>
    %36 = vector.extract_strided_slice %25 {offsets = [0, 5, 0], sizes = [16, 1, 8], strides = [1, 1, 1]} : vector<16x16x8xf32> to vector<16x1x8xf32>
    %37 = vector.shape_cast %36 : vector<16x1x8xf32> to vector<16x8xf32>
    %38 = vector.extract_strided_slice %25 {offsets = [0, 6, 0], sizes = [16, 1, 8], strides = [1, 1, 1]} : vector<16x16x8xf32> to vector<16x1x8xf32>
    %39 = vector.shape_cast %38 : vector<16x1x8xf32> to vector<16x8xf32>
    %40 = vector.extract_strided_slice %25 {offsets = [0, 7, 0], sizes = [16, 1, 8], strides = [1, 1, 1]} : vector<16x16x8xf32> to vector<16x1x8xf32>
    %41 = vector.shape_cast %40 : vector<16x1x8xf32> to vector<16x8xf32>
    %42 = vector.extract_strided_slice %25 {offsets = [0, 8, 0], sizes = [16, 1, 8], strides = [1, 1, 1]} : vector<16x16x8xf32> to vector<16x1x8xf32>
    %43 = vector.shape_cast %42 : vector<16x1x8xf32> to vector<16x8xf32>
    %44 = vector.extract_strided_slice %25 {offsets = [0, 9, 0], sizes = [16, 1, 8], strides = [1, 1, 1]} : vector<16x16x8xf32> to vector<16x1x8xf32>
    %45 = vector.shape_cast %44 : vector<16x1x8xf32> to vector<16x8xf32>
    %46 = vector.extract_strided_slice %25 {offsets = [0, 10, 0], sizes = [16, 1, 8], strides = [1, 1, 1]} : vector<16x16x8xf32> to vector<16x1x8xf32>
    %47 = vector.shape_cast %46 : vector<16x1x8xf32> to vector<16x8xf32>
    %48 = vector.extract_strided_slice %25 {offsets = [0, 11, 0], sizes = [16, 1, 8], strides = [1, 1, 1]} : vector<16x16x8xf32> to vector<16x1x8xf32>
    %49 = vector.shape_cast %48 : vector<16x1x8xf32> to vector<16x8xf32>
    %50 = vector.extract_strided_slice %25 {offsets = [0, 12, 0], sizes = [16, 1, 8], strides = [1, 1, 1]} : vector<16x16x8xf32> to vector<16x1x8xf32>
    %51 = vector.shape_cast %50 : vector<16x1x8xf32> to vector<16x8xf32>
    %52 = vector.extract_strided_slice %25 {offsets = [0, 13, 0], sizes = [16, 1, 8], strides = [1, 1, 1]} : vector<16x16x8xf32> to vector<16x1x8xf32>
    %53 = vector.shape_cast %52 : vector<16x1x8xf32> to vector<16x8xf32>
    %54 = vector.extract_strided_slice %25 {offsets = [0, 14, 0], sizes = [16, 1, 8], strides = [1, 1, 1]} : vector<16x16x8xf32> to vector<16x1x8xf32>
    %55 = vector.shape_cast %54 : vector<16x1x8xf32> to vector<16x8xf32>
    %56 = vector.extract_strided_slice %25 {offsets = [0, 15, 0], sizes = [16, 1, 8], strides = [1, 1, 1]} : vector<16x16x8xf32> to vector<16x1x8xf32>
    %57 = vector.shape_cast %56 : vector<16x1x8xf32> to vector<16x8xf32>
    %58 = tpu.concatenate %27, %29, %31, %33, %35, %37, %39, %41, %43, %45, %47, %49, %51, %53, %55, %57 in 1 : vector<16x8xf32>, vector<16x8xf32>, vector<16x8xf32>, vector<16x8xf32>, vector<16x8xf32>, vector<16x8xf32>, vector<16x8xf32>, vector<16x8xf32>, vector<16x8xf32>, vector<16x8xf32>, vector<16x8xf32>, vector<16x8xf32>, vector<16x8xf32>, vector<16x8xf32>, vector<16x8xf32>, vector<16x8xf32> -> vector<16x128xf32>
    %c0_41 = arith.constant 0 : index
    %c0_42 = arith.constant 0 : index
    %c0_43 = arith.constant 0 : index
    %59 = vector.load %arg4[%c0_41, %c0_42, %c0_43] : memref<1x16x128xf32, #tpu.memory_space<vmem>>, vector<1x16x128xf32>
    %60 = vector.shape_cast %59 : vector<1x16x128xf32> to vector<16x128xf32>
    %61 = vector.shape_cast %58 : vector<16x128xf32> to vector<1x16x128xf32>
    tpu.vector_store %arg4[%c0_41, %c0_42, %c0_43], %61 {strides = array<i32>} : memref<1x16x128xf32, #tpu.memory_space<vmem>>, vector<1x16x128xf32>,
    return
  }
  func.func @transform_0(%arg0: i32) -> (i32, i32, i32) {
    %c0_i32 = arith.constant 0 : i32
    %c0_i32_0 = arith.constant 0 : i32
    %c0_i32_1 = arith.constant 0 : i32
    return %arg0, %c0_i32, %c0_i32_0 : i32, i32, i32
  }
  func.func @transform_1(%arg0: i32) -> (i32, i32) {
    %c0_i32 = arith.constant 0 : i32
    %c0_i32_0 = arith.constant 0 : i32
    %c0_i32_1 = arith.constant 0 : i32
    return %c0_i32, %c0_i32_0 : i32, i32
  }
  func.func @transform_2(%arg0: i32) -> (i32, i32) {
    %c0_i32 = arith.constant 0 : i32
    %c0_i32_0 = arith.constant 0 : i32
    %c0_i32_1 = arith.constant 0 : i32
    return %c0_i32, %c0_i32_0 : i32, i32
  }
  func.func @transform_3(%arg0: i32) -> (i32, i32, i32) {
    %c0_i32 = arith.constant 0 : i32
    %c0_i32_0 = arith.constant 0 : i32
    %c0_i32_1 = arith.constant 0 : i32
    return %arg0, %c0_i32, %c0_i32_0 : i32, i32, i32
  }
}

</mosaic_0001>

<bundles_post_ra>
// kernel: input_cv_block_forward.1
= control target key start
LH: loop header
LB: loop body
LE: loop exit
PB: predicated region body
PF: predicated region fallthrough
CT: control target
= control target key end

     0   :  { %s4075_s12 = smov 0   ;;  %s5918_s0 = inlined_call_operand.vmem [shape: f32[2,256,36], index: 0, kind: input, shape index: {}]   ;;  %s5919_s1 = inlined_call_operand.vmem [shape: f32[36,32], index: 1, kind: input, shape index: {}]   ;;  %s5920_s2 = inlined_call_operand.vmem [shape: f32[288,8], index: 2, kind: input, shape index: {}]   ;;  %s5921_s3 = inlined_call_operand.vmem [shape: f32[2,16,128], index: 3, kind: output, shape index: {}]  }
   0x1 LB: > { %s3198_s13 = sadd.s32 4294967295, %s4037_s12   ;;  %p3202_p0 = scmp.ge.s32.totalorder %s4037_s12, 1  ;;  %s4037_s12 = sphi %s4075_s12, %s13_s12  }
   0x2   : > { %p137_p1 = scmp.lt.s32.totalorder %s4037_s12, 3 }
   0x4   : > { %p138_p2 = pnand %p3202_p0, %p137_p1 }
   0x5   : > { %p161_p3 = scmp.lt.s32.totalorder (!%p138_p2), %s3198_s13, 1  ;;  %s4040_s28 = smov (!%p138_p2), 32  }
   0x6   : > { %141 = sbr.rel (%p138_p2) target bundleno = 904 (0x388), region = 32  ;;  %s4041_s20 = smov (!%p138_p2), 96  }
   0x7   : > { %s4043_s6 = smov (!%p138_p2), 56   ;;  %s4044_s7 = smov (!%p138_p2), 72  }
   0x8   : > { %s4045_s8 = smov (!%p138_p2), 80   ;;  %s4046_s9 = smov (!%p138_p2), 88  }
   0x9   : > { %s4047_s10 = smov (!%p138_p2), 8   ;;  %s4048_s11 = smov (!%p138_p2), 16  }
   0xa   : > { %s4049_s14 = smov (!%p138_p2), 24   ;;  %s4050_s15 = smov (!%p138_p2), 40  }
   0xb   : > { %v207_v0 = vld [vmem:[%s5919_s1 + $0x20] sm:$0xf]  ;;  %vm305_vm0 = vcmask 1043456   ;;  %v206_v1 = vld [vmem:[%s5919_s1 + $0x18] sm:$0xff]  ;;  %v205_v2 = vld [vmem:[%s5919_s1 + $0x10] sm:$0xff]  ;;  %s5923_s13 = smov (!%p161_p3, %s3198_s13), 1 }
   0xc   : > { %3349 = vmatprep.subr.msk.mxu0 %vm305_vm0, %v207_v0  ;;  %v204_v3 = vld [vmem:[%s5919_s1 + $0x8] sm:$0xff]  ;;  %s3274_s22 = sshll.u32 %s5923_s13, 8  ;;  %vm208_vm1 = vcmask 293888   ;;  %v203_v4 = vld [vmem:[%s5919_s1] sm:$0xff]  ;;  %vm566_vm2 = vcmask 261120   ;;  %vm569_vm3 = vcmask 254976  }
   0xd   : > { %3350 = vmatpush3.msk.msra.mxu0 %vm305_vm0, %v207_v0  ;;  %s4101_s25 = scalar_lea.vmem %s5918_s0, %s3274_s22  ;;  %v4039_v37 = vmov 0.0   ;;  %v1921_v41 = vld [vmem:[%s5920_s2 + $0x78] sm:$0xff]  ;;  %v1920_v42 = vld [vmem:[%s5920_s2 + $0x70] sm:$0xff]  ;;  %v1919_v43 = vld [vmem:[%s5920_s2 + $0x68] sm:$0xff]  ;;  %vm1744_vm4 = vcmask 523264   ;;  %vm1777_vm5 = vcmask 785408  }
   0xe   : > { %3351 = vmatprep.subr.mxu0 %v206_v1  ;;  %v171_v5 = vld [vmem:[%s4101_s25] sm:$0xff]  ;;  %v172_v6 = vld [vmem:[%s4101_s25 + $0x8] sm:$0xff]  ;;  %v173_v7 = vld [vmem:[%s4101_s25 + $0x10] sm:$0xff]  ;;  %572 = vst.msk [vmem:[#allocation2 + $0x20] sm:$0xff] %vm566_vm2, %v4039_v37  ;;  %3463 = vmatprep.subr.mxu1 %v4039_v37  ;;  %vm2537_vm6 = vcmask 1041409   ;;  %vm2540_vm7 = vcmask 1042434  }
   0xf   : > { %3352 = vmatpush3.msra.mxu0 %v206_v1  ;;  %3359 = vmatprep.mubr.msk.f32.mxu0 %vm208_vm1, %v171_v5  ;;  %v174_v8 = vld [vmem:[%s4101_s25 + $0x18] sm:$0xff]  ;;  %v175_v9 = vld [vmem:[%s4101_s25 + $0x20] sm:$0xff]  ;;  %v176_v10 = vld [vmem:[%s4101_s25 + $0x28] sm:$0xff]  ;;  %573 = vst.msk [vmem:[#allocation2 + $0x28] sm:$0x3] %vm569_vm3, %v4039_v37  ;;  %vm2543_vm8 = vcmask 1043459  }
  0x10   : > { %3353 = vmatprep.subr.mxu0 %v205_v2  ;;  %v177_v11 = vld [vmem:[%s4101_s25 + $0x30] sm:$0xff]  ;;  %v178_v12 = vld [vmem:[%s4101_s25 + $0x38] sm:$0xff]  ;;  %v179_v13 = vld [vmem:[%s4101_s25 + $0x40] sm:$0xff]  ;;  %567 = vst.msk [vmem:[#allocation2] sm:$0xff] %vm566_vm2, %v4039_v37  ;;  %3495 = vmatpush1.msra.mxu1 %v1921_v41  ;;  %vm2546_vm9 = vcmask 1044484   ;;  %vm2549_vm10 = vcmask 1045509  }
  0x11   : > { %3354 = vmatpush3.msra.mxu0 %v205_v2  ;;  %v180_v14 = vld [vmem:[%s4101_s25 + $0x48] sm:$0xff]  ;;  %v181_v15 = vld [vmem:[%s4101_s25 + $0x50] sm:$0xff]  ;;  %v182_v16 = vld [vmem:[%s4101_s25 + $0x58] sm:$0xff]  ;;  %568 = vst.msk [vmem:[#allocation2 + $0x8] sm:$0xff] %vm566_vm2, %v4039_v37  ;;  %3464 = vmatprep.subr.mxu1 %v4039_v37  ;;  %vm2552_vm11 = vcmask 1046534   ;;  %vm2555_vm12 = vcmask 1047559  }
  0x12   : > { %3355 = vmatprep.subr.mxu0 %v204_v3  ;;  %v183_v17 = vld [vmem:[%s4101_s25 + $0x60] sm:$0xff]  ;;  %v184_v18 = vld [vmem:[%s4101_s25 + $0x68] sm:$0xff]  ;;  %v185_v19 = vld [vmem:[%s4101_s25 + $0x70] sm:$0xff]  ;;  %570 = vst.msk [vmem:[#allocation2 + $0x10] sm:$0x3] %vm569_vm3, %v4039_v37  ;;  %3496 = vmatpush1.msra.mxu1 %v1920_v42  ;;  %s4051_s16 = smov 48  }
  0x13   : > { %3356 = vmatpush3.msra.mxu0 %v204_v3  ;;  %v186_v20 = vld [vmem:[%s4101_s25 + $0x78] sm:$0xff]  ;;  %v187_v21 = vld [vmem:[%s4101_s25 + $0x80] sm:$0xff]  ;;  %v188_v22 = vld [vmem:[%s4101_s25 + $0x88] sm:$0xff]  ;;  %571 = vst.msk [vmem:[#allocation2 + $0x18] sm:$0xff] %vm566_vm2, %v4039_v37  ;;  %3465 = vmatprep.subr.mxu1 %v4039_v37  ;;  %s4052_s17 = smov 104   ;;  %s4053_s18 = smov 112  }
  0x14   : > { %3357 = vmatprep.subr.mxu0 %v203_v4  ;;  %v189_v23 = vld [vmem:[%s4101_s25 + $0x90] sm:$0xff]  ;;  %v190_v24 = vld [vmem:[%s4101_s25 + $0x98] sm:$0xff]  ;;  %v191_v25 = vld [vmem:[%s4101_s25 + $0xa0] sm:$0xff]  ;;  %574 = vst.msk [vmem:[#allocation2 + $0x30] sm:$0xff] %vm566_vm2, %v4039_v37  ;;  %3497 = vmatpush1.msra.mxu1 %v1919_v43  ;;  %s4054_s19 = smov 120   ;;  %vm3099_vm13 = vcmask 64512  }
  0x15   : > { %3358 = vmatpush3.msra.mxu0 %v203_v4  ;;  %v192_v26 = vld [vmem:[%s4101_s25 + $0xa8] sm:$0xff]  ;;  %v193_v27 = vld [vmem:[%s4101_s25 + $0xb0] sm:$0xff]  ;;  %v194_v28 = vld [vmem:[%s4101_s25 + $0xb8] sm:$0xff]  ;;  %575 = vst.msk [vmem:[#allocation2 + $0x38] sm:$0xff] %vm566_vm2, %v4039_v37  ;;  %3466 = vmatprep.subr.mxu1 %v4039_v37  ;;  %vm3102_vm14 = vcmask 130048   ;;  %vm3105_vm15 = vcmask 195584  }
  0x16   : > { %3360 = vmatmul.mubr.msk.f32.vlgmr.msra.gmra.mxu0 %vm208_vm1, %v172_v6  ;;  %v195_v29 = vld [vmem:[%s4101_s25 + $0xc0] sm:$0xff]  ;;  %v196_v30 = vld [vmem:[%s4101_s25 + $0xc8] sm:$0xff]  ;;  %v197_v31 = vld [vmem:[%s4101_s25 + $0xd0] sm:$0xff]  ;;  %576 = vst.msk [vmem:[#allocation2 + $0x40] sm:$0x3] %vm569_vm3, %v4039_v37  ;;  %2038 = vmatprep.subr.mxu0 %v4039_v37  ;;  %vm3110_vm0 = vcmask 326656  }
  0x17   : > { %3362 = vmatprep.mubr.msk.f32.mxu0 %vm208_vm1, %v173_v7  ;;  %v198_v32 = vld [vmem:[%s4101_s25 + $0xd8] sm:$0xff]  ;;  %v199_v33 = vld [vmem:[%s4101_s25 + $0xe0] sm:$0xff]  ;;  %v200_v34 = vld [vmem:[%s4101_s25 + $0xe8] sm:$0xff]  ;;  %577 = vst.msk [vmem:[#allocation2 + $0x48] sm:$0xff] %vm566_vm2, %v4039_v37  ;;  %2039 = vmatpush1.msra.mxu0 %v1921_v41 }
  0x18   : > { %v201_v35 = vld [vmem:[%s4101_s25 + $0xf0] sm:$0xff]  ;;  %v202_v36 = vld [vmem:[%s4101_s25 + $0xf8] sm:$0xff]  ;;  %578 = vst.msk [vmem:[#allocation2 + $0x50] sm:$0xff] %vm566_vm2, %v4039_v37  ;;  %580 = vst.msk [vmem:[#allocation2 + $0x60] sm:$0xff] %vm566_vm2, %v4039_v37  ;;  %2040 = vmatprep.subr.mxu0 %v4039_v37  ;;  %s4042_s25 = smov 64  }
  0x19   : > { %579 = vst.msk [vmem:[#allocation2 + $0x58] sm:$0x3] %vm569_vm3, %v4039_v37  ;;  %582 = vst.msk [vmem:[#allocation2 + $0x70] sm:$0x3] %vm569_vm3, %v4039_v37  ;;  %v687_v38 = vld [vmem:[#allocation2 + $0x1] sm:$0xff]  ;;  %v688_v39 = vld [vmem:[#allocation2 + $0x9] sm:$0xff]  ;;  %2041 = vmatpush1.msra.mxu0 %v1920_v42 }
  0x1a   : > { %3363 = vmatmul.mubr.msk.f32.gmra.mxu0 %vm208_vm1, %v174_v8  ;;  %581 = vst.msk [vmem:[#allocation2 + $0x68] sm:$0xff] %vm566_vm2, %v4039_v37  ;;  %583 = vst.msk [vmem:[#allocation2 + $0x78] sm:$0xff] %vm566_vm2, %v4039_v37  ;;  %v3551_v40 = vpack.i.bf16 %v688_v39, %v687_v38  ;;  %2042 = vmatprep.subr.mxu0 %v4039_v37  ;;  %v1918_v44 = vld [vmem:[%s5920_s2 + $0x60] sm:$0xff]  ;;  %v1917_v45 = vld [vmem:[%s5920_s2 + $0x58] sm:$0xff] }
  0x1b   : > { %3365 = vmatprep.mubr.msk.f32.mxu0 %vm208_vm1, %v175_v9  ;;  %584 = vst.msk [vmem:[#allocation2 + $0x80] sm:$0xff] %vm566_vm2, %v4039_v37  ;;  %586 = vst.msk [vmem:[#allocation2 + $0x90] sm:$0xff] %vm566_vm2, %v4039_v37  ;;  %2043 = vmatpush1.msra.mxu0 %v1919_v43  ;;  %v1916_v46 = vld [vmem:[%s5920_s2 + $0x50] sm:$0xff]  ;;  %v1915_v47 = vld [vmem:[%s5920_s2 + $0x48] sm:$0xff] }
  0x1c   : > { %585 = vst.msk [vmem:[#allocation2 + $0x88] sm:$0x3] %vm569_vm3, %v4039_v37  ;;  %588 = vst.msk [vmem:[#allocation2 + $0xa0] sm:$0x3] %vm569_vm3, %v4039_v37  ;;  %3552 = vrot.lane.b32.xlu0 %v3551_v40, %s4040_s28  ;;  %2044 = vmatprep.subr.mxu0 %v4039_v37  ;;  %v1914_v48 = vld [vmem:[%s5920_s2 + $0x40] sm:$0xff]  ;;  %v1913_v49 = vld [vmem:[%s5920_s2 + $0x38] sm:$0xff] }
  0x1d   : > { %587 = vst.msk [vmem:[#allocation2 + $0x98] sm:$0xff] %vm566_vm2, %v4039_v37  ;;  %589 = vst.msk [vmem:[#allocation2 + $0xa8] sm:$0xff] %vm566_vm2, %v4039_v37  ;;  %2045 = vmatpush1.msra.mxu0 %v1918_v44  ;;  %3498 = vmatpush1.msra.mxu1 %v1918_v44  ;;  %v1912_v50 = vld [vmem:[%s5920_s2 + $0x30] sm:$0xff]  ;;  %v1911_v51 = vld [vmem:[%s5920_s2 + $0x28] sm:$0xff] }
  0x1e   : > { %3366 = vmatmul.mubr.msk.f32.gmra.mxu0 %vm208_vm1, %v176_v10  ;;  %590 = vst.msk [vmem:[#allocation2 + $0xb0] sm:$0xff] %vm566_vm2, %v4039_v37  ;;  %592 = vst.msk [vmem:[#allocation2 + $0xc0] sm:$0xff] %vm566_vm2, %v4039_v37  ;;  %2046 = vmatprep.subr.mxu0 %v4039_v37  ;;  %v1910_v55 = vld [vmem:[%s5920_s2 + $0x20] sm:$0xff]  ;;  %v1909_v57 = vld [vmem:[%s5920_s2 + $0x18] sm:$0xff] }
  0x1f   : > { %3368 = vmatprep.mubr.msk.f32.mxu0 %vm208_vm1, %v177_v11  ;;  %591 = vst.msk [vmem:[#allocation2 + $0xb8] sm:$0x3] %vm569_vm3, %v4039_v37  ;;  %594 = vst.msk [vmem:[#allocation2 + $0xd0] sm:$0x3] %vm569_vm3, %v4039_v37  ;;  %3467 = vmatprep.subr.mxu1 %v4039_v37  ;;  %v1908_v61 = vld [vmem:[%s5920_s2 + $0x10] sm:$0xff]  ;;  %v1907_v63 = vld [vmem:[%s5920_s2 + $0x8] sm:$0xff] }
  0x20   : > { %593 = vst.msk [vmem:[#allocation2 + $0xc8] sm:$0xff] %vm566_vm2, %v4039_v37  ;;  %595 = vst.msk [vmem:[#allocation2 + $0xd8] sm:$0xff] %vm566_vm2, %v4039_v37  ;;  %2047 = vmatpush1.msra.mxu0 %v1917_v45  ;;  %3499 = vmatpush1.msra.mxu1 %v1917_v45  ;;  %v1906_v3 = vld [vmem:[%s5920_s2] sm:$0xff]  ;;  %v1937_v5 = vld [vmem:[%s5920_s2 + $0xf8] sm:$0xff] }
  0x21   : > { %596 = vst.msk [vmem:[#allocation2 + $0xe0] sm:$0xff] %vm566_vm2, %v4039_v37  ;;  %598 = vst.msk [vmem:[#allocation2 + $0xf0] sm:$0xff] %vm566_vm2, %v4039_v37  ;;  %2048 = vmatprep.subr.mxu0 %v4039_v37  ;;  %3468 = vmatprep.subr.mxu1 %v4039_v37  ;;  %v1932_v38 = vld [vmem:[%s5920_s2 + $0xd0] sm:$0xff]  ;;  %v1931_v44 = vld [vmem:[%s5920_s2 + $0xc8] sm:$0xff] }
  0x22   : > { %3369 = vmatmul.mubr.msk.f32.gmra.mxu0 %vm208_vm1, %v178_v12  ;;  %597 = vst.msk [vmem:[#allocation2 + $0xe8] sm:$0x3] %vm569_vm3, %v4039_v37  ;;  %600 = vst.msk [vmem:[#allocation2 + $0x100] sm:$0x3] %vm569_vm3, %v4039_v37  ;;  %3500 = vmatpush1.msra.mxu1 %v1916_v46 }
  0x23   : > { %3371 = vmatprep.mubr.msk.f32.mxu0 %vm208_vm1, %v179_v13  ;;  %599 = vst.msk [vmem:[#allocation2 + $0xf8] sm:$0xff] %vm566_vm2, %v4039_v37  ;;  %601 = vst.msk [vmem:[#allocation2 + $0x108] sm:$0xff] %vm566_vm2, %v4039_v37  ;;  %2049 = vmatpush1.msra.mxu0 %v1916_v46  ;;  %v1936_v13 = vld [vmem:[%s5920_s2 + $0xf0] sm:$0xff] }
  0x24   : > { %602 = vst.msk [vmem:[#allocation2 + $0x110] sm:$0xff] %vm566_vm2, %v4039_v37  ;;  %604 = vst.msk [vmem:[#allocation2 + $0x120] sm:$0xff] %vm566_vm2, %v4039_v37  ;;  %2050 = vmatprep.subr.mxu0 %v4039_v37  ;;  %3469 = vmatprep.subr.mxu1 %v4039_v37 }
  0x25   : > { %603 = vst.msk [vmem:[#allocation2 + $0x118] sm:$0x3] %vm569_vm3, %v4039_v37  ;;  %606 = vst.msk [vmem:[#allocation2 + $0x130] sm:$0x3] %vm569_vm3, %v4039_v37  ;;  %2051 = vmatpush1.msra.mxu0 %v1915_v47  ;;  %3501 = vmatpush1.msra.mxu1 %v1915_v47 }
  0x26   : > { %3372 = vmatmul.mubr.msk.f32.gmra.mxu0 %vm208_vm1, %v180_v14  ;;  %605 = vst.msk [vmem:[#allocation2 + $0x128] sm:$0xff] %vm566_vm2, %v4039_v37  ;;  %607 = vst.msk [vmem:[#allocation2 + $0x138] sm:$0xff] %vm566_vm2, %v4039_v37  ;;  %2052 = vmatprep.subr.mxu0 %v4039_v37 }
  0x27   : > { %3374 = vmatprep.mubr.msk.f32.mxu0 %vm208_vm1, %v181_v15  ;;  %608 = vst.msk [vmem:[#allocation2 + $0x140] sm:$0xff] %vm566_vm2, %v4039_v37  ;;  %610 = vst.msk [vmem:[#allocation2 + $0x150] sm:$0xff] %vm566_vm2, %v4039_v37  ;;  %3470 = vmatprep.subr.mxu1 %v4039_v37  ;;  %v1935_v15 = vld [vmem:[%s5920_s2 + $0xe8] sm:$0xff] }
  0x28   : > { %609 = vst.msk [vmem:[#allocation2 + $0x148] sm:$0x3] %vm569_vm3, %v4039_v37  ;;  %612 = vst.msk [vmem:[#allocation2 + $0x160] sm:$0x3] %vm569_vm3, %v4039_v37  ;;  %2053 = vmatpush1.msra.mxu0 %v1914_v48  ;;  %3502 = vmatpush1.msra.mxu1 %v1914_v48 }
  0x29   : > { %611 = vst.msk [vmem:[#allocation2 + $0x158] sm:$0xff] %vm566_vm2, %v4039_v37  ;;  %613 = vst.msk [vmem:[#allocation2 + $0x168] sm:$0xff] %vm566_vm2, %v4039_v37  ;;  %2054 = vmatprep.subr.mxu0 %v4039_v37  ;;  %3471 = vmatprep.subr.mxu1 %v4039_v37 }
  0x2a   : > { %3375 = vmatmul.mubr.msk.f32.gmra.mxu0 %vm208_vm1, %v182_v16  ;;  %614 = vst.msk [vmem:[#allocation2 + $0x170] sm:$0xff] %vm566_vm2, %v4039_v37  ;;  %616 = vst.msk [vmem:[#allocation2 + $0x180] sm:$0xff] %vm566_vm2, %v4039_v37  ;;  %3503 = vmatpush1.msra.mxu1 %v1913_v49 }
  0x2b   : > { %3377 = vmatprep.mubr.msk.f32.mxu0 %vm208_vm1, %v183_v17  ;;  %615 = vst.msk [vmem:[#allocation2 + $0x178] sm:$0x3] %vm569_vm3, %v4039_v37  ;;  %618 = vst.msk [vmem:[#allocation2 + $0x190] sm:$0x3] %vm569_vm3, %v4039_v37  ;;  %2055 = vmatpush1.msra.mxu0 %v1913_v49  ;;  %v1930_v49 = vld [vmem:[%s5920_s2 + $0xc0] sm:$0xff] }
  0x2c   : > { %617 = vst.msk [vmem:[#allocation2 + $0x188] sm:$0xff] %vm566_vm2, %v4039_v37  ;;  %619 = vst.msk [vmem:[#allocation2 + $0x198] sm:$0xff] %vm566_vm2, %v4039_v37  ;;  %2056 = vmatprep.subr.mxu0 %v4039_v37  ;;  %3472 = vmatprep.subr.mxu1 %v4039_v37 }
  0x2d   : > { %620 = vst.msk [vmem:[#allocation2 + $0x1a0] sm:$0xff] %vm566_vm2, %v4039_v37  ;;  %2057 = vmatpush1.msra.mxu0 %v1912_v50  ;;  %3504 = vmatpush1.msra.mxu1 %v1912_v50 }
  0x2e   : > { %3378 = vmatmul.mubr.msk.f32.gmra.mxu0 %vm208_vm1, %v184_v18  ;;  %621 = vst.msk [vmem:[#allocation2 + $0x1a8] sm:$0x3] %vm569_vm3, %v4039_v37  ;;  %2058 = vmatprep.subr.mxu0 %v4039_v37  ;;  %vm3116_vm3 = vcmask 457728  }
  0x2f   : > { %3380 = vmatprep.mubr.msk.f32.mxu0 %vm208_vm1, %v185_v19  ;;  %3473 = vmatprep.subr.mxu1 %v4039_v37 }
  0x30   : > { %2059 = vmatpush1.msra.mxu0 %v1911_v51  ;;  %3505 = vmatpush1.msra.mxu1 %v1911_v51 }
  0x31   : > { %2060 = vmatprep.subr.mxu0 %v4039_v37  ;;  %3474 = vmatprep.subr.mxu1 %v4039_v37 }
  0x32   : > { %3381 = vmatmul.mubr.msk.f32.gmra.mxu0 %vm208_vm1, %v186_v20  ;;  %3506 = vmatpush1.msra.mxu1 %v1910_v55 }
  0x33   : > { %3383 = vmatprep.mubr.msk.f32.mxu0 %vm208_vm1, %v187_v21  ;;  %2061 = vmatpush1.msra.mxu0 %v1910_v55 }
  0x34   : > { %2062 = vmatprep.subr.mxu0 %v4039_v37  ;;  %3475 = vmatprep.subr.mxu1 %v4039_v37 }
  0x35   : > { %2063 = vmatpush1.msra.mxu0 %v1909_v57  ;;  %3507 = vmatpush1.msra.mxu1 %v1909_v57 }
  0x36   : > { %3384 = vmatmul.mubr.msk.f32.gmra.mxu0 %vm208_vm1, %v188_v22  ;;  %2064 = vmatprep.subr.mxu0 %v4039_v37 }
  0x37   : > { %3386 = vmatprep.mubr.msk.f32.mxu0 %vm208_vm1, %v189_v23  ;;  %3476 = vmatprep.subr.mxu1 %v4039_v37  ;;  %v719_v23 = vld [vmem:[#allocation2 + $0x2] sm:$0xff] }
  0x38   : > { %2065 = vmatpush1.msra.mxu0 %v1908_v61  ;;  %3508 = vmatpush1.msra.mxu1 %v1908_v61 }
  0x39   : > { %2066 = vmatprep.subr.mxu0 %v4039_v37  ;;  %3477 = vmatprep.subr.mxu1 %v4039_v37 }
  0x3a   : > { %3387 = vmatmul.mubr.msk.f32.gmra.mxu0 %vm208_vm1, %v190_v24  ;;  %3509 = vmatpush1.msra.mxu1 %v1907_v63 }
  0x3b   : > { %3389 = vmatprep.mubr.msk.f32.mxu0 %vm208_vm1, %v191_v25  ;;  %2067 = vmatpush1.msra.mxu0 %v1907_v63  ;;  %v1934_v25 = vld [vmem:[%s5920_s2 + $0xe0] sm:$0xff] }
  0x3c   : > { %2068 = vmatprep.subr.mxu0 %v4039_v37  ;;  %3478 = vmatprep.subr.mxu1 %v4039_v37 }
  0x3d   : > { %2069 = vmatpush1.msra.mxu0 %v1906_v3  ;;  %3510 = vmatpush1.msra.mxu1 %v1906_v3 }
  0x3e   : > { %3390 = vmatmul.mubr.msk.f32.gmra.mxu0 %vm208_vm1, %v192_v26  ;;  %2070 = vmatprep.subr.mxu0 %v4039_v37 }
  0x3f   : > { %3392 = vmatprep.mubr.msk.f32.mxu0 %vm208_vm1, %v193_v27  ;;  %3479 = vmatprep.subr.mxu1 %v4039_v37  ;;  %v1933_v27 = vld [vmem:[%s5920_s2 + $0xd8] sm:$0xff] }
  0x40   : > { %2071 = vmatpush2.msra.mxu0 %v1937_v5  ;;  %3511 = vmatpush2.msra.mxu1 %v1937_v5  ;;  %v1927_v5 = vld [vmem:[%s5920_s2 + $0xa8] sm:$0xff] }
  0x41   : > { %2072 = vmatprep.subr.mxu0 %v4039_v37  ;;  %3480 = vmatprep.subr.mxu1 %v4039_v37 }
  0x42   : > { %3393 = vmatmul.mubr.msk.f32.gmra.mxu0 %vm208_vm1, %v194_v28  ;;  %3512 = vmatpush2.msra.mxu1 %v1936_v13 }
  0x43   : > { %3395 = vmatprep.mubr.msk.f32.mxu0 %vm208_vm1, %v195_v29  ;;  %2073 = vmatpush2.msra.mxu0 %v1936_v13  ;;  %v1926_v13 = vld [vmem:[%s5920_s2 + $0xa0] sm:$0xff] }
  0x44   : > { %2074 = vmatprep.subr.mxu0 %v4039_v37  ;;  %3481 = vmatprep.subr.mxu1 %v4039_v37 }
  0x45   : > { %2075 = vmatpush2.msra.mxu0 %v1935_v15  ;;  %3513 = vmatpush2.msra.mxu1 %v1935_v15 }
  0x46   : > { %3396 = vmatmul.mubr.msk.f32.gmra.mxu0 %vm208_vm1, %v196_v30  ;;  %2076 = vmatprep.subr.mxu0 %v4039_v37 }
  0x47   : > { %3398 = vmatprep.mubr.msk.f32.mxu0 %vm208_vm1, %v197_v31  ;;  %2077 = vmatpush2.msra.mxu0 %v1934_v25 }
  0x48   : > { %3482 = vmatprep.subr.mxu1 %v4039_v37  ;;  %2078 = vmatprep.subr.mxu0 %v4039_v37 }
  0x49   : > { %3514 = vmatpush2.msra.mxu1 %v1934_v25  ;;  %2079 = vmatpush2.msra.mxu0 %v1933_v27 }
  0x4a   : > { %3399 = vmatmul.mubr.msk.f32.gmra.mxu0 %vm208_vm1, %v198_v32  ;;  %3483 = vmatprep.subr.mxu1 %v4039_v37 }
  0x4b   : > { %3401 = vmatprep.mubr.msk.f32.mxu0 %vm208_vm1, %v199_v33  ;;  %v720_v33 = vld [vmem:[#allocation2 + $0xa] sm:$0xff]  ;;  %2080 = vmatprep.subr.mxu0 %v4039_v37 }
  0x4c   : > { %3515 = vmatpush2.msra.mxu1 %v1933_v27  ;;  %2081 = vmatpush2.msra.mxu0 %v1932_v38 }
  0x4d   : > { %3484 = vmatprep.subr.mxu1 %v4039_v37  ;;  %2082 = vmatprep.subr.mxu0 %v4039_v37 }
  0x4e   : > { %3402 = vmatmul.mubr.msk.f32.gmra.mxu0 %vm208_vm1, %v200_v34  ;;  %3516 = vmatpush2.msra.mxu1 %v1932_v38 }
  0x4f   : > { %3404 = vmatprep.mubr.msk.f32.mxu0 %vm208_vm1, %v201_v35  ;;  %2083 = vmatpush2.msra.mxu0 %v1931_v44 }
  0x50   : > { %3485 = vmatprep.subr.mxu1 %v4039_v37  ;;  %2084 = vmatprep.subr.mxu0 %v4039_v37 }
  0x51   : > { %3517 = vmatpush2.msra.mxu1 %v1931_v44  ;;  %2085 = vmatpush2.msra.mxu0 %v1930_v49 }
  0x52   : > { %3405 = vmatmul.mubr.msk.f32.gmra.mxu0 %vm208_vm1, %v202_v36  ;;  %3486 = vmatprep.subr.mxu1 %v4039_v37  ;;  %vm3113_vm1 = vcmask 392192  }
  0x53   : > { %2086 = vmatprep.subr.mxu0 %v4039_v37  ;;  %3518 = vmatpush2.msra.mxu1 %v1930_v49 }
  0x54   : > { %3487 = vmatprep.subr.mxu1 %v4039_v37 }
  0xd6   : > { %v3361_v52 = vpop.f32.mrf.mxu0 }
  0xd7   : > { %v535_v53 = vmax.f32 %v3361_v52, 0.0 }
  0xd8   : > { %v375_v54 = vpop.f32.mrf.mxu0 }
  0xd9   : > { %624 = vst.msk [vmem:[#allocation2 + $0x21] sm:$0xff] %vm566_vm2, %v535_v53  ;;  %v534_v56 = vmax.f32 %v375_v54, 0.0 }
  0xda   : > { %v3364_v58 = vpop.f32.mrf.mxu0 }
  0xdb   : > { %623 = vst.msk [vmem:[#allocation2 + $0x19] sm:$0xff] %vm566_vm2, %v534_v56  ;;  %v537_v59 = vmax.f32 %v3364_v58, 0.0  ;;  %v1929_v58 = vld [vmem:[%s5920_s2 + $0xb8] sm:$0xff] }
  0xdc   : > { %v385_v60 = vpop.f32.mrf.mxu0  ;;  %2087 = vmatpush2.msra.mxu0 %v1929_v58  ;;  %3519 = vmatpush2.msra.mxu1 %v1929_v58 }
  0xdd   : > { %626 = vst.msk [vmem:[#allocation2 + $0x39] sm:$0xff] %vm566_vm2, %v537_v59  ;;  %v536_v62 = vmax.f32 %v385_v60, 0.0  ;;  %2088 = vmatprep.subr.mxu0 %v4039_v37  ;;  %3488 = vmatprep.subr.mxu1 %v4039_v37 }
  0xde   : > { %v3367_v0 = vpop.f32.mrf.mxu0 }
  0xdf   : > { %625 = vst.msk [vmem:[#allocation2 + $0x31] sm:$0xff] %vm566_vm2, %v536_v62  ;;  %v539_v1 = vmax.f32 %v3367_v0, 0.0 }
  0xe0   : > { %v395_v2 = vpop.f32.mrf.mxu0  ;;  %v690_v8 = vld [vmem:[#allocation2 + $0x21] sm:$0xff] }
  0xe1   : > { %628 = vst.msk [vmem:[#allocation2 + $0x51] sm:$0xff] %vm566_vm2, %v539_v1  ;;  %v538_v4 = vmax.f32 %v395_v2, 0.0  ;;  %v722_v60 = vld [vmem:[#allocation2 + $0x22] sm:$0xff]  ;;  %v1928_v1 = vld [vmem:[%s5920_s2 + $0xb0] sm:$0xff] }
  0xe2   : > { %v3370_v6 = vpop.f32.mrf.mxu0  ;;  %v689_v7 = vld [vmem:[#allocation2 + $0x19] sm:$0xff]  ;;  %2089 = vmatpush2.msra.mxu0 %v1928_v1  ;;  %3520 = vmatpush2.msra.mxu1 %v1928_v1 }
  0xe3   : > { %627 = vst.msk [vmem:[#allocation2 + $0x49] sm:$0xff] %vm566_vm2, %v538_v4  ;;  %v541_v9 = vmax.f32 %v3370_v6, 0.0  ;;  %v3556_v10 = vpack.i.bf16 %v690_v8, %v689_v7  ;;  %v752_v17 = vld [vmem:[#allocation2 + $0x20] sm:$0xff]  ;;  %v751_v29 = vld [vmem:[#allocation2 + $0x18] sm:$0xff]  ;;  %2090 = vmatprep.subr.mxu0 %v4039_v37  ;;  %3489 = vmatprep.subr.mxu1 %v4039_v37 }
  0xe4   : > { %v405_v11 = vpop.f32.mrf.mxu0  ;;  %v881_v12 = vld [vmem:[#allocation2 + $0x39] sm:$0xff]  ;;  %2091 = vmatpush2.msra.mxu0 %v1927_v5  ;;  %3521 = vmatpush2.msra.mxu1 %v1927_v5 }
  0xe5   : > { %630 = vst.msk [vmem:[#allocation2 + $0x69] sm:$0xff] %vm566_vm2, %v541_v9  ;;  %v540_v14 = vmax.f32 %v405_v11, 0.0  ;;  %3557 = vrot.lane.b32.xlu0 %v3556_v10, %s4040_s28  ;;  %v3561_v20 = vpack.i.bf16 %v752_v17, %v881_v12  ;;  %v4426_v50 = vld [vmem:[#allocation2 + $0x1a] sm:$0xff]  ;;  %2092 = vmatprep.subr.mxu0 %v4039_v37 }
  0xe6   : > { %v3373_v16 = vpop.f32.mrf.mxu0  ;;  %v691_v18 = vld [vmem:[#allocation2 + $0x31] sm:$0xff]  ;;  %2093 = vmatpush2.msra.mxu0 %v1926_v13  ;;  %3490 = vmatprep.subr.mxu1 %v4039_v37  ;;  %v724_v25 = vld [vmem:[#allocation2 + $0x3a] sm:$0xff] }
  0xe7   : > { %629 = vst.msk [vmem:[#allocation2 + $0x61] sm:$0xff] %vm566_vm2, %v540_v14  ;;  %v543_v19 = vmax.f32 %v3373_v16, 0.0  ;;  %v3566_v21 = vpack.i.bf16 %v881_v12, %v691_v18  ;;  %v4383_v24 = vld [vmem:[#allocation2 + $0x30] sm:$0xff]  ;;  %v3576_v31 = vpack.i.bf16 %v751_v29, %v691_v18  ;;  %v849_v35 = vld [vmem:[#allocation2 + $0x38] sm:$0xff]  ;;  %2094 = vmatprep.subr.mxu0 %v4039_v37  ;;  %3522 = vmatpush2.msra.mxu1 %v1926_v13 }
  0xe8   : > { %v415_v22 = vpop.f32.mrf.mxu0  ;;  %v3571_v32 = vpack.i.bf16 %v719_v23, %v4383_v24  ;;  %v4399_v36 = vld [vmem:[#allocation2 + $0x51] sm:$0xff]  ;;  %v3581_v42 = vpack.i.bf16 %v720_v33, %v849_v35  ;;  %3491 = vmatprep.subr.mxu1 %v4039_v37  ;;  %v1923_v33 = vld [vmem:[%s5920_s2 + $0x88] sm:$0xff] }
  0xe9   : > { %632 = vst.msk [vmem:[#allocation2 + $0x81] sm:$0xff] %vm566_vm2, %v543_v19  ;;  %v542_v26 = vmax.f32 %v415_v22, 0.0  ;;  %3562 = vrot.lane.b32.xlu0 %v3561_v20, %s4041_s20  ;;  %3567 = vrot.lane.b32.xlu1 %v3566_v21, %s4040_s28  ;;  %v3586_v43 = vpack.i.bf16 %v849_v35, %v4399_v36  ;;  %v1925_v19 = vld [vmem:[%s5920_s2 + $0x98] sm:$0xff] }
  0xea   : > { %v3376_v28 = vpop.f32.mrf.mxu0  ;;  %v4415_v45 = vld [vmem:[#allocation2 + $0x49] sm:$0xff]  ;;  %2095 = vmatpush2.msra.mxu0 %v1925_v19  ;;  %3523 = vmatpush2.msra.mxu1 %v1925_v19 }
  0xeb   : > { %631 = vst.msk [vmem:[#allocation2 + $0x79] sm:$0xff] %vm566_vm2, %v542_v26  ;;  %v545_v30 = vmax.f32 %v3376_v28, 0.0  ;;  %v4417_v46 = vld [vmem:[#allocation2 + $0x48] sm:$0xff]  ;;  %v3596_v52 = vpack.i.bf16 %v4383_v24, %v4415_v45  ;;  %v851_v55 = vld [vmem:[#allocation2 + $0x50] sm:$0xff]  ;;  %2096 = vmatprep.subr.mxu0 %v4039_v37  ;;  %3492 = vmatprep.subr.mxu1 %v4039_v37 }
  0xec   : > { %v425_v34 = vpop.f32.mrf.mxu0  ;;  %v3591_v53 = vpack.i.bf16 %v4426_v50, %v4417_v46  ;;  %v4435_v56 = vld [vmem:[#allocation2 + $0x6a] sm:$0xff]  ;;  %v3601_v62 = vpack.i.bf16 %v722_v60, %v851_v55  ;;  %v4490_v26 = vld [vmem:[#allocation2 + $0x32] sm:$0xff] }
  0xed   : > { %634 = vst.msk [vmem:[#allocation2 + $0x99] sm:$0xff] %vm566_vm2, %v545_v30  ;;  %v544_v39 = vmax.f32 %v425_v34, 0.0  ;;  %3577 = vrot.lane.b32.xlu0 %v3576_v31, %s4041_s20  ;;  %3572 = vrot.lane.b32.xlu1 %v3571_v32, %s4042_s25  ;;  %v3606_v63 = vpack.i.bf16 %v4399_v36, %v4435_v56  ;;  %v885_v2 = vld [vmem:[#allocation2 + $0x69] sm:$0xff] }
  0xee   : > { %v3379_v40 = vpop.f32.mrf.mxu0  ;;  %v3616_v7 = vpack.i.bf16 %v851_v55, %v885_v2  ;;  %v3611_v8 = vpack.i.bf16 %v722_v60, %v885_v2  ;;  %v4462_v10 = vld [vmem:[#allocation2 + $0x61] sm:$0xff]  ;;  %v1924_v24 = vld [vmem:[%s5920_s2 + $0x90] sm:$0xff] }
  0xef   : > { %633 = vst.msk [vmem:[#allocation2 + $0x91] sm:$0xff] %vm566_vm2, %v544_v39  ;;  %v547_v41 = vmax.f32 %v3379_v40, 0.0  ;;  %v4464_v11 = vld [vmem:[#allocation2 + $0x62] sm:$0xff]  ;;  %v3631_v16 = vpack.i.bf16 %v4417_v46, %v4462_v10  ;;  %2097 = vmatpush2.msra.mxu0 %v1924_v24  ;;  %3524 = vmatpush2.msra.mxu1 %v1924_v24 }
  0xf0   : > { %v435_v47 = vpop.f32.mrf.mxu0  ;;  %v3621_v17 = vpack.i.bf16 %v4464_v11, %v4415_v45  ;;  %v853_v20 = vld [vmem:[#allocation2 + $0x68] sm:$0xff]  ;;  %v852_v21 = vld [vmem:[#allocation2 + $0x60] sm:$0xff]  ;;  %2098 = vmatprep.subr.mxu0 %v4039_v37  ;;  %3493 = vmatprep.subr.mxu1 %v4039_v37 }
  0xf1   : > { %636 = vst.msk [vmem:[#allocation2 + $0xb1] sm:$0xff] %vm566_vm2, %v547_v41  ;;  %3582 = vrot.lane.b32.xlu0 %v3581_v42, %s4042_s25  ;;  %3587 = vrot.lane.b32.xlu1 %v3586_v43, %s4041_s20  ;;  %v546_v48 = vmax.f32 %v435_v47, 0.0  ;;  %v3636_v28 = vpack.i.bf16 %v724_v25, %v853_v20  ;;  %v3626_v29 = vpack.i.bf16 %v4490_v26, %v852_v21  ;;  %v4496_v31 = vld [vmem:[#allocation2 + $0x82] sm:$0xff] }
  0xf2   : > { %v3382_v51 = vpop.f32.mrf.mxu0  ;;  %v887_v35 = vld [vmem:[#allocation2 + $0x81] sm:$0xff]  ;;  %v3646_v39 = vpack.i.bf16 %v4496_v31, %v4426_v50  ;;  %2099 = vmatpush2.msra.mxu0 %v1923_v33  ;;  %v4513_v42 = vld [vmem:[#allocation2 + $0x79] sm:$0xff]  ;;  %3525 = vmatpush2.msra.mxu1 %v1923_v33 }
  0xf3   : > { %635 = vst.msk [vmem:[#allocation2 + $0xa9] sm:$0xff] %vm566_vm2, %v546_v48  ;;  %v549_v54 = vmax.f32 %v3382_v51, 0.0  ;;  %v3641_v38 = vpack.i.bf16 %v853_v20, %v887_v35  ;;  %v1922_v41 = vld [vmem:[%s5920_s2 + $0x80] sm:$0xff]  ;;  %2100 = vmatprep.subr.mxu0 %v4039_v37  ;;  %3494 = vmatprep.subr.mxu1 %v4039_v37  ;;  %v3651_v46 = vpack.i.bf16 %v724_v25, %v887_v35  ;;  %v854_v50 = vld [vmem:[#allocation2 + $0x78] sm:$0xff] }
  0xf4   : > { %v445_v57 = vpop.f32.mrf.mxu0  ;;  %2101 = vmatpush2.msra.mxu0 %v1922_v41  ;;  %v3661_v47 = vpack.i.bf16 %v852_v21, %v4513_v42  ;;  %3526 = vmatpush2.msra.mxu1 %v1922_v41  ;;  %v855_v49 = vld [vmem:[#allocation2 + $0x80] sm:$0xff] }
  0xf5   : > { %3597 = vrot.lane.b32.xlu1 %v3596_v52, %s4041_s20  ;;  %3592 = vrot.lane.b32.xlu0 %v3591_v53, %s4042_s25  ;;  %638 = vst.msk [vmem:[#allocation2 + $0xc9] sm:$0xff] %vm566_vm2, %v549_v54  ;;  %v548_v59 = vmax.f32 %v445_v57, 0.0  ;;  %v726_v53 = vld [vmem:[#allocation2 + $0x52] sm:$0xff]  ;;  %v725_v54 = vld [vmem:[#allocation2 + $0x4a] sm:$0xff]  ;;  %v4526_v60 = vld [vmem:[#allocation2 + $0x9a] sm:$0xff] }
  0xf6   : > { %v3385_v61 = vpop.f32.mrf.mxu0  ;;  %v3666_v55 = vpack.i.bf16 %v726_v53, %v855_v49  ;;  %v3656_v57 = vpack.i.bf16 %v725_v54, %v854_v50  ;;  %v3681_v1 = vpack.i.bf16 %v4526_v60, %v4490_v26  ;;  %v857_v13 = vld [vmem:[#allocation2 + $0x98] sm:$0xff] }
  0xf7   : > { %637 = vst.msk [vmem:[#allocation2 + $0xc1] sm:$0xff] %vm566_vm2, %v548_v59  ;;  %v551_v0 = vmax.f32 %v3385_v61, 0.0  ;;  %v823_v59 = vld [vmem:[#allocation2 + $0x7a] sm:$0xff] }
  0xf8   : > { %v455_v3 = vpop.f32.mrf.mxu0 }
  0xf9   : > { %3602 = vrot.lane.b32.xlu1 %v3601_v62, %s4042_s25  ;;  %3607 = vrot.lane.b32.xlu0 %v3606_v63, %s4040_s28  ;;  %640 = vst.msk [vmem:[#allocation2 + $0xe1] sm:$0xff] %vm566_vm2, %v551_v0  ;;  %v550_v4 = vmax.f32 %v455_v3, 0.0  ;;  %v3671_v0 = vpack.i.bf16 %v4462_v10, %v823_v59  ;;  %v856_v3 = vld [vmem:[#allocation2 + $0x90] sm:$0xff] }
  0xfa   : > { %v3388_v6 = vpop.f32.mrf.mxu0  ;;  %v858_v21 = vld [vmem:[#allocation2 + $0xa8] sm:$0xff] }
  0xfb   : > { %639 = vst.msk [vmem:[#allocation2 + $0xd9] sm:$0xff] %vm566_vm2, %v550_v4  ;;  %v553_v9 = vmax.f32 %v3388_v6, 0.0  ;;  %v889_v6 = vld [vmem:[#allocation2 + $0x99] sm:$0xff]  ;;  %v890_v24 = vld [vmem:[#allocation2 + $0xa9] sm:$0xff] }
  0xfc   : > { %v465_v12 = vpop.f32.mrf.mxu0  ;;  %v3686_v10 = vpack.i.bf16 %v726_v53, %v889_v6  ;;  %v3726_v26 = vpack.i.bf16 %v856_v3, %v890_v24  ;;  %v893_v33 = vld [vmem:[#allocation2 + $0xc9] sm:$0xff] }
  0xfd   : > { %3617 = vrot.lane.b32.xlu0 %v3616_v7, %s4041_s20  ;;  %3612 = vrot.lane.b32.xlu1 %v3611_v8, %s4040_s28  ;;  %642 = vst.msk [vmem:[#allocation2 + $0xf9] sm:$0xff] %vm566_vm2, %v553_v9  ;;  %v552_v14 = vmax.f32 %v465_v12, 0.0  ;;  %v3676_v7 = vpack.i.bf16 %v855_v49, %v889_v6  ;;  %v3691_v8 = vpack.i.bf16 %v4464_v11, %v856_v3  ;;  %v888_v9 = vld [vmem:[#allocation2 + $0x91] sm:$0xff]  ;;  %v4583_v3 = vpop.permute.xlu0 %3552 }
  0xfe   : > { %v3391_v15 = vpop.f32.mrf.mxu0  ;;  %v3696_v12 = vpack.i.bf16 %v854_v50, %v888_v9  ;;  %v4549_v11 = vld [vmem:[%s5920_s2 + $0x118] sm:$0xff]  ;;  %v860_v25 = vld [vmem:[#allocation2 + $0xc0] sm:$0xff] }
  0xff   : > { %641 = vst.msk [vmem:[#allocation2 + $0xf1] sm:$0xff] %vm566_vm2, %v552_v14  ;;  %v555_v18 = vmax.f32 %v3391_v15, 0.0  ;;  %v825_v14 = vld [vmem:[#allocation2 + $0x92] sm:$0xff]  ;;  %v3701_v15 = vpack.i.bf16 %v4435_v56, %v857_v13  ;;  %3407 = vmatprep.subr.mxu0 %v4549_v11  ;;  %v3721_v56 = vpack.i.bf16 %v823_v59, %v858_v21 }
 0x100   : > { %v475_v22 = vpop.f32.mrf.mxu0  ;;  %v832_v49 = vld [vmem:[#allocation2 + $0xe2] sm:$0xff] }
 0x101   : > { %3632 = vrot.lane.b32.xlu0 %v3631_v16, %s4041_s20  ;;  %3622 = vrot.lane.b32.xlu1 %v3621_v17, %s4040_s28  ;;  %644 = vst.msk [vmem:[#allocation2 + $0x111] sm:$0xff] %vm566_vm2, %v555_v18  ;;  %v554_v23 = vmax.f32 %v475_v22, 0.0  ;;  %v3706_v16 = vpack.i.bf16 %v4513_v42, %v825_v14  ;;  %v891_v17 = vld [vmem:[#allocation2 + $0xb1] sm:$0xff]  ;;  %v829_v42 = vld [vmem:[#allocation2 + $0xc2] sm:$0xff] }
 0x102   : > { %v3394_v27 = vpop.f32.mrf.mxu0  ;;  %v828_v18 = vld [vmem:[#allocation2 + $0xb2] sm:$0xff]  ;;  %v3711_v19 = vpack.i.bf16 %v857_v13, %v891_v17  ;;  %v827_v22 = vld [vmem:[#allocation2 + $0xaa] sm:$0xff] }
 0x103   : > { %643 = vst.msk [vmem:[#allocation2 + $0x109] sm:$0xff] %vm566_vm2, %v554_v23  ;;  %v557_v30 = vmax.f32 %v3394_v27, 0.0  ;;  %v3716_v20 = vpack.i.bf16 %v828_v18, %v725_v54  ;;  %v3736_v23 = vpack.i.bf16 %v888_v9, %v827_v22  ;;  %v3751_v27 = vpack.i.bf16 %v825_v14, %v860_v25 }
 0x104   : > { %v485_v32 = vpop.f32.mrf.mxu0 }
 0x105   : > { %3637 = vrot.lane.b32.xlu0 %v3636_v28, %s4042_s25  ;;  %3627 = vrot.lane.b32.xlu1 %v3626_v29, %s4042_s25  ;;  %646 = vst.msk [vmem:[#allocation2 + $0x129] sm:$0xff] %vm566_vm2, %v557_v30  ;;  %v556_v34 = vmax.f32 %v485_v32, 0.0  ;;  %v859_v28 = vld [vmem:[#allocation2 + $0xb0] sm:$0xff]  ;;  %v892_v29 = vld [vmem:[#allocation2 + $0xc1] sm:$0xff] }
 0x106   : > { %v3397_v36 = vpop.f32.mrf.mxu0  ;;  %v3731_v30 = vpack.i.bf16 %v4496_v31, %v859_v28  ;;  %v3756_v32 = vpack.i.bf16 %v858_v21, %v892_v29  ;;  %v3741_v35 = vpack.i.bf16 %v859_v28, %v893_v33  ;;  %v863_v31 = vld [vmem:[#allocation2 + $0xe0] sm:$0xff]  ;;  %v896_v50 = vld [vmem:[#allocation2 + $0xf1] sm:$0xff] }
 0x107   : > { %645 = vst.msk [vmem:[#allocation2 + $0x121] sm:$0xff] %vm566_vm2, %v556_v34  ;;  %v559_v40 = vmax.f32 %v3397_v36, 0.0  ;;  %v861_v34 = vld [vmem:[#allocation2 + $0xc8] sm:$0xff]  ;;  %v865_v54 = vld [vmem:[#allocation2 + $0xf8] sm:$0xff] }
 0x108   : > { %v495_v43 = vpop.f32.mrf.mxu0  ;;  %v3761_v36 = vpack.i.bf16 %v4526_v60, %v861_v34  ;;  %v899_v6 = vld [vmem:[#allocation2 + $0x111] sm:$0xff] }
 0x109   : > { %3642 = vrot.lane.b32.xlu0 %v3641_v38, %s4041_s20  ;;  %3647 = vrot.lane.b32.xlu1 %v3646_v39, %s4040_s28  ;;  %648 = vst.msk [vmem:[#allocation2 + $0x141] sm:$0xff] %vm566_vm2, %v559_v40  ;;  %v558_v44 = vmax.f32 %v495_v43, 0.0  ;;  %v830_v38 = vld [vmem:[#allocation2 + $0xca] sm:$0xff]  ;;  %v894_v39 = vld [vmem:[#allocation2 + $0xd9] sm:$0xff]  ;;  %v3766_v43 = vpack.i.bf16 %v890_v24, %v829_v42  ;;  %v3831_v9 = vpack.i.bf16 %v865_v54, %v899_v6 }
 0x10a   : > { %v3400_v45 = vpop.f32.mrf.mxu0  ;;  %v3746_v40 = vpack.i.bf16 %v891_v17, %v830_v38  ;;  %v3786_v41 = vpack.i.bf16 %v860_v25, %v894_v39  ;;  %v771_v14 = vld [vmem:[#allocation2 + $0x108] sm:$0xff] }
 0x10b   : > { %647 = vst.msk [vmem:[#allocation2 + $0x139] sm:$0xff] %vm566_vm2, %v558_v44  ;;  %v561_v48 = vmax.f32 %v3400_v45, 0.0  ;;  %v3791_v44 = vpack.i.bf16 %v828_v18, %v863_v31  ;;  %v895_v45 = vld [vmem:[#allocation2 + $0xe1] sm:$0xff] }
 0x10c   : > { %v505_v51 = vpop.f32.mrf.mxu0 }
 0x10d   : > { %3652 = vrot.lane.b32.xlu0 %v3651_v46, %s4040_s28  ;;  %3662 = vrot.lane.b32.xlu1 %v3661_v47, %s4041_s20  ;;  %650 = vst.msk [vmem:[#allocation2 + $0x159] sm:$0xff] %vm566_vm2, %v561_v48  ;;  %v560_v52 = vmax.f32 %v505_v51, 0.0  ;;  %v831_v46 = vld [vmem:[#allocation2 + $0xda] sm:$0xff]  ;;  %v3771_v47 = vpack.i.bf16 %v861_v34, %v895_v45 }
 0x10e   : > { %v3403_v37 = vpop.f32.mrf.mxu0  ;;  %v3796_v48 = vpack.i.bf16 %v892_v29, %v831_v46  ;;  %v767_v51 = vld [vmem:[#allocation2 + $0xd8] sm:$0xff]  ;;  %v900_v13 = vld [vmem:[#allocation2 + $0x121] sm:$0xff]  ;;  %v838_v29 = vld [vmem:[#allocation2 + $0x12a] sm:$0xff] }
 0x10f   : > { %649 = vst.msk [vmem:[#allocation2 + $0x151] sm:$0xff] %vm566_vm2, %v560_v52  ;;  %v563_v58 = vmax.f32 %v3403_v37, 0.0  ;;  %v3776_v52 = vpack.i.bf16 %v893_v33, %v832_v49  ;;  %v3816_v53 = vpack.i.bf16 %v767_v51, %v896_v50  ;;  %v3781_v37 = vpack.i.bf16 %v827_v22, %v767_v51  ;;  %v4604_v24 = vld [vmem:[#allocation2 + $0x122] sm:$0xff] }
 0x110   : > { %v515_v61 = vpop.f32.mrf.mxu0  ;;  %v3876_v18 = vpack.i.bf16 %v771_v14, %v900_v13  ;;  %v3841_v22 = vpack.i.bf16 %v831_v46, %v771_v14 }
 0x111   : > { %3667 = vrot.lane.b32.xlu1 %v3666_v55, %s4042_s25  ;;  %3657 = vrot.lane.b32.xlu0 %v3656_v57, %s4042_s25  ;;  %652 = vst.msk [vmem:[#allocation2 + $0x171] sm:$0xff] %vm566_vm2, %v563_v58  ;;  %v562_v62 = vmax.f32 %v515_v61, 0.0  ;;  %v3821_v55 = vpack.i.bf16 %v830_v38, %v865_v54  ;;  %v897_v57 = vld [vmem:[#allocation2 + $0xf9] sm:$0xff] }
 0x112   : > { %v3406_v63 = vpop.f32.mrf.mxu0  ;;  %v4574_v58 = vld [vmem:[#allocation2 + $0xf2] sm:$0xff]  ;;  %v3801_v59 = vpack.i.bf16 %v863_v31, %v897_v57  ;;  %v834_v61 = vld [vmem:[#allocation2 + $0xfa] sm:$0xff] }
 0x113   : > { %651 = vst.msk [vmem:[#allocation2 + $0x169] sm:$0xff] %vm566_vm2, %v562_v62  ;;  %v565_v2 = vmax.f32 %v3406_v63, 0.0  ;;  %v3826_v60 = vpack.i.bf16 %v894_v39, %v4574_v58  ;;  %v898_v62 = vld [vmem:[#allocation2 + $0x109] sm:$0xff]  ;;  %v871_v38 = vld [vmem:[#allocation2 + $0x140] sm:$0xff] }
 0x114   : > { %v525_v4 = vpop.f32.mrf.mxu0  ;;  %v769_v63 = vld [vmem:[#allocation2 + $0xf0] sm:$0xff]  ;;  %v3886_v28 = vpack.i.bf16 %v898_v62, %v4604_v24  ;;  %v4629_v31 = vld [vmem:[#allocation2 + $0x141] sm:$0xff] }
 0x115   : > { %3672 = vrot.lane.b32.xlu1 %v3671_v0, %s4040_s28  ;;  %3682 = vrot.lane.b32.xlu0 %v3681_v1, %s4040_s28  ;;  %654 = vst.msk [vmem:[#allocation2 + $0x189] sm:$0xff] %vm566_vm2, %v565_v2  ;;  %v564_v5 = vmax.f32 %v525_v4, 0.0  ;;  %v3806_v0 = vpack.i.bf16 %v895_v45, %v834_v61  ;;  %v3846_v1 = vpack.i.bf16 %v769_v63, %v898_v62  ;;  %v867_v2 = vld [vmem:[#allocation2 + $0x110] sm:$0xff] }
 0x116   : > { %v3811_v4 = vpack.i.bf16 %v829_v42, %v769_v63  ;;  %v656_v63 = vld [vmem:[#allocation2 + $0x8] sm:$0xff] }
 0x117   : > { %653 = vst.msk [vmem:[#allocation2 + $0x181] sm:$0xff] %vm566_vm2, %v564_v5  ;;  %v3851_v5 = vpack.i.bf16 %v832_v49, %v867_v2  ;;  %v4643_v49 = vld [vmem:[#allocation2 + $0x151] sm:$0xff] }
 0x119   : > { %3677 = vrot.lane.b32.xlu1 %v3676_v7, %s4041_s20  ;;  %3692 = vrot.lane.b32.xlu0 %v3691_v8, %s4042_s25  ;;  %v4585_v7 = vld [vmem:[#allocation2 + $0x10a] sm:$0xff] }
 0x11d   : > { %3687 = vrot.lane.b32.xlu1 %v3686_v10, %s4040_s28  ;;  %3697 = vrot.lane.b32.xlu0 %v3696_v12, %s4041_s20  ;;  %v3856_v10 = vpack.i.bf16 %v896_v50, %v4585_v7  ;;  %v836_v12 = vld [vmem:[#allocation2 + $0x112] sm:$0xff] }
 0x11e   : > { %v3836_v17 = vpack.i.bf16 %v897_v57, %v836_v12  ;;  %v3911_v42 = vpack.i.bf16 %v836_v12, %v871_v38  ;;  %v775_v50 = vld [vmem:[#allocation2 + $0x138] sm:$0xff]  ;;  %v3554_v57 = vunpack.i.l.bf16 %v4583_v3 }
 0x11f   : > { %v3936_v54 = vpack.i.bf16 %v775_v50, %v4643_v49 }
 0x121   : > { %3702 = vrot.lane.b32.xlu0 %v3701_v15, %s4042_s25  ;;  %3707 = vrot.lane.b32.xlu1 %v3706_v16, %s4040_s28 }
 0x125   : > { %3712 = vrot.lane.b32.xlu0 %v3711_v19, %s4041_s20  ;;  %3717 = vrot.lane.b32.xlu1 %v3716_v20, %s4040_s28  ;;  %v869_v19 = vld [vmem:[#allocation2 + $0x128] sm:$0xff] }
 0x126   : > { %v3891_v46 = vpack.i.bf16 %v869_v19, %v4629_v31 }
 0x129   : > { %3722 = vrot.lane.b32.xlu1 %v3721_v56, %s4042_s25  ;;  %3737 = vrot.lane.b32.xlu0 %v3736_v23, %s4040_s28  ;;  %v3881_v56 = vpack.i.bf16 %v834_v61, %v869_v19  ;;  %v901_v23 = vld [vmem:[#allocation2 + $0x129] sm:$0xff]  ;;  %v3901_v61 = vpack.i.bf16 %v4585_v7, %v775_v50 }
 0x12d   : > { %3727 = vrot.lane.b32.xlu1 %v3726_v26, %s4041_s20  ;;  %3752 = vrot.lane.b32.xlu0 %v3751_v27, %s4042_s25  ;;  %v3861_v27 = vpack.i.bf16 %v867_v2, %v901_v23  ;;  %v4669_v2 = vld [vmem:[#allocation2 + $0x15a] sm:$0xff] }
 0x12e   : > { %v3926_v19 = vpack.i.bf16 %v4629_v31, %v4669_v2 }
 0x131   : > { %3732 = vrot.lane.b32.xlu1 %v3731_v30, %s4042_s25  ;;  %3757 = vrot.lane.b32.xlu0 %v3756_v32, %s4041_s20  ;;  %v4613_v30 = vld [vmem:[#allocation2 + $0x139] sm:$0xff] }
 0x132   : > { %v773_v32 = vld [vmem:[#allocation2 + $0x120] sm:$0xff] }
 0x135   : > { %3742 = vrot.lane.b32.xlu1 %v3741_v35, %s4041_s20  ;;  %3762 = vrot.lane.b32.xlu0 %v3761_v36, %s4042_s25  ;;  %v3866_v35 = vpack.i.bf16 %v899_v6, %v838_v29  ;;  %v3906_v36 = vpack.i.bf16 %v773_v32, %v4613_v30  ;;  %v4678_v6 = vld [vmem:[#allocation2 + $0x172] sm:$0xff] }
 0x139   : > { %3747 = vrot.lane.b32.xlu1 %v3746_v40, %s4040_s28  ;;  %3787 = vrot.lane.b32.xlu0 %v3786_v41, %s4041_s20  ;;  %v3871_v41 = vpack.i.bf16 %v4574_v58, %v773_v32  ;;  %v655_v58 = vld [vmem:[#allocation2] sm:$0xff] }
 0x13a   : > { %v1712_v7 = vsel %vm566_vm2, %v655_v58, %v3554_v57 }
 0x13d   : > { %3767 = vrot.lane.b32.xlu1 %v3766_v43, %s4040_s28  ;;  %3792 = vrot.lane.b32.xlu0 %v3791_v44, %s4042_s25  ;;  %v4631_v43 = vld [vmem:[#allocation2 + $0x13a] sm:$0xff] }
 0x141   : > { %3772 = vrot.lane.b32.xlu1 %v3771_v47, %s4041_s20  ;;  %3797 = vrot.lane.b32.xlu0 %v3796_v48, %s4040_s28  ;;  %v3916_v47 = vpack.i.bf16 %v900_v13, %v4631_v43  ;;  %v4641_v48 = vld [vmem:[#allocation2 + $0x142] sm:$0xff] }
 0x145   : > { %3777 = vrot.lane.b32.xlu1 %v3776_v52, %s4040_s28  ;;  %3817 = vrot.lane.b32.xlu0 %v3816_v53, %s4041_s20  ;;  %v3896_v53 = vpack.i.bf16 %v901_v23, %v4641_v48 }
 0x149   : > { %3782 = vrot.lane.b32.xlu1 %v3781_v37, %s4042_s25  ;;  %3822 = vrot.lane.b32.xlu0 %v3821_v55, %s4042_s25  ;;  %v4653_v37 = vld [vmem:[#allocation2 + $0x158] sm:$0xff]  ;;  %v3555_v55 = vunpack.i.h.bf16 %v4583_v3  ;;  %v4674_v3 = vld [vmem:[#allocation2 + $0x150] sm:$0xff] }
 0x14a   : > { %v3941_v62 = vpack.i.bf16 %v838_v29, %v4653_v37  ;;  %v3931_v23 = vpack.i.bf16 %v4604_v24, %v4674_v3 }
 0x14d   : > { %3802 = vrot.lane.b32.xlu1 %v3801_v59, %s4041_s20  ;;  %3827 = vrot.lane.b32.xlu0 %v3826_v60, %s4040_s28 }
 0x151   : > { %3807 = vrot.lane.b32.xlu1 %v3806_v0, %s4040_s28  ;;  %3847 = vrot.lane.b32.xlu0 %v3846_v1, %s4041_s20  ;;  %v4665_v0 = vld [vmem:[#allocation2 + $0x159] sm:$0xff] }
 0x152   : > { %v4667_v1 = vld [vmem:[#allocation2 + $0x152] sm:$0xff] }
 0x155   : > { %3812 = vrot.lane.b32.xlu1 %v3811_v4, %s4042_s25  ;;  %3852 = vrot.lane.b32.xlu0 %v3851_v5, %s4042_s25  ;;  %v4676_v5 = vld [vmem:[#allocation2 + $0x171] sm:$0xff] }
 0x157   : > { %v4589_v8 = vpop.permute.xlu0 %3557 }
 0x159   : > { %3832 = vrot.lane.b32.xlu1 %v3831_v9, %s4041_s20  ;;  %3857 = vrot.lane.b32.xlu0 %v3856_v10, %s4040_s28  ;;  %v4681_v9 = vld [vmem:[#allocation2 + $0x169] sm:$0xff]  ;;  %v1713_v10 = vsel %vm566_vm2, %v656_v63, %v3555_v55 }
 0x15b   : > { %v4594_v15 = vpop.permute.xlu0 %3562  ;;  %v4596_v16 = vpop.permute.xlu1 %3567 }
 0x15c   : > { %v3564_v63 = vunpack.i.l.bf16 %v4594_v15 }
 0x15d   : > { %3837 = vrot.lane.b32.xlu1 %v3836_v17, %s4040_s28  ;;  %3877 = vrot.lane.b32.xlu0 %v3876_v18, %s4041_s20  ;;  %v3921_v17 = vpack.i.bf16 %v871_v38, %v4665_v0  ;;  %v3946_v18 = vpack.i.bf16 %v4613_v30, %v4667_v1  ;;  %v783_v30 = vld [vmem:[#allocation2 + $0x19] sm:$0xff]  ;;  %v4710_v38 = vld [vmem:[#allocation2 + $0x16a] sm:$0xff] }
 0x15f   : > { %v4600_v20 = vpop.permute.xlu0 %3577  ;;  %v4602_v21 = vpop.permute.xlu1 %3572 }
 0x160   : > { %v3575_v12 = vunpack.i.h.bf16 %v4602_v21  ;;  %v3580_v29 = vunpack.i.h.bf16 %v4600_v20  ;;  %v3574_v32 = vunpack.i.l.bf16 %v4602_v21 }
 0x161   : > { %3842 = vrot.lane.b32.xlu1 %v3841_v22, %s4042_s25  ;;  %3882 = vrot.lane.b32.xlu0 %v3881_v56, %s4042_s25  ;;  %v784_v56 = vld [vmem:[#allocation2 + $0x21] sm:$0xff] }
 0x163   : > { %v4608_v25 = vpop.permute.xlu0 %3582  ;;  %v4610_v26 = vpop.permute.xlu1 %3587 }
 0x164   : > { %v3584_v21 = vunpack.i.l.bf16 %v4608_v25 }
 0x165   : > { %3862 = vrot.lane.b32.xlu1 %v3861_v27, %s4041_s20  ;;  %3887 = vrot.lane.b32.xlu0 %v3886_v28, %s4040_s28  ;;  %v3951_v27 = vpack.i.bf16 %v4653_v37, %v4676_v5  ;;  %v3961_v28 = vpack.i.bf16 %v4665_v0, %v4678_v6 }
 0x167   : > { %v4617_v33 = vpop.permute.xlu1 %3597  ;;  %v4619_v34 = vpop.permute.xlu0 %3592 }
 0x168   : > { %v3599_v37 = vunpack.i.l.bf16 %v4617_v33 }
 0x169   : > { %3867 = vrot.lane.b32.xlu1 %v3866_v35, %s4040_s28  ;;  %3907 = vrot.lane.b32.xlu0 %v3906_v36, %s4041_s20  ;;  %v3966_v35 = vpack.i.bf16 %v4674_v3, %v4681_v9  ;;  %v4708_v36 = vld [vmem:[#allocation2 + $0x170] sm:$0xff] }
 0x16b   : > { %v4624_v39 = vpop.permute.xlu1 %3602  ;;  %v4626_v40 = vpop.permute.xlu0 %3607 }
 0x16c   : > { %v3609_v50 = vunpack.i.l.bf16 %v4626_v40 }
 0x16d   : > { %3872 = vrot.lane.b32.xlu1 %v3871_v41, %s4042_s25  ;;  %3912 = vrot.lane.b32.xlu0 %v3911_v42, %s4042_s25  ;;  %v3579_v41 = vunpack.i.l.bf16 %v4600_v20  ;;  %v3585_v42 = vunpack.i.h.bf16 %v4608_v25  ;;  %v1745_v20 = vsel %vm1744_vm4, %v1712_v7, %v3575_v12  ;;  %v3559_v7 = vunpack.i.l.bf16 %v4589_v8 }
 0x16e   : > { %v3565_v12 = vunpack.i.h.bf16 %v4594_v15  ;;  %v1940_v15 = vld [vmem:[%s5920_s2 + $0x110] sm:$0xff] }
 0x16f   : > { %v4635_v44 = vpop.permute.xlu0 %3617  ;;  %v4637_v45 = vpop.permute.xlu1 %3612 }
 0x170   : > { %v3615_v4 = vunpack.i.h.bf16 %v4637_v45 }
 0x171   : > { %3892 = vrot.lane.b32.xlu1 %v3891_v46, %s4041_s20  ;;  %3917 = vrot.lane.b32.xlu0 %v3916_v47, %s4040_s28  ;;  %v4716_v46 = vld [vmem:[#allocation2 + $0x168] sm:$0xff] }
 0x172   : > { %v1811_v24 = vsel %vm566_vm2, %v784_v56, %v3615_v4  ;;  %v4718_v47 = vld [vmem:[#allocation2 + $0x181] sm:$0xff]  ;;  %v3956_v3 = vpack.i.bf16 %v4631_v43, %v4716_v46  ;;  %v790_v56 = vld [vmem:[#allocation2 + $0x69] sm:$0xff] }
 0x173   : > { %v4647_v51 = vpop.permute.xlu0 %3632  ;;  %v4649_v52 = vpop.permute.xlu1 %3622  ;;  %v1843_v25 = vsel %vm1744_vm4, %v1811_v24, %v3584_v21  ;;  %v1817_v21 = vsel %vm566_vm2, %v790_v56, %v3609_v50 }
 0x174   : > { %v3624_v58 = vunpack.i.l.bf16 %v4649_v52 }
 0x175   : > { %3897 = vrot.lane.b32.xlu1 %v3896_v53, %s4040_s28  ;;  %3937 = vrot.lane.b32.xlu0 %v3936_v54, %s4041_s20  ;;  %v3625_v53 = vunpack.i.h.bf16 %v4649_v52  ;;  %v3996_v52 = vpack.i.bf16 %v4716_v46, %v4718_v47  ;;  %v791_v47 = vld [vmem:[#allocation2 + $0x79] sm:$0xff] }
 0x177   : > { %v4659_v59 = vpop.permute.xlu0 %3637  ;;  %v4661_v60 = vpop.permute.xlu1 %3627 }
 0x179   : > { %3902 = vrot.lane.b32.xlu1 %v3901_v61, %s4042_s25  ;;  %3942 = vrot.lane.b32.xlu0 %v3941_v62, %s4042_s25  ;;  %v3971_v61 = vpack.i.bf16 %v4641_v48, %v4708_v36  ;;  %v3976_v62 = vpack.i.bf16 %v4643_v49, %v4710_v38 }
 0x17b   : > { %v4685_v13 = vpop.permute.xlu0 %3642  ;;  %v4687_v14 = vpop.permute.xlu1 %3647 }
 0x17c   : > { %v3649_v22 = vunpack.i.l.bf16 %v4687_v14 }
 0x17d   : > { %3922 = vrot.lane.b32.xlu1 %v3921_v17, %s4041_s20  ;;  %3947 = vrot.lane.b32.xlu0 %v3946_v18, %s4040_s28  ;;  %v1778_v17 = vsel %vm1777_vm5, %v1745_v20, %v3580_v29  ;;  %v1746_v18 = vsel %vm1744_vm4, %v1713_v10, %v3585_v42 }
 0x17e   : > { %v1810_v31 = vsel %vm566_vm2, %v783_v30, %v3649_v22  ;;  %v789_v22 = vld [vmem:[#allocation2 + $0x61] sm:$0xff]  ;;  %v1779_v50 = vsel %vm1777_vm5, %v1746_v18, %v3565_v12  ;;  %v662_v12 = vld [vmem:[#allocation2 + $0x50] sm:$0xff]  ;;  %v657_v18 = vld [vmem:[#allocation2 + $0x18] sm:$0xff] }
 0x17f   : > { %v4722_v54 = vpop.permute.xlu0 %3652  ;;  %v3663_v55 = vpop.permute.xlu1 %3662  ;;  %v1842_v57 = vsel %vm1744_vm4, %v1810_v31, %v3574_v32  ;;  %v1875_v32 = vsel %vm1777_vm5, %v1843_v25, %v3564_v63  ;;  %v1816_v24 = vsel %vm566_vm2, %v789_v22, %v3625_v53  ;;  %v3560_v22 = vunpack.i.h.bf16 %v4589_v8 }
 0x180   : > { %v1874_v4 = vsel %vm1777_vm5, %v1842_v57, %v3579_v41  ;;  %v661_v41 = vld [vmem:[#allocation2 + $0x48] sm:$0xff]  ;;  %v3655_v31 = vunpack.i.h.bf16 %v4722_v54  ;;  %v3665_v57 = vunpack.i.h.bf16 %v3663_v55  ;;  %v3664_v20 = vunpack.i.l.bf16 %v3663_v55 }
 0x181   : > { %3927 = vrot.lane.b32.xlu1 %v3926_v19, %s4040_s28  ;;  %3967 = vrot.lane.b32.xlu0 %v3966_v35, %s4041_s20  ;;  %v3610_v19 = vunpack.i.h.bf16 %v4626_v40  ;;  %v1718_v40 = vsel %vm566_vm2, %v661_v41, %v3624_v58  ;;  %v3644_v58 = vunpack.i.l.bf16 %v4685_v13  ;;  %v3594_v41 = vunpack.i.l.bf16 %v4619_v34 }
 0x182   : > { %2102 = vmatprep.mubr.f32.mxu0 %v1874_v4 }
 0x183   : > { %2103 = vmatmul.mubr.f32.vlgmr.msra.gmra.mxu0 %v1778_v17  ;;  %v3668_v30 = vpop.permute.xlu1 %3667  ;;  %v3658_v35 = vpop.permute.xlu0 %3657 }
 0x184   : > { %2107 = vmatprep.mubr.f32.mxu0 %v1875_v32  ;;  %v3669_v10 = vunpack.i.l.bf16 %v3668_v30  ;;  %v3660_v29 = vunpack.i.h.bf16 %v3658_v35  ;;  %v3659_v42 = vunpack.i.l.bf16 %v3658_v35  ;;  %3408 = vmatpush3.msra.mxu0 %v4549_v11  ;;  %v3670_v53 = vunpack.i.h.bf16 %v3668_v30  ;;  %v786_v35 = vld [vmem:[#allocation2 + $0x39] sm:$0xff] }
 0x185   : > { %3932 = vrot.lane.b32.xlu1 %v3931_v23, %s4042_s25  ;;  %3972 = vrot.lane.b32.xlu0 %v3971_v61, %s4042_s25  ;;  %v3595_v11 = vunpack.i.h.bf16 %v4619_v34  ;;  %v1719_v32 = vsel %vm566_vm2, %v662_v12, %v3610_v19  ;;  %v1714_v30 = vsel %vm566_vm2, %v657_v18, %v3559_v7  ;;  %v1813_v7 = vsel %vm566_vm2, %v786_v35, %v3655_v31 }
 0x186   : > { %v1848_v25 = vsel %vm1744_vm4, %v1816_v24, %v3659_v42  ;;  %v1751_v63 = vsel %vm1744_vm4, %v1718_v40, %v3660_v29  ;;  %v1849_v4 = vsel %vm1744_vm4, %v1817_v21, %v3669_v10  ;;  %3409 = vmatprep.subr.mxu0 %v1940_v15  ;;  %v1939_v24 = vld [vmem:[%s5920_s2 + $0x108] sm:$0xff]  ;;  %v785_v21 = vld [vmem:[#allocation2 + $0x31] sm:$0xff]  ;;  %v1752_v19 = vsel %vm1744_vm4, %v1719_v32, %v3670_v53  ;;  %v876_v32 = vld [vmem:[#allocation2 + $0x180] sm:$0xff] }
 0x187   : > { %2108 = vmatmul.mubr.f32.gmra.mxu0 %v1779_v50  ;;  %v4762_v55 = vpop.permute.xlu1 %3672  ;;  %v4764_v17 = vpop.permute.xlu0 %3682  ;;  %v1880_v23 = vsel %vm1777_vm5, %v1848_v25, %v3664_v20  ;;  %v1784_v61 = vsel %vm1777_vm5, %v1751_v63, %v3665_v57  ;;  %v1881_v8 = vsel %vm1777_vm5, %v1849_v4, %v3644_v58  ;;  %v3604_v10 = vunpack.i.l.bf16 %v4624_v39  ;;  %v658_v4 = vld [vmem:[#allocation2 + $0x20] sm:$0xff] }
 0x188   : > { %v3684_v56 = vunpack.i.l.bf16 %v4764_v17  ;;  %2132 = vmatprep.mubr.f32.mxu1 %v1880_v23  ;;  %3410 = vmatpush3.msra.mxu0 %v1940_v15  ;;  %v3600_v15 = vunpack.i.h.bf16 %v4617_v33  ;;  %v3645_v29 = vunpack.i.h.bf16 %v4685_v13  ;;  %v1747_v57 = vsel %vm1744_vm4, %v1714_v30, %v3595_v11  ;;  %v4797_v13 = vld [vmem:[#allocation2 + $0x188] sm:$0xff] }
 0x189   : > { %2133 = vmatmul.mubr.f32.vlgmr.msra.gmra.mxu1 %v1784_v61  ;;  %3952 = vrot.lane.b32.xlu1 %v3951_v27, %s4041_s20  ;;  %v3605_v27 = vunpack.i.h.bf16 %v4624_v39  ;;  %v3675_v49 = vunpack.i.h.bf16 %v4762_v55  ;;  %v1845_v33 = vsel %vm1744_vm4, %v1813_v7, %v3604_v10  ;;  %v1938_v39 = vld [vmem:[%s5920_s2 + $0x100] sm:$0xff]  ;;  %v3589_v53 = vunpack.i.l.bf16 %v4610_v26 }
 0x18a   : > { %3977 = vrot.lane.b32.xlu0 %v3976_v62, %s4040_s28  ;;  %2137 = vmatprep.mubr.f32.mxu1 %v1881_v8  ;;  %v1812_v34 = vsel %vm566_vm2, %v785_v21, %v3684_v56  ;;  %v3674_v62 = vunpack.i.l.bf16 %v4762_v55  ;;  %v1785_v20 = vsel %vm1777_vm5, %v1752_v19, %v3645_v29  ;;  %v1780_v11 = vsel %vm1777_vm5, %v1747_v57, %v3600_v15  ;;  %v792_v29 = vld [vmem:[#allocation2 + $0x81] sm:$0xff] }
 0x18b   : > { %v4793_v42 = vpop.permute.xlu1 %3677  ;;  %v3693_v40 = vpop.permute.xlu0 %3692  ;;  %v1844_v31 = vsel %vm1744_vm4, %v1812_v34, %v3594_v41  ;;  %3411 = vmatprep.subr.mxu0 %v1939_v24  ;;  %v4001_v58 = vpack.i.bf16 %v4669_v2, %v4797_v13  ;;  %v1715_v55 = vsel %vm566_vm2, %v658_v4, %v3560_v22  ;;  %v3590_v23 = vunpack.i.h.bf16 %v4610_v26 }
 0x18c   : > { %3412 = vmatpush3.msra.mxu0 %v1939_v24  ;;  %v3695_v50 = vunpack.i.h.bf16 %v3693_v40  ;;  %v3694_v25 = vunpack.i.l.bf16 %v3693_v40  ;;  %v1876_v63 = vsel %vm1777_vm5, %v1844_v31, %v3599_v37  ;;  %v3614_v61 = vunpack.i.l.bf16 %v4637_v45  ;;  %v4835_v24 = vld [vmem:[#allocation2 + $0x182] sm:$0xff] }
 0x18d   : > { %2138 = vmatmul.mubr.f32.gmra.mxu1 %v1785_v20  ;;  %3957 = vrot.lane.b32.xlu1 %v3956_v3, %s4042_s25  ;;  %v1877_v43 = vsel %vm1777_vm5, %v1845_v33, %v3589_v53  ;;  %v1748_v46 = vsel %vm1744_vm4, %v1715_v55, %v3605_v27  ;;  %v1818_v22 = vsel %vm566_vm2, %v791_v47, %v3674_v62  ;;  %v3650_v45 = vunpack.i.h.bf16 %v4687_v14  ;;  %v909_v37 = vld [vmem:[#allocation2 + $0x189] sm:$0xff]  ;;  %v878_v33 = vld [vmem:[#allocation2 + $0x198] sm:$0xff] }
 0x18e   : > { %2112 = vmatprep.mubr.f32.mxu0 %v1876_v63  ;;  %3997 = vrot.lane.b32.xlu0 %v3996_v52, %s4041_s20  ;;  %v663_v52 = vld [vmem:[#allocation2 + $0x60] sm:$0xff]  ;;  %v1850_v30 = vsel %vm1744_vm4, %v1818_v22, %v3694_v25  ;;  %v1781_v41 = vsel %vm1777_vm5, %v1748_v46, %v3590_v23  ;;  %v3981_v0 = vpack.i.bf16 %v4667_v1, %v876_v32  ;;  %v3680_v27 = vunpack.i.h.bf16 %v4793_v42  ;;  %v788_v55 = vld [vmem:[#allocation2 + $0x51] sm:$0xff] }
 0x18f   : > { %2113 = vmatmul.mubr.f32.gmra.mxu0 %v1780_v11  ;;  %v4823_v3 = vpop.permute.xlu1 %3687  ;;  %v3698_v12 = vpop.permute.xlu0 %3697  ;;  %3413 = vmatprep.subr.mxu0 %v1938_v39  ;;  %v1720_v26 = vsel %vm566_vm2, %v663_v52, %v3675_v49  ;;  %v4006_v10 = vpack.i.bf16 %v4681_v9, %v4835_v24  ;;  %v3679_v40 = vunpack.i.l.bf16 %v4793_v42  ;;  %v1819_v57 = vsel %vm566_vm2, %v792_v29, %v3650_v45  ;;  %v910_v49 = vld [vmem:[#allocation2 + $0x199] sm:$0xff]  ;;  %v659_v46 = vld [vmem:[#allocation2 + $0x30] sm:$0xff] }
 0x190   : > { %2117 = vmatprep.mubr.f32.mxu0 %v1877_v43  ;;  %v3700_v18 = vunpack.i.h.bf16 %v3698_v12  ;;  %v3699_v56 = vunpack.i.l.bf16 %v3698_v12  ;;  %3414 = vmatpush3.msra.mxu0 %v1938_v39  ;;  %v1753_v35 = vsel %vm1744_vm4, %v1720_v26, %v3695_v50  ;;  %v3690_v31 = vunpack.i.h.bf16 %v4823_v3  ;;  %v879_v39 = vld [vmem:[#allocation2 + $0x1a0] sm:$0xff] }
 0x191   : > { %3962 = vrot.lane.b32.xlu1 %v3961_v28, %s4040_s28  ;;  %v664_v28 = vld [vmem:[#allocation2 + $0x68] sm:$0xff]  ;;  %v3569_v62 = vunpack.i.l.bf16 %v4596_v16  ;;  %v3630_v53 = vunpack.i.h.bf16 %v4661_v60  ;;  %v3986_v4 = vpack.i.bf16 %v4708_v36, %v909_v37  ;;  %v3629_v23 = vunpack.i.l.bf16 %v4661_v60 }
 0x192   : > { %4002 = vrot.lane.b32.xlu0 %v4001_v58, %s4042_s25  ;;  %v1882_v8 = vsel %vm1777_vm5, %v1850_v30, %v3699_v56  ;;  %v1786_v21 = vsel %vm1777_vm5, %v1753_v35, %v3700_v18  ;;  %v1721_v34 = vsel %vm566_vm2, %v664_v28, %v3614_v61  ;;  %v4011_v58 = vpack.i.bf16 %v876_v32, %v910_v49  ;;  %v787_v61 = vld [vmem:[#allocation2 + $0x49] sm:$0xff] }
 0x193   : > { %2118 = vmatmul.mubr.f32.gmra.mxu0 %v1781_v41  ;;  %v3703_v14 = vpop.permute.xlu0 %3702  ;;  %2142 = vmatprep.mubr.f32.mxu1 %v1882_v8  ;;  %v4841_v19 = vpop.permute.xlu1 %3707  ;;  %v3991_v43 = vpack.i.bf16 %v4710_v38, %v878_v33  ;;  %v4021_v12 = vpack.i.bf16 %v4678_v6, %v879_v39  ;;  %v1815_v47 = vsel %vm566_vm2, %v788_v55, %v3690_v31  ;;  %v3570_v36 = vunpack.i.h.bf16 %v4596_v16  ;;  %v4881_v16 = vld [vmem:[#allocation2 + $0x18a] sm:$0xff] }
 0x194   : > { %v3705_v7 = vunpack.i.h.bf16 %v3703_v14  ;;  %v3704_v15 = vunpack.i.l.bf16 %v3703_v14  ;;  %2143 = vmatmul.mubr.f32.gmra.mxu1 %v1786_v21  ;;  %v3639_v52 = vunpack.i.l.bf16 %v4659_v59  ;;  %v1716_v60 = vsel %vm566_vm2, %v659_v46, %v3569_v62  ;;  %v793_v31 = vld [vmem:[#allocation2 + $0x91] sm:$0xff] }
 0x195   : > { %3982 = vrot.lane.b32.xlu1 %v3981_v0, %s4042_s25  ;;  %v3634_v56 = vunpack.i.l.bf16 %v4647_v51  ;;  %v3640_v22 = vunpack.i.h.bf16 %v4659_v59  ;;  %v1749_v30 = vsel %vm1744_vm4, %v1716_v60, %v3630_v53  ;;  %v3635_v35 = vunpack.i.h.bf16 %v4647_v51 }
 0x196   : > { %4007 = vrot.lane.b32.xlu0 %v4006_v10, %s4040_s28  ;;  %v1851_v9 = vsel %vm1744_vm4, %v1819_v57, %v3704_v15  ;;  %v1754_v20 = vsel %vm1744_vm4, %v1721_v34, %v3705_v7  ;;  %v3710_v41 = vunpack.i.h.bf16 %v4841_v19  ;;  %v3709_v8 = vunpack.i.l.bf16 %v4841_v19  ;;  %v660_v7 = vld [vmem:[#allocation2 + $0x38] sm:$0xff] }
 0x197   : > { %v4857_v42 = vpop.permute.xlu0 %3712  ;;  %v4859_v50 = vpop.permute.xlu1 %3717  ;;  %v1883_v25 = vsel %vm1777_vm5, %v1851_v9, %v3679_v40  ;;  %v1787_v63 = vsel %vm1777_vm5, %v1754_v20, %v3680_v27  ;;  %v1847_v21 = vsel %vm1744_vm4, %v1815_v47, %v3639_v52  ;;  %v3619_v14 = vunpack.i.l.bf16 %v4635_v44  ;;  %v665_v57 = vld [vmem:[#allocation2 + $0x78] sm:$0xff] }
 0x198   : > { %v3719_v11 = vunpack.i.l.bf16 %v4859_v50  ;;  %2147 = vmatprep.mubr.f32.mxu1 %v1883_v25  ;;  %v3620_v15 = vunpack.i.h.bf16 %v4635_v44  ;;  %v1782_v51 = vsel %vm1777_vm5, %v1749_v30, %v3635_v35  ;;  %v4016_v19 = vpack.i.bf16 %v4676_v5, %v4881_v16  ;;  %v666_v25 = vld [vmem:[#allocation2 + $0x80] sm:$0xff]  ;;  %v914_v35 = vld [vmem:[#allocation2 + $0x4a] sm:$0xff] }
 0x199   : > { %2148 = vmatmul.mubr.f32.gmra.mxu1 %v1787_v63  ;;  %3987 = vrot.lane.b32.xlu1 %v3986_v4, %s4041_s20  ;;  %v1717_v10 = vsel %vm566_vm2, %v660_v7, %v3570_v36  ;;  %v3654_v29 = vunpack.i.l.bf16 %v4722_v54  ;;  %v3685_v34 = vunpack.i.h.bf16 %v4764_v17  ;;  %v1879_v37 = vsel %vm1777_vm5, %v1847_v21, %v3619_v14  ;;  %v911_v54 = vld [vmem:[#allocation2 + $0x1a1] sm:$0xff]  ;;  %v912_v4 = vld [vmem:[#allocation2 + $0x32] sm:$0xff] }
 0x19a   : > { %4012 = vrot.lane.b32.xlu0 %v4011_v58, %s4041_s20  ;;  %v1814_v18 = vsel %vm566_vm2, %v787_v61, %v3719_v11  ;;  %v1750_v44 = vsel %vm1744_vm4, %v1717_v10, %v3640_v22  ;;  %v1820_v5 = vsel %vm566_vm2, %v793_v31, %v3709_v8  ;;  %v1722_v9 = vsel %vm566_vm2, %v665_v57, %v3710_v41  ;;  %v668_v31 = vld [vmem:[#allocation2 + $0x98] sm:$0xff] }
 0x19b   : > { %v3723_v26 = vpop.permute.xlu1 %3722  ;;  %v4877_v32 = vpop.permute.xlu0 %3737  ;;  %v1846_v45 = vsel %vm1744_vm4, %v1814_v18, %v3629_v23  ;;  %v1783_v33 = vsel %vm1777_vm5, %v1750_v44, %v3620_v15  ;;  %v4026_v55 = vpack.i.bf16 %v4797_v13, %v911_v54  ;;  %v794_v23 = vld [vmem:[#allocation2 + $0x99] sm:$0xff]  ;;  %v1723_v61 = vsel %vm566_vm2, %v666_v25, %v3654_v29  ;;  %v917_v54 = vld [vmem:[#allocation2 + $0x6a] sm:$0xff] }
 0x19c   : > { %v3725_v59 = vunpack.i.h.bf16 %v3723_v26  ;;  %v3724_v0 = vunpack.i.l.bf16 %v3723_v26  ;;  %v1878_v28 = vsel %vm1777_vm5, %v1846_v45, %v3634_v56  ;;  %v3739_v63 = vunpack.i.l.bf16 %v4877_v32  ;;  %v913_v56 = vld [vmem:[#allocation2 + $0x3a] sm:$0xff]  ;;  %v795_v45 = vld [vmem:[#allocation2 + $0xa9] sm:$0xff]  ;;  %v915_v29 = vld [vmem:[#allocation2 + $0x52] sm:$0xff] }
 0x19d   : > { %3992 = vrot.lane.b32.xlu1 %v3991_v43, %s4042_s25  ;;  %2122 = vmatprep.mubr.f32.mxu0 %v1878_v28  ;;  %v1821_v47 = vsel %vm566_vm2, %v794_v23, %v3685_v34  ;;  %v3715_v36 = vunpack.i.h.bf16 %v4857_v42  ;;  %v3714_v52 = vunpack.i.l.bf16 %v4857_v42  ;;  %v3720_v18 = vunpack.i.h.bf16 %v4859_v50  ;;  %v796_v28 = vld [vmem:[#allocation2 + $0xb1] sm:$0xff] }
 0x19e   : > { %4022 = vrot.lane.b32.xlu0 %v4021_v12, %s4042_s25  ;;  %2123 = vmatmul.mubr.f32.gmra.mxu0 %v1782_v51  ;;  %v1852_v17 = vsel %vm1744_vm4, %v1820_v5, %v3724_v0  ;;  %v1755_v20 = vsel %vm1744_vm4, %v1722_v9, %v3725_v59  ;;  %v3740_v13 = vunpack.i.h.bf16 %v4877_v32  ;;  %v1822_v21 = vsel %vm566_vm2, %v795_v45, %v3739_v63  ;;  %v920_v25 = vld [vmem:[#allocation2 + $0x92] sm:$0xff] }
 0x19f   : > { %v3728_v27 = vpop.permute.xlu1 %3727  ;;  %v4899_v40 = vpop.permute.xlu0 %3752  ;;  %2127 = vmatprep.mubr.f32.mxu0 %v1879_v37  ;;  %v3689_v32 = vunpack.i.l.bf16 %v4823_v3  ;;  %v1823_v10 = vsel %vm566_vm2, %v796_v28, %v3720_v18  ;;  %v916_v37 = vld [vmem:[#allocation2 + $0x62] sm:$0xff] }
 0x1a0   : > { %v3730_v49 = vunpack.i.h.bf16 %v3728_v27  ;;  %v3729_v62 = vunpack.i.l.bf16 %v3728_v27  ;;  %v3754_v43 = vunpack.i.l.bf16 %v4899_v40  ;;  %v3755_v30 = vunpack.i.h.bf16 %v4899_v40 }
 0x1a1   : > { %4017 = vrot.lane.b32.xlu1 %v4016_v19, %s4040_s28  ;;  %v667_v19 = vld [vmem:[#allocation2 + $0x90] sm:$0xff] }
 0x1a2   : > { %v1884_v39 = vsel %vm1777_vm5, %v1852_v17, %v3729_v62  ;;  %v1788_v53 = vsel %vm1777_vm5, %v1755_v20, %v3730_v49  ;;  %2128 = vmatmul.mubr.f32.gmra.mxu0 %v1783_v33  ;;  %v1854_v0 = vsel %vm1744_vm4, %v1822_v21, %v3754_v43  ;;  %v1724_v3 = vsel %vm566_vm2, %v667_v19, %v3740_v13  ;;  %v918_v17 = vld [vmem:[#allocation2 + $0x7a] sm:$0xff] }
 0x1a3   : > { %v3733_v11 = vpop.permute.xlu1 %3732  ;;  %2152 = vmatprep.mubr.f32.mxu1 %v1884_v39  ;;  %v3758_v58 = vpop.permute.xlu0 %3757  ;;  %3415 = vmatprep.mubr.msk.f32.mxu0 %vm566_vm2, %v912_v4  ;;  %v1757_v44 = vsel %vm1744_vm4, %v1724_v3, %v3755_v30  ;;  %v1725_v62 = vsel %vm566_vm2, %v668_v31, %v3689_v32  ;;  %v798_v32 = vld [vmem:[#allocation2 + $0xc9] sm:$0xff] }
 0x1a4   : > { %v3735_v12 = vunpack.i.h.bf16 %v3733_v11  ;;  %v3734_v46 = vunpack.i.l.bf16 %v3733_v11  ;;  %2153 = vmatmul.mubr.f32.gmra.mxu1 %v1788_v53  ;;  %v3759_v60 = vunpack.i.l.bf16 %v3758_v58  ;;  %v3760_v14 = vunpack.i.h.bf16 %v3758_v58  ;;  %v919_v53 = vld [vmem:[#allocation2 + $0x82] sm:$0xff]  ;;  %v921_v11 = vld [vmem:[#allocation2 + $0x9a] sm:$0xff]  ;;  %v922_v58 = vld [vmem:[#allocation2 + $0xaa] sm:$0xff] }
 0x1a5   : > { %4027 = vrot.lane.b32.xlu1 %v4026_v55, %s4041_s20  ;;  %v670_v3 = vld [vmem:[#allocation2 + $0xb0] sm:$0xff] }
 0x1a6   : > { %v1853_v22 = vsel %vm1744_vm4, %v1821_v47, %v3734_v46  ;;  %v1756_v26 = vsel %vm1744_vm4, %v1723_v61, %v3735_v12  ;;  %3416 = vmatmul.mubr.msk.f32.vlgmr.msra.gmra.mxu0 %vm566_vm2, %v913_v56  ;;  %v1886_v51 = vsel %vm1777_vm5, %v1854_v0, %v3759_v60  ;;  %v1790_v49 = vsel %vm1777_vm5, %v1757_v44, %v3760_v14  ;;  %v923_v12 = vld [vmem:[#allocation2 + $0xb2] sm:$0xff]  ;;  %v924_v47 = vld [vmem:[#allocation2 + $0xc2] sm:$0xff] }
 0x1a7   : > { %v3743_v41 = vpop.permute.xlu1 %3742  ;;  %v3763_v42 = vpop.permute.xlu0 %3762  ;;  %v1885_v50 = vsel %vm1777_vm5, %v1853_v22, %v3714_v52  ;;  %v1789_v8 = vsel %vm1777_vm5, %v1756_v26, %v3715_v36  ;;  %3418 = vmatprep.mubr.msk.f32.mxu0 %vm566_vm2, %v914_v35  ;;  %v797_v22 = vld [vmem:[#allocation2 + $0xc1] sm:$0xff] }
 0x1a8   : > { %v3764_v59 = vunpack.i.l.bf16 %v3763_v42  ;;  %2157 = vmatprep.mubr.f32.mxu1 %v1885_v50  ;;  %v3744_v7 = vunpack.i.l.bf16 %v3743_v41  ;;  %v3765_v15 = vunpack.i.h.bf16 %v3763_v42  ;;  %v3745_v57 = vunpack.i.h.bf16 %v3743_v41  ;;  %v669_v26 = vld [vmem:[#allocation2 + $0xa8] sm:$0xff] }
 0x1a9   : > { %2158 = vmatmul.mubr.f32.gmra.mxu1 %v1789_v8  ;;  %v925_v50 = vld [vmem:[#allocation2 + $0xca] sm:$0xff] }
 0x1aa   : > { %2162 = vmatprep.mubr.f32.mxu1 %v1886_v51  ;;  %v1855_v34 = vsel %vm1744_vm4, %v1823_v10, %v3764_v59  ;;  %3419 = vmatmul.mubr.msk.f32.gmra.mxu0 %vm566_vm2, %v915_v29  ;;  %v1758_v9 = vsel %vm1744_vm4, %v1725_v62, %v3765_v15  ;;  %v926_v59 = vld [vmem:[#allocation2 + $0xda] sm:$0xff] }
 0x1ab   : > { %v4936_v27 = vpop.permute.xlu1 %3747  ;;  %v4938_v40 = vpop.permute.xlu0 %3787  ;;  %3421 = vmatprep.mubr.msk.f32.mxu0 %vm566_vm2, %v916_v37  ;;  %v1887_v5 = vsel %vm1777_vm5, %v1855_v34, %v3744_v7  ;;  %v1791_v39 = vsel %vm1777_vm5, %v1758_v9, %v3745_v57  ;;  %v927_v34 = vld [vmem:[#allocation2 + $0xe2] sm:$0xff] }
 0x1ac   : > { %v3749_v46 = vunpack.i.l.bf16 %v4936_v27  ;;  %v3790_v18 = vunpack.i.h.bf16 %v4938_v40  ;;  %v3789_v45 = vunpack.i.l.bf16 %v4938_v40  ;;  %v3750_v42 = vunpack.i.h.bf16 %v4936_v27  ;;  %v928_v40 = vld [vmem:[#allocation2 + $0xf2] sm:$0xff] }
 0x1ad   : > { %2163 = vmatmul.mubr.f32.gmra.mxu1 %v1790_v49 }
 0x1ae   : > { %2167 = vmatprep.mubr.f32.mxu1 %v1887_v5  ;;  %3422 = vmatmul.mubr.msk.f32.gmra.mxu0 %vm566_vm2, %v917_v54  ;;  %v1825_v51 = vsel %vm566_vm2, %v798_v32, %v3749_v46  ;;  %v1727_v37 = vsel %vm566_vm2, %v670_v3, %v3750_v42  ;;  %v929_v5 = vld [vmem:[#allocation2 + $0xfa] sm:$0xff]  ;;  %v931_v46 = vld [vmem:[#allocation2 + $0x112] sm:$0xff] }
 0x1af   : > { %v3768_v20 = vpop.permute.xlu1 %3767  ;;  %v4947_v33 = vpop.permute.xlu0 %3792  ;;  %3424 = vmatprep.mubr.msk.f32.mxu0 %vm566_vm2, %v918_v17  ;;  %v930_v17 = vld [vmem:[#allocation2 + $0x10a] sm:$0xff] }
 0x1b0   : > { %v3770_v61 = vunpack.i.h.bf16 %v3768_v20  ;;  %v3769_v43 = vunpack.i.l.bf16 %v3768_v20  ;;  %v3794_v60 = vunpack.i.l.bf16 %v4947_v33  ;;  %v3795_v14 = vunpack.i.h.bf16 %v4947_v33  ;;  %v799_v33 = vld [vmem:[#allocation2 + $0xd9] sm:$0xff] }
 0x1b1   : > { %2168 = vmatmul.mubr.f32.gmra.mxu1 %v1791_v39 }
 0x1b2   : > { %3425 = vmatmul.mubr.msk.f32.gmra.mxu0 %vm566_vm2, %v919_v53  ;;  %v1824_v35 = vsel %vm566_vm2, %v797_v22, %v3769_v43  ;;  %v1726_v41 = vsel %vm566_vm2, %v669_v26, %v3770_v61  ;;  %v1857_v10 = vsel %vm1744_vm4, %v1825_v51, %v3794_v60  ;;  %v1760_v31 = vsel %vm1744_vm4, %v1727_v37, %v3795_v14 }
 0x1b3   : > { %v3773_v63 = vpop.permute.xlu1 %3772  ;;  %v4952_v4 = vpop.permute.xlu0 %3797  ;;  %3427 = vmatprep.mubr.msk.f32.mxu0 %vm566_vm2, %v920_v25 }
 0x1b4   : > { %v3774_v30 = vunpack.i.l.bf16 %v3773_v63  ;;  %v3775_v19 = vunpack.i.h.bf16 %v3773_v63  ;;  %v3799_v57 = vunpack.i.l.bf16 %v4952_v4  ;;  %v3800_v62 = vunpack.i.h.bf16 %v4952_v4  ;;  %v671_v4 = vld [vmem:[#allocation2 + $0xc0] sm:$0xff] }
 0x1b6   : > { %3428 = vmatmul.mubr.msk.f32.gmra.mxu0 %vm566_vm2, %v921_v11  ;;  %v1889_v29 = vsel %vm1777_vm5, %v1857_v10, %v3774_v30  ;;  %v1793_v49 = vsel %vm1777_vm5, %v1760_v31, %v3775_v19  ;;  %v1826_v63 = vsel %vm566_vm2, %v799_v33, %v3799_v57  ;;  %v1728_v43 = vsel %vm566_vm2, %v671_v4, %v3800_v62  ;;  %v801_v19 = vld [vmem:[#allocation2 + $0xf1] sm:$0xff] }
 0x1b7   : > { %v4956_v55 = vpop.permute.xlu1 %3777  ;;  %v4958_v23 = vpop.permute.xlu0 %3817  ;;  %3430 = vmatprep.mubr.msk.f32.mxu0 %vm566_vm2, %v922_v58 }
 0x1b8   : > { %v3779_v9 = vunpack.i.l.bf16 %v4956_v55  ;;  %v3820_v11 = vunpack.i.h.bf16 %v4958_v23  ;;  %v3819_v58 = vunpack.i.l.bf16 %v4958_v23  ;;  %v932_v23 = vld [vmem:[#allocation2 + $0x122] sm:$0xff] }
 0x1ba   : > { %3431 = vmatmul.mubr.msk.f32.gmra.mxu0 %vm566_vm2, %v923_v12  ;;  %v3780_v12 = vunpack.i.h.bf16 %v4956_v55 }
 0x1bb   : > { %v3783_v36 = vpop.permute.xlu1 %3782  ;;  %v4963_v52 = vpop.permute.xlu0 %3822  ;;  %3433 = vmatprep.mubr.msk.f32.mxu0 %vm566_vm2, %v924_v47 }
 0x1bc   : > { %v3785_v13 = vunpack.i.h.bf16 %v3783_v36  ;;  %v3784_v56 = vunpack.i.l.bf16 %v3783_v36  ;;  %v3824_v39 = vunpack.i.l.bf16 %v4963_v52  ;;  %v3825_v60 = vunpack.i.h.bf16 %v4963_v52 }
 0x1be   : > { %v1856_v8 = vsel %vm1744_vm4, %v1824_v35, %v3784_v56  ;;  %v1759_v21 = vsel %vm1744_vm4, %v1726_v41, %v3785_v13  ;;  %3434 = vmatmul.mubr.msk.f32.gmra.mxu0 %vm566_vm2, %v925_v50  ;;  %v672_v35 = vld [vmem:[#allocation2 + $0xc8] sm:$0xff] }
 0x1bf   : > { %v4976_v0 = vpop.permute.xlu1 %3802  ;;  %v4978_v28 = vpop.permute.xlu0 %3827  ;;  %v1888_v7 = vsel %vm1777_vm5, %v1856_v8, %v3789_v45  ;;  %v1792_v15 = vsel %vm1777_vm5, %v1759_v21, %v3790_v18  ;;  %3436 = vmatprep.mubr.msk.f32.mxu0 %vm566_vm2, %v926_v59  ;;  %v800_v18 = vld [vmem:[#allocation2 + $0xe1] sm:$0xff]  ;;  %v933_v41 = vld [vmem:[#allocation2 + $0x12a] sm:$0xff]  ;;  %v1729_v42 = vsel %vm566_vm2, %v672_v35, %v3780_v12 }
 0x1c0   : > { %2172 = vmatprep.mubr.f32.mxu1 %v1888_v7  ;;  %v3804_v61 = vunpack.i.l.bf16 %v4976_v0  ;;  %v1827_v55 = vsel %vm566_vm2, %v800_v18, %v3779_v9  ;;  %v3805_v45 = vunpack.i.h.bf16 %v4976_v0  ;;  %v934_v21 = vld [vmem:[#allocation2 + $0x13a] sm:$0xff]  ;;  %v1762_v32 = vsel %vm1744_vm4, %v1729_v42, %v3825_v60  ;;  %v675_v60 = vld [vmem:[#allocation2 + $0xf0] sm:$0xff] }
 0x1c1   : > { %2173 = vmatmul.mubr.f32.gmra.mxu1 %v1792_v15  ;;  %v1859_v52 = vsel %vm1744_vm4, %v1827_v55, %v3824_v39  ;;  %v3829_v14 = vunpack.i.l.bf16 %v4978_v28  ;;  %v3830_v0 = vunpack.i.h.bf16 %v4978_v28  ;;  %v673_v28 = vld [vmem:[#allocation2 + $0xd8] sm:$0xff]  ;;  %v674_v39 = vld [vmem:[#allocation2 + $0xe0] sm:$0xff] }
 0x1c2   : > { %2177 = vmatprep.mubr.f32.mxu1 %v1889_v29  ;;  %3437 = vmatmul.mubr.msk.f32.gmra.mxu0 %vm566_vm2, %v927_v34  ;;  %v1891_v30 = vsel %vm1777_vm5, %v1859_v52, %v3804_v61  ;;  %v1795_v59 = vsel %vm1777_vm5, %v1762_v32, %v3805_v45  ;;  %v942_v61 = vld [vmem:[#allocation2 + $0x19a] sm:$0xff]  ;;  %v804_v52 = vld [vmem:[#allocation2 + $0x111] sm:$0xff] }
 0x1c3   : > { %v4988_v27 = vpop.permute.xlu1 %3807  ;;  %v4990_v44 = vpop.permute.xlu0 %3847  ;;  %3439 = vmatprep.mubr.msk.f32.mxu0 %vm566_vm2, %v928_v40  ;;  %v1828_v34 = vsel %vm566_vm2, %v801_v19, %v3829_v14  ;;  %v1730_v31 = vsel %vm566_vm2, %v673_v28, %v3830_v0 }
 0x1c4   : > { %v3809_v7 = vunpack.i.l.bf16 %v4988_v27  ;;  %v3850_v37 = vunpack.i.h.bf16 %v4990_v44  ;;  %v3849_v40 = vunpack.i.l.bf16 %v4990_v44  ;;  %v3810_v57 = vunpack.i.h.bf16 %v4988_v27 }
 0x1c5   : > { %2178 = vmatmul.mubr.f32.gmra.mxu1 %v1793_v49 }
 0x1c6   : > { %3440 = vmatmul.mubr.msk.f32.gmra.mxu0 %vm566_vm2, %v929_v5  ;;  %v802_v5 = vld [vmem:[#allocation2 + $0xf9] sm:$0xff] }
 0x1c7   : > { %v3813_v54 = vpop.permute.xlu1 %3812  ;;  %v4999_v20 = vpop.permute.xlu0 %3852  ;;  %3442 = vmatprep.mubr.msk.f32.mxu0 %vm566_vm2, %v930_v17  ;;  %v1829_v27 = vsel %vm566_vm2, %v802_v5, %v3809_v7 }
 0x1c8   : > { %v3815_v53 = vunpack.i.h.bf16 %v3813_v54  ;;  %v3814_v25 = vunpack.i.l.bf16 %v3813_v54  ;;  %v3854_v10 = vunpack.i.l.bf16 %v4999_v20 }
 0x1ca   : > { %v1858_v47 = vsel %vm1744_vm4, %v1826_v63, %v3814_v25  ;;  %v1761_v36 = vsel %vm1744_vm4, %v1728_v43, %v3815_v53  ;;  %3443 = vmatmul.mubr.msk.f32.gmra.mxu0 %vm566_vm2, %v931_v46  ;;  %v1731_v53 = vsel %vm566_vm2, %v674_v39, %v3810_v57  ;;  %v803_v46 = vld [vmem:[#allocation2 + $0x109] sm:$0xff] }
 0x1cb   : > { %v5013_v13 = vpop.permute.xlu1 %3832  ;;  %v5015_v56 = vpop.permute.xlu0 %3857  ;;  %v1890_v22 = vsel %vm1777_vm5, %v1858_v47, %v3819_v58  ;;  %v1794_v26 = vsel %vm1777_vm5, %v1761_v36, %v3820_v11  ;;  %3445 = vmatprep.mubr.msk.f32.mxu0 %vm566_vm2, %v932_v23 }
 0x1cc   : > { %2182 = vmatprep.mubr.f32.mxu1 %v1890_v22  ;;  %v3835_v33 = vunpack.i.h.bf16 %v5013_v13  ;;  %v3860_v58 = vunpack.i.h.bf16 %v5015_v56 }
 0x1cd   : > { %2183 = vmatmul.mubr.f32.gmra.mxu1 %v1794_v26 }
 0x1ce   : > { %2187 = vmatprep.mubr.f32.mxu1 %v1891_v30  ;;  %3446 = vmatmul.mubr.msk.f32.gmra.mxu0 %vm566_vm2, %v933_v41  ;;  %v1732_v22 = vsel %vm566_vm2, %v675_v60, %v3860_v58 }
 0x1cf   : > { %v5026_v50 = vpop.permute.xlu1 %3837  ;;  %v5028_v8 = vpop.permute.xlu0 %3877  ;;  %3448 = vmatprep.mubr.msk.f32.mxu0 %vm566_vm2, %v934_v21 }
 0x1d0   : > { %v3839_v43 = vunpack.i.l.bf16 %v5026_v50  ;;  %v3879_v23 = vunpack.i.l.bf16 %v5028_v8  ;;  %v3840_v26 = vunpack.i.h.bf16 %v5026_v50 }
 0x1d1   : > { %2188 = vmatmul.mubr.f32.gmra.mxu1 %v1795_v59  ;;  %v676_v59 = vld [vmem:[#allocation2 + $0xf8] sm:$0xff] }
 0x1d2   : > { %3449 = vmatmul.mubr.msk.f32.gmra.mxu0 %vm566_vm2, %v4641_v48  ;;  %v3834_v48 = vunpack.i.l.bf16 %v5013_v13  ;;  %v943_v13 = vld [vmem:[#allocation2 + $0x1a2] sm:$0xff]  ;;  %v1831_v21 = vsel %vm566_vm2, %v804_v52, %v3839_v43  ;;  %v1733_v0 = vsel %vm566_vm2, %v676_v59, %v3840_v26 }
 0x1d3   : > { %v3843_v15 = vpop.permute.xlu1 %3842  ;;  %v5038_v51 = vpop.permute.xlu0 %3882  ;;  %3451 = vmatprep.mubr.msk.f32.mxu0 %vm566_vm2, %v4667_v1  ;;  %v3855_v1 = vunpack.i.h.bf16 %v4999_v20  ;;  %v1861_v20 = vsel %vm1744_vm4, %v1829_v27, %v3854_v10  ;;  %v806_v27 = vld [vmem:[#allocation2 + $0x129] sm:$0xff] }
 0x1d4   : > { %v3845_v29 = vunpack.i.h.bf16 %v3843_v15  ;;  %v3844_v3 = vunpack.i.l.bf16 %v3843_v15  ;;  %v3884_v47 = vunpack.i.l.bf16 %v5038_v51  ;;  %v3885_v30 = vunpack.i.h.bf16 %v5038_v51 }
 0x1d5   : > { %v1764_v4 = vsel %vm1744_vm4, %v1731_v53, %v3855_v1 }
 0x1d6   : > { %v1860_v49 = vsel %vm1744_vm4, %v1828_v34, %v3844_v3  ;;  %v1763_v62 = vsel %vm1744_vm4, %v1730_v31, %v3845_v29  ;;  %3452 = vmatmul.mubr.msk.f32.gmra.mxu0 %vm566_vm2, %v4669_v2  ;;  %v1893_v2 = vsel %vm1777_vm5, %v1861_v20, %v3834_v48  ;;  %v1797_v11 = vsel %vm1777_vm5, %v1764_v4, %v3835_v33 }
 0x1d7   : > { %v5054_v9 = vpop.permute.xlu1 %3862  ;;  %v5056_v54 = vpop.permute.xlu0 %3887  ;;  %v1892_v44 = vsel %vm1777_vm5, %v1860_v49, %v3849_v40  ;;  %v1796_v17 = vsel %vm1777_vm5, %v1763_v62, %v3850_v37  ;;  %3454 = vmatprep.mubr.msk.f32.mxu0 %vm566_vm2, %v4710_v38  ;;  %v3859_v38 = vunpack.i.l.bf16 %v5015_v56  ;;  %v3880_v56 = vunpack.i.h.bf16 %v5028_v8  ;;  %v805_v37 = vld [vmem:[#allocation2 + $0x121] sm:$0xff] }
 0x1d8   : > { %2192 = vmatprep.mubr.f32.mxu1 %v1892_v44  ;;  %v3865_v50 = vunpack.i.h.bf16 %v5054_v9  ;;  %v1863_v32 = vsel %vm1744_vm4, %v1831_v21, %v3884_v47  ;;  %v1766_v51 = vsel %vm1744_vm4, %v1733_v0, %v3885_v30  ;;  %v3889_v19 = vunpack.i.l.bf16 %v5056_v54  ;;  %v677_v49 = vld [vmem:[#allocation2 + $0x108] sm:$0xff] }
 0x1d9   : > { %2193 = vmatmul.mubr.f32.gmra.mxu1 %v1796_v17  ;;  %v3890_v29 = vunpack.i.h.bf16 %v5056_v54 }
 0x1da   : > { %2197 = vmatprep.mubr.f32.mxu1 %v1893_v2  ;;  %3455 = vmatmul.mubr.msk.f32.gmra.mxu0 %vm566_vm2, %v4678_v6  ;;  %v1799_v10 = vsel %vm1777_vm5, %v1766_v51, %v3865_v50  ;;  %v1832_v57 = vsel %vm566_vm2, %v805_v37, %v3889_v19  ;;  %v680_v19 = vld [vmem:[#allocation2 + $0x128] sm:$0xff] }
 0x1db   : > { %v5069_v25 = vpop.permute.xlu1 %3867  ;;  %v5071_v63 = vpop.permute.xlu0 %3907  ;;  %3457 = vmatprep.mubr.msk.f32.mxu0 %vm566_vm2, %v4835_v24  ;;  %v1830_v24 = vsel %vm566_vm2, %v803_v46, %v3859_v38 }
 0x1dc   : > { %v3869_v3 = vunpack.i.l.bf16 %v5069_v25  ;;  %v3910_v62 = vunpack.i.h.bf16 %v5071_v63  ;;  %v3909_v5 = vunpack.i.l.bf16 %v5071_v63  ;;  %v3870_v54 = vunpack.i.h.bf16 %v5069_v25 }
 0x1dd   : > { %2198 = vmatmul.mubr.f32.gmra.mxu1 %v1797_v11  ;;  %v678_v11 = vld [vmem:[#allocation2 + $0x110] sm:$0xff] }
 0x1de   : > { %3458 = vmatmul.mubr.msk.f32.gmra.mxu0 %vm566_vm2, %v4881_v16  ;;  %v3864_v16 = vunpack.i.l.bf16 %v5054_v9  ;;  %v1734_v9 = vsel %vm566_vm2, %v677_v49, %v3890_v29  ;;  %v1833_v63 = vsel %vm566_vm2, %v806_v27, %v3869_v3  ;;  %v1735_v58 = vsel %vm566_vm2, %v678_v11, %v3870_v54 }
 0x1df   : > { %v3873_v6 = vpop.permute.xlu1 %3872  ;;  %v5082_v12 = vpop.permute.xlu0 %3912  ;;  %3460 = vmatprep.mubr.msk.f32.mxu0 %vm566_vm2, %v942_v61 }
 0x1e0   : > { %v3875_v36 = vunpack.i.h.bf16 %v3873_v6  ;;  %v3874_v18 = vunpack.i.l.bf16 %v3873_v6  ;;  %v1895_v14 = vsel %vm1777_vm5, %v1863_v32, %v3864_v16  ;;  %v3914_v40 = vunpack.i.l.bf16 %v5082_v12 }
 0x1e1   : > { %v3915_v33 = vunpack.i.h.bf16 %v5082_v12 }
 0x1e2   : > { %v1862_v55 = vsel %vm1744_vm4, %v1830_v24, %v3874_v18  ;;  %v1765_v45 = vsel %vm1744_vm4, %v1732_v22, %v3875_v36  ;;  %3461 = vmatmul.mubr.msk.f32.gmra.mxu0 %vm566_vm2, %v943_v13  ;;  %v1865_v25 = vsel %vm1744_vm4, %v1833_v63, %v3914_v40  ;;  %v807_v18 = vld [vmem:[#allocation2 + $0x139] sm:$0xff] }
 0x1e3   : > { %v3893_v35 = vpop.permute.xlu1 %3892  ;;  %v5095_v41 = vpop.permute.xlu0 %3917  ;;  %v1894_v42 = vsel %vm1777_vm5, %v1862_v55, %v3879_v23  ;;  %v1798_v8 = vsel %vm1777_vm5, %v1765_v45, %v3880_v56  ;;  %v1768_v12 = vsel %vm1744_vm4, %v1735_v58, %v3915_v33  ;;  %v679_v56 = vld [vmem:[#allocation2 + $0x120] sm:$0xff] }
 0x1e4   : > { %2202 = vmatprep.mubr.f32.mxu1 %v1894_v42  ;;  %v3894_v1 = vunpack.i.l.bf16 %v3893_v35  ;;  %v3895_v4 = vunpack.i.h.bf16 %v3893_v35  ;;  %v3919_v61 = vunpack.i.l.bf16 %v5095_v41  ;;  %v3920_v46 = vunpack.i.h.bf16 %v5095_v41  ;;  %v808_v35 = vld [vmem:[#allocation2 + $0x141] sm:$0xff] }
 0x1e5   : > { %2203 = vmatmul.mubr.f32.gmra.mxu1 %v1798_v8 }
 0x1e6   : > { %2207 = vmatprep.mubr.f32.mxu1 %v1895_v14  ;;  %v1897_v38 = vsel %vm1777_vm5, %v1865_v25, %v3894_v1  ;;  %v1801_v47 = vsel %vm1777_vm5, %v1768_v12, %v3895_v4  ;;  %v1834_v13 = vsel %vm566_vm2, %v807_v18, %v3919_v61  ;;  %v1736_v26 = vsel %vm566_vm2, %v679_v56, %v3920_v46  ;;  %v682_v61 = vld [vmem:[#allocation2 + $0x140] sm:$0xff] }
 0x1e7   : > { %v5105_v7 = vpop.permute.xlu1 %3897  ;;  %v5107_v15 = vpop.permute.xlu0 %3937 }
 0x1e8   : > { %v3899_v36 = vunpack.i.l.bf16 %v5105_v7  ;;  %v3900_v55 = vunpack.i.h.bf16 %v5105_v7  ;;  %v3940_v45 = vunpack.i.h.bf16 %v5107_v15  ;;  %v3939_v52 = vunpack.i.l.bf16 %v5107_v15 }
 0x1e9   : > { %2208 = vmatmul.mubr.f32.gmra.mxu1 %v1799_v10 }
 0x1ea   : > { %v1835_v21 = vsel %vm566_vm2, %v808_v35, %v3899_v36  ;;  %v1737_v29 = vsel %vm566_vm2, %v680_v19, %v3900_v55 }
 0x1eb   : > { %v3903_v34 = vpop.permute.xlu1 %3902  ;;  %v5114_v28 = vpop.permute.xlu0 %3942 }
 0x1ec   : > { %v3905_v48 = vunpack.i.h.bf16 %v3903_v34  ;;  %v3904_v31 = vunpack.i.l.bf16 %v3903_v34  ;;  %v3944_v23 = vunpack.i.l.bf16 %v5114_v28  ;;  %v3945_v41 = vunpack.i.h.bf16 %v5114_v28  ;;  %v809_v34 = vld [vmem:[#allocation2 + $0x151] sm:$0xff] }
 0x1ee   : > { %v1864_v44 = vsel %vm1744_vm4, %v1832_v57, %v3904_v31  ;;  %v1767_v17 = vsel %vm1744_vm4, %v1734_v9, %v3905_v48  ;;  %v1867_v51 = vsel %vm1744_vm4, %v1835_v21, %v3944_v23  ;;  %v1770_v3 = vsel %vm1744_vm4, %v1737_v29, %v3945_v41  ;;  %v681_v31 = vld [vmem:[#allocation2 + $0x138] sm:$0xff] }
 0x1ef   : > { %v3923_v20 = vpop.permute.xlu1 %3922  ;;  %v5125_v2 = vpop.permute.xlu0 %3947  ;;  %v1896_v39 = vsel %vm1777_vm5, %v1864_v44, %v3909_v5  ;;  %v1800_v53 = vsel %vm1777_vm5, %v1767_v17, %v3910_v62 }
 0x1f0   : > { %2212 = vmatprep.mubr.f32.mxu1 %v1896_v39  ;;  %v3924_v30 = vunpack.i.l.bf16 %v3923_v20  ;;  %v3925_v50 = vunpack.i.h.bf16 %v3923_v20  ;;  %v3949_v32 = vunpack.i.l.bf16 %v5125_v2  ;;  %v3950_v7 = vunpack.i.h.bf16 %v5125_v2  ;;  %v810_v2 = vld [vmem:[#allocation2 + $0x159] sm:$0xff] }
 0x1f1   : > { %2213 = vmatmul.mubr.f32.gmra.mxu1 %v1800_v53 }
 0x1f2   : > { %2217 = vmatprep.mubr.f32.mxu1 %v1897_v38  ;;  %v1899_v10 = vsel %vm1777_vm5, %v1867_v51, %v3924_v30  ;;  %v1803_v40 = vsel %vm1777_vm5, %v1770_v3, %v3925_v50  ;;  %v1836_v48 = vsel %vm566_vm2, %v809_v34, %v3949_v32  ;;  %v1738_v1 = vsel %vm566_vm2, %v681_v31, %v3950_v7  ;;  %v812_v30 = vld [vmem:[#allocation2 + $0x171] sm:$0xff]  ;;  %v685_v31 = vld [vmem:[#allocation2 + $0x168] sm:$0xff] }
 0x1f3   : > { %v5134_v43 = vpop.permute.xlu1 %3927  ;;  %v5136_v6 = vpop.permute.xlu0 %3967 }
 0x1f4   : > { %v3929_v28 = vunpack.i.l.bf16 %v5134_v43  ;;  %v3930_v9 = vunpack.i.h.bf16 %v5134_v43  ;;  %v3970_v54 = vunpack.i.h.bf16 %v5136_v6  ;;  %v3969_v44 = vunpack.i.l.bf16 %v5136_v6 }
 0x1f5   : > { %2218 = vmatmul.mubr.f32.gmra.mxu1 %v1801_v47 }
 0x1f6   : > { %v1837_v25 = vsel %vm566_vm2, %v810_v2, %v3929_v28  ;;  %v1739_v12 = vsel %vm566_vm2, %v682_v61, %v3930_v9  ;;  %v814_v2 = vld [vmem:[#allocation2 + $0x189] sm:$0xff] }
 0x1f7   : > { %v3933_v24 = vpop.permute.xlu1 %3932  ;;  %v5142_v60 = vpop.permute.xlu0 %3972 }
 0x1f8   : > { %v3935_v16 = vunpack.i.h.bf16 %v3933_v24  ;;  %v3934_v22 = vunpack.i.l.bf16 %v3933_v24  ;;  %v3974_v57 = vunpack.i.l.bf16 %v5142_v60  ;;  %v3975_v27 = vunpack.i.h.bf16 %v5142_v60  ;;  %v811_v24 = vld [vmem:[#allocation2 + $0x169] sm:$0xff] }
 0x1fa   : > { %v1866_v42 = vsel %vm1744_vm4, %v1834_v13, %v3934_v22  ;;  %v1769_v8 = vsel %vm1744_vm4, %v1736_v26, %v3935_v16  ;;  %v1869_v58 = vsel %vm1744_vm4, %v1837_v25, %v3974_v57  ;;  %v1772_v47 = vsel %vm1744_vm4, %v1739_v12, %v3975_v27  ;;  %v683_v22 = vld [vmem:[#allocation2 + $0x150] sm:$0xff] }
 0x1fb   : > { %v3953_v14 = vpop.permute.xlu1 %3952  ;;  %v1898_v59 = vsel %vm1777_vm5, %v1866_v42, %v3939_v52  ;;  %v1802_v0 = vsel %vm1777_vm5, %v1769_v8, %v3940_v45 }
 0x1fc   : > { %v3978_v15 = vpop.permute.xlu0 %3977  ;;  %2222 = vmatprep.mubr.f32.mxu1 %v1898_v59  ;;  %v3954_v17 = vunpack.i.l.bf16 %v3953_v14  ;;  %v3955_v39 = vunpack.i.h.bf16 %v3953_v14  ;;  %v684_v14 = vld [vmem:[#allocation2 + $0x158] sm:$0xff] }
 0x1fd   : > { %2223 = vmatmul.mubr.f32.gmra.mxu1 %v1802_v0  ;;  %v3979_v38 = vunpack.i.l.bf16 %v3978_v15  ;;  %v3980_v43 = vunpack.i.h.bf16 %v3978_v15 }
 0x1fe   : > { %2227 = vmatprep.mubr.f32.mxu1 %v1899_v10  ;;  %v1901_v6 = vsel %vm1777_vm5, %v1869_v58, %v3954_v17  ;;  %v1805_v18 = vsel %vm1777_vm5, %v1772_v47, %v3955_v39  ;;  %v686_v39 = vld [vmem:[#allocation2 + $0x170] sm:$0xff] }
 0x1ff   : > { %v3958_v37 = vpop.permute.xlu1 %3957  ;;  %v1838_v16 = vsel %vm566_vm2, %v811_v24, %v3979_v38  ;;  %v1740_v52 = vsel %vm566_vm2, %v683_v22, %v3980_v43 }
 0x200   : > { %v3960_v49 = vunpack.i.h.bf16 %v3958_v37  ;;  %v3959_v62 = vunpack.i.l.bf16 %v3958_v37  ;;  %v3998_v5 = vpop.permute.xlu0 %3997 }
 0x201   : > { %2228 = vmatmul.mubr.f32.gmra.mxu1 %v1803_v40  ;;  %v4000_v26 = vunpack.i.h.bf16 %v3998_v5  ;;  %v3999_v55 = vunpack.i.l.bf16 %v3998_v5 }
 0x202   : > { %v1868_v33 = vsel %vm1744_vm4, %v1836_v48, %v3959_v62  ;;  %v1771_v20 = vsel %vm1744_vm4, %v1738_v1, %v3960_v49  ;;  %v813_v48 = vld [vmem:[#allocation2 + $0x181] sm:$0xff] }
 0x203   : > { %v3963_v53 = vpop.permute.xlu1 %3962  ;;  %v1900_v63 = vsel %vm1777_vm5, %v1868_v33, %v3969_v44  ;;  %v1804_v4 = vsel %vm1777_vm5, %v1771_v20, %v3970_v54 }
 0x204   : > { %v4003_v11 = vpop.permute.xlu0 %4002  ;;  %2232 = vmatprep.mubr.f32.mxu1 %v1900_v63  ;;  %v3964_v46 = vunpack.i.l.bf16 %v3963_v53  ;;  %v3965_v60 = vunpack.i.h.bf16 %v3963_v53 }
 0x205   : > { %2233 = vmatmul.mubr.f32.gmra.mxu1 %v1804_v4  ;;  %v4004_v45 = vunpack.i.l.bf16 %v4003_v11  ;;  %v4005_v8 = vunpack.i.h.bf16 %v4003_v11 }
 0x206   : > { %2237 = vmatprep.mubr.f32.mxu1 %v1901_v6  ;;  %v1839_v42 = vsel %vm566_vm2, %v812_v30, %v3964_v46  ;;  %v1741_v7 = vsel %vm566_vm2, %v684_v14, %v3965_v60 }
 0x207   : > { %v3983_v36 = vpop.permute.xlu1 %3982  ;;  %v1871_v19 = vsel %vm1744_vm4, %v1839_v42, %v4004_v45  ;;  %v1774_v34 = vsel %vm1744_vm4, %v1741_v7, %v4005_v8 }
 0x208   : > { %v3985_v13 = vunpack.i.h.bf16 %v3983_v36  ;;  %v3984_v56 = vunpack.i.l.bf16 %v3983_v36  ;;  %v4008_v23 = vpop.permute.xlu0 %4007 }
 0x209   : > { %2238 = vmatmul.mubr.f32.gmra.mxu1 %v1805_v18  ;;  %v4010_v15 = vunpack.i.h.bf16 %v4008_v23  ;;  %v4009_v51 = vunpack.i.l.bf16 %v4008_v23 }
 0x20a   : > { %v1870_v35 = vsel %vm1744_vm4, %v1838_v16, %v3984_v56  ;;  %v1773_v41 = vsel %vm1744_vm4, %v1740_v52, %v3985_v13 }
 0x20b   : > { %v3988_v21 = vpop.permute.xlu1 %3987  ;;  %v1902_v50 = vsel %vm1777_vm5, %v1870_v35, %v3999_v55  ;;  %v1806_v32 = vsel %vm1777_vm5, %v1773_v41, %v4000_v26  ;;  %v1840_v62 = vsel %vm566_vm2, %v813_v48, %v4009_v51  ;;  %v1742_v5 = vsel %vm566_vm2, %v685_v31, %v4010_v15 }
 0x20c   : > { %v3990_v59 = vunpack.i.h.bf16 %v3988_v21  ;;  %v3989_v0 = vunpack.i.l.bf16 %v3988_v21  ;;  %2242 = vmatprep.mubr.f32.mxu1 %v1902_v50  ;;  %v4013_v10 = vpop.permute.xlu0 %4012 }
 0x20d   : > { %2243 = vmatmul.mubr.f32.gmra.mxu1 %v1806_v32  ;;  %v4015_v57 = vunpack.i.h.bf16 %v4013_v10  ;;  %v4014_v49 = vunpack.i.l.bf16 %v4013_v10 }
 0x20e   : > { %v1903_v29 = vsel %vm1777_vm5, %v1871_v19, %v3989_v0  ;;  %v1807_v40 = vsel %vm1777_vm5, %v1774_v34, %v3990_v59 }
 0x20f   : > { %v3993_v3 = vpop.permute.xlu1 %3992  ;;  %2247 = vmatprep.mubr.f32.mxu1 %v1903_v29 }
 0x210   : > { %v3995_v28 = vunpack.i.h.bf16 %v3993_v3  ;;  %v3994_v37 = vunpack.i.l.bf16 %v3993_v3  ;;  %v4023_v27 = vpop.permute.xlu0 %4022 }
 0x211   : > { %2248 = vmatmul.mubr.f32.gmra.mxu1 %v1807_v40  ;;  %v4025_v4 = vunpack.i.h.bf16 %v4023_v27  ;;  %v4024_v25 = vunpack.i.l.bf16 %v4023_v27 }
 0x212   : > { %v1872_v1 = vsel %vm1744_vm4, %v1840_v62, %v3994_v37  ;;  %v1775_v9 = vsel %vm1744_vm4, %v1742_v5, %v3995_v28 }
 0x213   : > { %v4018_v54 = vpop.permute.xlu1 %4017  ;;  %v1904_v44 = vsel %vm1777_vm5, %v1872_v1, %v4014_v49  ;;  %v1808_v17 = vsel %vm1777_vm5, %v1775_v9, %v4015_v57 }
 0x214   : > { %v4020_v33 = vunpack.i.h.bf16 %v4018_v54  ;;  %v4019_v20 = vunpack.i.l.bf16 %v4018_v54  ;;  %2252 = vmatprep.mubr.f32.mxu1 %v1904_v44 }
 0x215   : > { %2253 = vmatmul.mubr.f32.gmra.mxu1 %v1808_v17 }
 0x216   : > { %v1841_v53 = vsel %vm566_vm2, %v814_v2, %v4019_v20  ;;  %v1743_v63 = vsel %vm566_vm2, %v686_v39, %v4020_v33 }
 0x217   : > { %v4028_v38 = vpop.permute.xlu1 %4027  ;;  %v1873_v61 = vsel %vm1744_vm4, %v1841_v53, %v4024_v25  ;;  %v1776_v43 = vsel %vm1744_vm4, %v1743_v63, %v4025_v4 }
 0x218   : > { %v4030_v11 = vunpack.i.h.bf16 %v4028_v38  ;;  %v4029_v58 = vunpack.i.l.bf16 %v4028_v38 }
 0x21a   : > { %v1905_v6 = vsel %vm1777_vm5, %v1873_v61, %v4029_v58  ;;  %v1809_v12 = vsel %vm1777_vm5, %v1776_v43, %v4030_v11 }
 0x21b   : > { %2257 = vmatprep.mubr.f32.mxu1 %v1905_v6 }
 0x21c   : > { %2258 = vmatmul.mubr.f32.gmra.mxu1 %v1809_v12 }
 0x243   : > { %v2104_v46 = vpop.f32.mrf.mxu0 }
 0x245   : > { %v2106_v47 = vpop.f32.mrf.mxu0 }
 0x247   : > { %v2109_v36 = vpop.f32.mrf.mxu0 }
 0x249   : > { %v2111_v18 = vpop.f32.mrf.mxu0  ;;  %v2134_v24 = vpop.f32.mrf.mxu1 }
 0x24b   : > { %v2136_v60 = vpop.f32.mrf.mxu1 }
 0x24d   : > { %v2139_v13 = vpop.f32.mrf.mxu1 }
 0x24f   : > { %v2114_v56 = vpop.f32.mrf.mxu0  ;;  %v2141_v23 = vpop.f32.mrf.mxu1 }
 0x251   : > { %v2116_v16 = vpop.f32.mrf.mxu0 }
 0x253   : > { %v2119_v22 = vpop.f32.mrf.mxu0 }
 0x254   : > { %v2144_v26 = vpop.f32.mrf.mxu1 }
 0x255   : > { %v2121_v55 = vpop.f32.mrf.mxu0 }
 0x256   : > { %v2146_v45 = vpop.f32.mrf.mxu1 }
 0x259   : > { %v2149_v52 = vpop.f32.mrf.mxu1 }
 0x25b   : > { %v2151_v30 = vpop.f32.mrf.mxu1 }
 0x25e   : > { %v2124_v35 = vpop.f32.mrf.mxu0 }
 0x260   : > { %v2126_v41 = vpop.f32.mrf.mxu0 }
 0x262   : > { %v2129_v42 = vpop.f32.mrf.mxu0 }
 0x264   : > { %v2154_v8 = vpop.f32.mrf.mxu1  ;;  %v2131_v21 = vpop.f32.mrf.mxu0 }
 0x266   : > { %v2156_v50 = vpop.f32.mrf.mxu1  ;;  %v3417_v32 = vpop.f32.mrf.mxu0 }
 0x267   : > { %v2335_v4 = vadd.f32 %v3417_v32, %v2109_v36 }
 0x268   : > { %v2329_v14 = vpop.f32.mrf.mxu0 }
 0x269   : > { %v2159_v59 = vpop.f32.mrf.mxu1  ;;  %v2330_v48 = vadd.f32 %v2329_v14, %v2104_v46  ;;  %v5231_v23 = vmax.f32 %v2335_v4, 0.0 }
 0x26a   : > { %v3420_v0 = vpop.f32.mrf.mxu0 }
 0x26b   : > { %v2161_v7 = vpop.f32.mrf.mxu1  ;;  %v2345_v62 = vadd.f32 %v3420_v0, %v2119_v22  ;;  %v5207_v54 = vmax.f32 %v2330_v48, 0.0 }
 0x26c   : > { %v2339_v15 = vpop.f32.mrf.mxu0 }
 0x26d   : > { %v2164_v51 = vpop.f32.mrf.mxu1  ;;  %v2340_v40 = vadd.f32 %v2339_v15, %v2114_v56  ;;  %v5213_v2 = vmax.f32 %v2345_v62, 0.0  ;;  %v2777_v43 = vrot.slane %v5207_v54, 7 }
 0x26e   : > { %v3423_v19 = vpop.f32.mrf.mxu0 }
 0x26f   : > { %v2166_v10 = vpop.f32.mrf.mxu1  ;;  %v5205_v1 = vmax.f32 %v2340_v40, 0.0  ;;  %v2355_v44 = vadd.f32 %v3423_v19, %v2129_v42  ;;  %v2827_v56 = vrot.slane %v5213_v2, 7  ;;  %v2896_v62 = vrot.slane %v5213_v2, 1 }
 0x270   : > { %v2349_v29 = vpop.f32.mrf.mxu0 }
 0x271   : > { %v2169_v3 = vpop.f32.mrf.mxu1  ;;  %v2350_v31 = vadd.f32 %v2349_v29, %v2124_v35  ;;  %v2778_v11 = vrot.slane %v5205_v1, 6  ;;  %v5218_v58 = vmax.f32 %v2355_v44, 0.0 }
 0x272   : > { %v3426_v34 = vpop.f32.mrf.mxu0 }
 0x273   : > { %v2171_v28 = vpop.f32.mrf.mxu1  ;;  %v5209_v17 = vmax.f32 %v2350_v31, 0.0  ;;  %v2365_v33 = vadd.f32 %v3426_v34, %v2139_v13  ;;  %v2829_v41 = vrot.slane %v5218_v58, 6 }
 0x274   : > { %v2359_v37 = vpop.f32.mrf.mxu0 }
 0x275   : > { %v2360_v49 = vadd.f32 %v2359_v37, %v2134_v24  ;;  %v2780_v6 = vrot.slane %v5209_v17, 5  ;;  %v5222_v12 = vmax.f32 %v2365_v33, 0.0 }
 0x276   : > { %v3429_v57 = vpop.f32.mrf.mxu0 }
 0x277   : > { %v5211_v20 = vmax.f32 %v2360_v49, 0.0  ;;  %v2375_v39 = vadd.f32 %v3429_v57, %v2149_v52  ;;  %v2831_v21 = vrot.slane %v5222_v12, 5  ;;  %v2861_v57 = vrot.slane %v5231_v23, 1 }
 0x278   : > { %v2369_v5 = vpop.f32.mrf.mxu0  ;;  %v2863_v49 = vrot.slane %v5218_v58, 7 }
 0x279   : > { %v2370_v9 = vadd.f32 %v2369_v5, %v2144_v26  ;;  %v2782_v18 = vrot.slane %v5211_v20, 4  ;;  %v5227_v36 = vmax.f32 %v2375_v39, 0.0  ;;  %v2779_v26 = vsel %vm2537_vm6, %v2778_v11, %v2777_v43 }
 0x27a   : > { %v3432_v27 = vpop.f32.mrf.mxu0  ;;  %v2781_v30 = vsel %vm2540_vm7, %v2780_v6, %v2779_v26  ;;  %v2862_v4 = vsel %vm2537_vm6, %v5213_v2, %v2861_v57  ;;  %v2930_v6 = vrot.slane %v5213_v2, 2  ;;  %v2929_v26 = vrot.slane %v5231_v23, 3 }
 0x27b   : > { %v5215_v53 = vmax.f32 %v2370_v9, 0.0  ;;  %v2385_v25 = vadd.f32 %v3432_v27, %v2159_v59  ;;  %v2828_v59 = vsel %vm2537_vm6, %v2827_v56, %v5231_v23  ;;  %v2833_v0 = vrot.slane %v5227_v36, 4 }
 0x27c   : > { %v2379_v63 = vpop.f32.mrf.mxu0  ;;  %v2865_v27 = vrot.slane %v5222_v12, 6  ;;  %v2867_v39 = vrot.slane %v5227_v36, 5 }
 0x27d   : > { %v2380_v38 = vadd.f32 %v2379_v63, %v2154_v8  ;;  %v2784_v13 = vrot.slane %v5215_v53, 3  ;;  %v5233_v16 = vmax.f32 %v2385_v25, 0.0  ;;  %v2783_v8 = vsel %vm2543_vm8, %v2782_v18, %v2781_v30 }
 0x27e   : > { %v3435_v61 = vpop.f32.mrf.mxu0 }
 0x27f   : > { %v5224_v46 = vmax.f32 %v2380_v38, 0.0  ;;  %v2395_v47 = vadd.f32 %v3435_v61, %v2169_v3  ;;  %v2785_v14 = vsel %vm2546_vm9, %v2784_v13, %v2783_v8  ;;  %v2835_v19 = vrot.slane %v5233_v16, 3 }
 0x280   : > { %v2389_v24 = vpop.f32.mrf.mxu0  ;;  %v2830_v3 = vsel %vm2540_vm7, %v2829_v41, %v2828_v59  ;;  %v2869_v25 = vrot.slane %v5233_v16, 4  ;;  %v2895_v38 = vrot.slane %v5231_v23, 2  ;;  %v2864_v61 = vsel %vm2540_vm7, %v2863_v49, %v2862_v4 }
 0x281   : > { %v2174_v60 = vpop.f32.mrf.mxu1  ;;  %v2390_v22 = vadd.f32 %v2389_v24, %v2164_v51  ;;  %v5236_v55 = vmax.f32 %v2395_v47, 0.0  ;;  %v2786_v35 = vrot.slane %v5224_v46, 2  ;;  %v2832_v48 = vsel %vm2543_vm8, %v2831_v21, %v2830_v3 }
 0x282   : > { %v3438_v45 = vpop.f32.mrf.mxu0  ;;  %v2834_v31 = vsel %vm2546_vm9, %v2833_v0, %v2832_v48  ;;  %v2866_v47 = vsel %vm2543_vm8, %v2865_v27, %v2864_v61  ;;  %v2897_v24 = vsel %vm2537_vm6, %v2896_v62, %v2895_v38  ;;  %v2903_v30 = vrot.slane %v5233_v16, 5 }
 0x283   : > { %v2176_v52 = vpop.f32.mrf.mxu1  ;;  %v5241_v42 = vmax.f32 %v2390_v22, 0.0  ;;  %v2787_v29 = vsel %vm2549_vm10, %v2786_v35, %v2785_v14  ;;  %v2837_v34 = vrot.slane %v5236_v55, 2  ;;  %v2836_v9 = vsel %vm2549_vm10, %v2835_v19, %v2834_v31 }
 0x284   : > { %v2399_v50 = vpop.f32.mrf.mxu0  ;;  %v2871_v43 = vrot.slane %v5236_v55, 3  ;;  %v2868_v56 = vsel %vm2546_vm9, %v2867_v39, %v2866_v47  ;;  %v2901_v22 = vrot.slane %v5227_v36, 6  ;;  %v2963_v35 = vrot.slane %v5231_v23, 4 }
 0x285   : > { %v2179_v32 = vpop.f32.mrf.mxu1  ;;  %v2400_v7 = vadd.f32 %v2399_v50, %v2174_v60  ;;  %v2788_v51 = vrot.slane %v5241_v42, 1  ;;  %v2838_v33 = vsel %vm2552_vm11, %v2837_v34, %v2836_v9  ;;  %v2899_v60 = vrot.slane %v5222_v12, 7 }
 0x286   : > { %v2405_v15 = vadd.f32 %v3438_v45, %v2179_v32  ;;  %v2932_v45 = vrot.slane %v5218_v58, 1  ;;  %v2870_v52 = vsel %vm2549_vm10, %v2869_v25, %v2868_v56  ;;  %v2964_v41 = vrot.slane %v5213_v2, 3  ;;  %v3441_v47 = vpop.f32.mrf.mxu0 }
 0x287   : > { %v2181_v10 = vpop.f32.mrf.mxu1  ;;  %v5254_v28 = vmax.f32 %v2400_v7, 0.0  ;;  %v2789_v40 = vsel %vm2552_vm11, %v2788_v51, %v2787_v29  ;;  %v2872_v21 = vsel %vm2552_vm11, %v2871_v43, %v2870_v52  ;;  %v2898_v50 = vsel %vm2540_vm7, %v5218_v58, %v2897_v24 }
 0x288   : > { %v5256_v37 = vmax.f32 %v2405_v15, 0.0  ;;  %v2905_v32 = vrot.slane %v5236_v55, 4  ;;  %v2931_v14 = vsel %vm2537_vm6, %v2930_v6, %v2929_v26  ;;  %v2900_v0 = vsel %vm2543_vm8, %v2899_v60, %v2898_v50 }
 0x289   : > { %v2790_v5 = vsel %vm2555_vm12, %v5254_v28, %v2789_v40  ;;  %v2966_v15 = vrot.slane %v5218_v58, 2  ;;  %v2902_v19 = vsel %vm2546_vm9, %v2901_v22, %v2900_v0  ;;  %v2933_v10 = vsel %vm2540_vm7, %v2932_v45, %v2931_v14 }
 0x28a   : > { %v2839_v44 = vrot.slane %v5256_v37, 1  ;;  %2805 = vrot.lane.b32.xlu0 %v2790_v5, %s4043_s6  ;;  %v2873_v18 = vrot.slane %v5256_v37, 2  ;;  %v2907_v7 = vrot.slane %v5256_v37, 3  ;;  %v2935_v29 = vrot.slane %v5227_v36, 7 }
 0x28b   : > { %v2968_v3 = vrot.slane %v5222_v12, 1  ;;  %v2904_v34 = vsel %vm2549_vm10, %v2903_v30, %v2902_v19  ;;  %v2937_v40 = vrot.slane %v5233_v16, 6  ;;  %v2573_v48 = vrot.slane %v5207_v54, 1 }
 0x28c   : > { %v2840_v63 = vsel %vm2555_vm12, %v2839_v44, %v2838_v33  ;;  %v2874_v59 = vsel %vm2555_vm12, %v2873_v18, %v2872_v21  ;;  %v2607_v31 = vrot.slane %v5207_v54, 2  ;;  %v2906_v57 = vsel %vm2552_vm11, %v2905_v32, %v2904_v34 }
 0x28d   : > { %v5277_v11 = vpop.f32.mrf.mxu1  ;;  %v2939_v49 = vrot.slane %v5236_v55, 5  ;;  %v2965_v62 = vsel %vm2537_vm6, %v2964_v41, %v2963_v35  ;;  %v2641_v5 = vrot.slane %v5207_v54, 3  ;;  %v2908_v9 = vsel %vm2555_vm12, %v2907_v7, %v2906_v57  ;;  %v5354_v7 = vpop.f32.mrf.mxu0 }
 0x28e   : > { %2855 = vrot.lane.b32.xlu0 %v2840_v63, %s4042_s25  ;;  %v2934_v44 = vsel %vm2543_vm8, %v5222_v12, %v2933_v10  ;;  %v2941_v27 = vrot.slane %v5256_v37, 4  ;;  %v2967_v33 = vsel %vm2540_vm7, %v2966_v15, %v2965_v62  ;;  %v2971_v4 = vrot.slane %v5233_v16, 7 }
 0x28f   : > { %v2186_v13 = vpop.f32.mrf.mxu1  ;;  %v2936_v39 = vsel %vm2546_vm9, %v2935_v29, %v2934_v44  ;;  %v2969_v63 = vsel %vm2543_vm8, %v2968_v3, %v2967_v33  ;;  %v2575_v25 = vrot.slane %v5209_v17, 7  ;;  %v2577_v61 = vrot.slane %v5211_v20, 6 }
 0x290   : > { %v2938_v38 = vsel %vm2549_vm10, %v2937_v40, %v2936_v39  ;;  %v2608_v43 = vrot.slane %v5205_v1, 1  ;;  %v2675_v6 = vrot.slane %v5207_v54, 4  ;;  %v2973_v60 = vrot.slane %v5236_v55, 6 }
 0x291   : > { %v5295_v8 = vpop.f32.mrf.mxu1  ;;  %v2940_v24 = vsel %vm2552_vm11, %v2939_v49, %v2938_v38  ;;  %v2574_v13 = vsel %vm2537_vm6, %v5205_v1, %v2573_v48  ;;  %v2579_v56 = vrot.slane %v5215_v53, 5  ;;  %v2970_v26 = vsel %vm2546_vm9, %v5227_v36, %v2969_v63  ;;  %v3444_v63 = vpop.f32.mrf.mxu0 }
 0x292   : > { %2889 = vrot.lane.b32.xlu0 %v2874_v59, %s4044_s7  ;;  %v2942_v22 = vsel %vm2555_vm12, %v2941_v27, %v2940_v24  ;;  %v2975_v45 = vrot.slane %v5256_v37, 5  ;;  %v2581_v52 = vrot.slane %v5224_v46, 4  ;;  %v2972_v35 = vsel %vm2549_vm10, %v2971_v4, %v2970_v26 }
 0x293   : > { %v2191_v51 = vpop.f32.mrf.mxu1  ;;  %v2576_v41 = vsel %vm2540_vm7, %v2575_v25, %v2574_v13  ;;  %v2583_v21 = vrot.slane %v5241_v42, 3  ;;  %v2709_v50 = vrot.slane %v5207_v54, 5  ;;  %v2609_v14 = vsel %vm2537_vm6, %v2608_v43, %v2607_v31 }
 0x294   : > { %v2578_v32 = vsel %vm2543_vm8, %v2577_v61, %v2576_v41  ;;  %v2611_v59 = vrot.slane %v5211_v20, 7  ;;  %v2642_v0 = vrot.slane %v5205_v1, 2  ;;  %v2974_v51 = vsel %vm2552_vm11, %v2973_v60, %v2972_v35  ;;  %v5394_v41 = vpop.f32.mrf.mxu0 }
 0x295   : > { %v2580_v19 = vsel %vm2546_vm9, %v2579_v56, %v2578_v32  ;;  %v2613_v10 = vrot.slane %v5215_v53, 6  ;;  %v2644_v29 = vrot.slane %v5209_v17, 1  ;;  %v2976_v3 = vsel %vm2555_vm12, %v2975_v45, %v2974_v51 }
 0x296   : > { %2923 = vrot.lane.b32.xlu0 %v2908_v9, %s4045_s8  ;;  %v2582_v34 = vsel %vm2549_vm10, %v2581_v52, %v2580_v19  ;;  %v2585_v40 = vrot.slane %v5254_v28, 2  ;;  %v2615_v48 = vrot.slane %v5224_v46, 5  ;;  %v2610_v49 = vsel %vm2540_vm7, %v5209_v17, %v2609_v14 }
 0x297   : > { %v2584_v57 = vsel %vm2552_vm11, %v2583_v21, %v2582_v34  ;;  %v2617_v62 = vrot.slane %v5241_v42, 4  ;;  %v2743_v9 = vrot.slane %v5207_v54, 6  ;;  %v2612_v44 = vsel %vm2543_vm8, %v2611_v59, %v2610_v49  ;;  %v3447_v49 = vpop.f32.mrf.mxu0 }
 0x298   : > { %v2619_v27 = vrot.slane %v5254_v28, 3  ;;  %v2643_v33 = vsel %vm2537_vm6, %v2642_v0, %v2641_v5  ;;  %v2676_v39 = vrot.slane %v5205_v1, 3  ;;  %v2614_v4 = vsel %vm2546_vm9, %v2613_v10, %v2612_v44 }
 0x299   : > { %v5333_v18 = vpop.f32.mrf.mxu1  ;;  %v2645_v25 = vsel %vm2540_vm7, %v2644_v29, %v2643_v33  ;;  %v2647_v38 = vrot.slane %v5215_v53, 7  ;;  %v2678_v61 = vrot.slane %v5209_v17, 2  ;;  %v2586_v43 = vsel %vm2555_vm12, %v2585_v40, %v2584_v57 }
 0x29a   : > { %2957 = vrot.lane.b32.xlu0 %v2942_v22, %s4046_s9  ;;  %v2616_v24 = vsel %vm2549_vm10, %v2615_v48, %v2614_v4  ;;  %v2649_v60 = vrot.slane %v5224_v46, 6  ;;  %v2680_v13 = vrot.slane %v5211_v20, 1  ;;  %v2415_v5 = vadd.f32 %v3441_v47, %v5295_v8 }
 0x29b   : > { %v2196_v30 = vpop.f32.mrf.mxu1  ;;  %v2618_v56 = vsel %vm2552_vm11, %v2617_v62, %v2616_v24  ;;  %v2651_v22 = vrot.slane %v5241_v42, 5  ;;  %v2653_v26 = vrot.slane %v5254_v28, 4  ;;  %v2646_v52 = vsel %vm2543_vm8, %v5211_v20, %v2645_v25 }
 0x29c   : > { %v2620_v45 = vsel %vm2555_vm12, %v2619_v27, %v2618_v56  ;;  %v2677_v30 = vsel %vm2537_vm6, %v2676_v39, %v2675_v6  ;;  %v2710_v35 = vrot.slane %v5205_v1, 4  ;;  %v2648_v47 = vsel %vm2546_vm9, %v2647_v38, %v2646_v52 }
 0x29d   : > { %v5356_v15 = vpop.f32.mrf.mxu1  ;;  %v2679_v21 = vsel %vm2540_vm7, %v2678_v61, %v2677_v30  ;;  %v2683_v32 = vrot.slane %v5224_v46, 7  ;;  %v2712_v14 = vrot.slane %v5209_v17, 3  ;;  %v2650_v59 = vsel %vm2549_vm10, %v2649_v60, %v2648_v47 }
 0x29e   : > { %2991 = vrot.lane.b32.xlu0 %v2976_v3, %s4041_s20  ;;  %v2681_v0 = vsel %vm2543_vm8, %v2680_v13, %v2679_v21  ;;  %v2714_v6 = vrot.slane %v5211_v20, 2  ;;  %v2744_v51 = vrot.slane %v5205_v1, 5  ;;  %v2652_v10 = vsel %vm2552_vm11, %v2651_v22, %v2650_v59  ;;  %v5434_v22 = vpop.f32.mrf.mxu0 }
 0x29f   : > { %v2201_v31 = vpop.f32.mrf.mxu1  ;;  %v2685_v29 = vrot.slane %v5241_v42, 6  ;;  %v2716_v3 = vrot.slane %v5215_v53, 1  ;;  %v2746_v34 = vrot.slane %v5209_v17, 4  ;;  %v2654_v40 = vsel %vm2555_vm12, %v2653_v26, %v2652_v10 }
 0x2a0   : > { %v2687_v48 = vrot.slane %v5254_v28, 5  ;;  %v2711_v31 = vsel %vm2537_vm6, %v2710_v35, %v2709_v50  ;;  %v2748_v57 = vrot.slane %v5211_v20, 3  ;;  %v2682_v44 = vsel %vm2546_vm9, %v5215_v53, %v2681_v0 }
 0x2a1   : > { %v2713_v27 = vsel %vm2540_vm7, %v2712_v14, %v2711_v31  ;;  %v2719_v33 = vrot.slane %v5241_v42, 7  ;;  %v2750_v39 = vrot.slane %v5215_v53, 2  ;;  %v2425_v4 = vadd.f32 %v3444_v63, %v5356_v15 }
 0x2a2   : > { %2601 = vrot.lane.b32.xlu0 %v2586_v43, %s4047_s10  ;;  %v2715_v25 = vsel %vm2543_vm8, %v2714_v6, %v2713_v27  ;;  %v2745_v38 = vsel %vm2537_vm6, %v2744_v51, %v2743_v9  ;;  %v2752_v50 = vrot.slane %v5224_v46, 1  ;;  %v2684_v24 = vsel %vm2549_vm10, %v2683_v32, %v2682_v44 }
 0x2a3   : > { %v2717_v60 = vsel %vm2546_vm9, %v2716_v3, %v2715_v25  ;;  %v2747_v13 = vsel %vm2540_vm7, %v2746_v34, %v2745_v38  ;;  %v2686_v56 = vsel %vm2552_vm11, %v2685_v29, %v2684_v24  ;;  %v2997_v63 = vrot.slane %v5231_v23, 5  ;;  %v5457_v3 = vpop.f32.mrf.mxu0 }
 0x2a4   : > { %v2749_v15 = vsel %vm2543_vm8, %v2748_v57, %v2747_v13  ;;  %v2998_v9 = vrot.slane %v5213_v2, 4  ;;  %v2688_v26 = vsel %vm2555_vm12, %v2687_v48, %v2686_v56  ;;  %v3000_v30 = vrot.slane %v5218_v58, 3 }
 0x2a5   : > { %v5396_v8 = vpop.f32.mrf.mxu1  ;;  %v2751_v52 = vsel %vm2546_vm9, %v2750_v39, %v2749_v15  ;;  %v5440_v35 = vmax.f32 %v2425_v4, 0.0  ;;  %v2718_v47 = vsel %vm2549_vm10, %v5224_v46, %v2717_v60  ;;  %v3002_v32 = vrot.slane %v5222_v12, 2  ;;  %v5480_v24 = vpop.f32.mrf.mxu0 }
 0x2a6   : > { %2635 = vrot.lane.b32.xlu0 %v2620_v45, %s4048_s11  ;;  %v2721_v45 = vrot.slane %v5254_v28, 6  ;;  %v2753_v21 = vsel %vm2549_vm10, %v2752_v50, %v2751_v52  ;;  %v5446_v14 = vmax.f32 %v2415_v5, 0.0  ;;  %v2720_v0 = vsel %vm2552_vm11, %v2719_v33, %v2718_v47 }
 0x2a7   : > { %v2206_v19 = vpop.f32.mrf.mxu1  ;;  %v3031_v6 = vrot.slane %v5231_v23, 6  ;;  %v2755_v51 = vrot.slane %v5254_v28, 7  ;;  %v3004_v10 = vrot.slane %v5227_v36, 1  ;;  %v3032_v29 = vrot.slane %v5213_v2, 5 }
 0x2a8   : > { %v2999_v19 = vsel %vm2537_vm6, %v2998_v9, %v2997_v63  ;;  %v2722_v34 = vsel %vm2555_vm12, %v2721_v45, %v2720_v0  ;;  %v3007_v31 = vrot.slane %v5236_v55, 7  ;;  %v2841_v44 = vrot.slane %v5440_v35, 7 }
 0x2a9   : > { %v2209_v62 = vpop.f32.mrf.mxu1  ;;  %v3001_v48 = vsel %vm2540_vm7, %v3000_v30, %v2999_v19  ;;  %v3036_v33 = vrot.slane %v5222_v12, 3  ;;  %v3038_v39 = vrot.slane %v5227_v36, 2  ;;  %v2875_v25 = vrot.slane %v5446_v14, 1  ;;  %v5505_v19 = vpop.f32.mrf.mxu0 }
 0x2aa   : > { %v2435_v61 = vadd.f32 %v3447_v49, %v2209_v62  ;;  %2669 = vrot.lane.b32.xlu0 %v2654_v40, %s4049_s14  ;;  %v2754_v40 = vsel %vm2552_vm11, %v5241_v42, %v2753_v21  ;;  %v3003_v57 = vsel %vm2543_vm8, %v3002_v32, %v3001_v48  ;;  %v3009_v49 = vrot.slane %v5256_v37, 6 }
 0x2ab   : > { %v2211_v43 = vpop.f32.mrf.mxu1  ;;  %v3034_v62 = vrot.slane %v5218_v58, 4  ;;  %v3005_v38 = vsel %vm2546_vm9, %v3004_v10, %v3003_v57  ;;  %v3033_v50 = vsel %vm2537_vm6, %v3032_v29, %v3031_v6  ;;  %v3066_v13 = vrot.slane %v5213_v2, 6 }
 0x2ac   : > { %v5448_v59 = vmax.f32 %v2435_v61, 0.0  ;;  %v3040_v61 = vrot.slane %v5233_v16, 1  ;;  %v2842_v43 = vsel %vm2537_vm6, %v2841_v44, %v5446_v14  ;;  %v2876_v15 = vsel %vm2537_vm6, %v5440_v35, %v2875_v25 }
 0x2ad   : > { %v2756_v9 = vsel %vm2555_vm12, %v2755_v51, %v2754_v40  ;;  %v3068_v45 = vrot.slane %v5218_v58, 5  ;;  %v2910_v52 = vrot.slane %v5440_v35, 1  ;;  %v3006_v30 = vsel %vm2549_vm10, %v5233_v16, %v3005_v38 }
 0x2ae   : > { %2703 = vrot.lane.b32.xlu0 %v2688_v26, %s4040_s28  ;;  %v2843_v4 = vrot.slane %v5448_v59, 6  ;;  %v2877_v63 = vrot.slane %v5448_v59, 7  ;;  %v3035_v26 = vsel %vm2540_vm7, %v3034_v62, %v3033_v50  ;;  %v3043_v21 = vrot.slane %v5256_v37, 7 }
 0x2af   : > { %v3037_v47 = vsel %vm2543_vm8, %v3036_v33, %v3035_v26  ;;  %v3065_v32 = vrot.slane %v5231_v23, 7  ;;  %v3008_v0 = vsel %vm2552_vm11, %v3007_v31, %v3006_v30  ;;  %v3070_v58 = vrot.slane %v5222_v12, 4 }
 0x2b0   : > { %v5486_v56 = vsel %vm2540_vm7, %v2843_v4, %v2842_v43  ;;  %v3039_v6 = vsel %vm2546_vm9, %v3038_v39, %v3037_v47  ;;  %v2909_v51 = vrot.slane %v5446_v14, 2  ;;  %v3010_v10 = vsel %vm2555_vm12, %v3009_v49, %v3008_v0  ;;  %v2449_v39 = vpop.f32.mrf.mxu0 }
 0x2b1   : > { %v5459_v5 = vpop.f32.mrf.mxu1  ;;  %v3041_v29 = vsel %vm2549_vm10, %v3040_v61, %v3039_v6  ;;  %v5511_v40 = vsel %vm2540_vm7, %v2877_v63, %v2876_v15  ;;  %v3072_v48 = vrot.slane %v5227_v36, 3  ;;  %v3074_v31 = vrot.slane %v5233_v16, 2 }
 0x2b2   : > { %2737 = vrot.lane.b32.xlu0 %v2722_v34, %s4050_s15  ;;  %v3067_v34 = vsel %vm2537_vm6, %v3066_v13, %v3065_v32  ;;  %v2911_v12 = vsel %vm2537_vm6, %v2910_v52, %v2909_v51  ;;  %v2943_v49 = vrot.slane %v5446_v14, 3  ;;  %v2944_v62 = vrot.slane %v5440_v35, 2  ;;  %v5548_v30 = vpop.f32.mrf.mxu0 }
 0x2b3   : > { %v2216_v27 = vpop.f32.mrf.mxu1  ;;  %v3069_v23 = vsel %vm2540_vm7, %v3068_v45, %v3067_v34  ;;  %v5520_v57 = vsel %vm2540_vm7, %v5448_v59, %v2911_v12  ;;  %v2946_v44 = vrot.slane %v5448_v59, 1  ;;  %v3042_v36 = vsel %vm2552_vm11, %v5236_v55, %v3041_v29 }
 0x2b4   : > { %v3071_v16 = vsel %vm2543_vm8, %v3070_v58, %v3069_v23  ;;  %v2977_v27 = vrot.slane %v5446_v14, 4  ;;  %v2978_v33 = vrot.slane %v5440_v35, 3  ;;  %v3044_v25 = vsel %vm2555_vm12, %v3043_v21, %v3042_v36  ;;  %v2459_v51 = vpop.f32.mrf.mxu0 }
 0x2b5   : > { %v5482_v60 = vpop.f32.mrf.mxu1  ;;  %v3076_v38 = vrot.slane %v5236_v55, 1  ;;  %v2945_v50 = vsel %vm2537_vm6, %v2944_v62, %v2943_v49  ;;  %v2980_v61 = vrot.slane %v5448_v59, 2  ;;  %v3011_v15 = vrot.slane %v5446_v14, 5 }
 0x2b6   : > { %2771 = vrot.lane.b32.xlu0 %v2756_v9, %s4051_s16  ;;  %v5535_v43 = vsel %vm2540_vm7, %v2946_v44, %v2945_v50  ;;  %v2979_v13 = vsel %vm2537_vm6, %v2978_v33, %v2977_v27  ;;  %v3012_v63 = vrot.slane %v5440_v35, 4  ;;  %v3073_v26 = vsel %vm2546_vm9, %v3072_v48, %v3071_v16  ;;  %v5569_v49 = vpop.f32.mrf.mxu0 }
 0x2b7   : > { %v2221_v2 = vpop.f32.mrf.mxu1  ;;  %v5543_v55 = vsel %vm2540_vm7, %v2980_v61, %v2979_v13  ;;  %v3014_v45 = vrot.slane %v5448_v59, 3  ;;  %v3075_v52 = vsel %vm2549_vm10, %v3074_v31, %v3073_v26  ;;  %v3046_v58 = vrot.slane %v5440_v35, 5 }
 0x2b8   : > { %v3013_v2 = vsel %vm2537_vm6, %v3012_v63, %v3011_v15  ;;  %v3077_v21 = vsel %vm2552_vm11, %v3076_v38, %v3075_v52  ;;  %v3045_v29 = vrot.slane %v5446_v14, 6  ;;  %v3048_v34 = vrot.slane %v5448_v59, 4 }
 0x2b9   : > { %v5554_v32 = vsel %vm2540_vm7, %v3014_v45, %v3013_v2  ;;  %v3078_v0 = vsel %vm2555_vm12, %v5256_v37, %v3077_v21  ;;  %v2420_v23 = vadd.f32 %v5394_v41, %v5333_v18  ;;  %v2430_v48 = vadd.f32 %v5434_v22, %v5396_v8 }
 0x2ba   : > { %3025 = vrot.lane.b32.xlu0 %v3010_v10, %s4052_s17  ;;  %v3047_v37 = vsel %vm2537_vm6, %v3046_v58, %v3045_v29  ;;  %v2410_v12 = vadd.f32 %v5354_v7, %v5277_v11  ;;  %v2440_v18 = vadd.f32 %v5480_v24, %v5459_v5  ;;  %v2469_v11 = vpop.f32.mrf.mxu0 }
 0x2bb   : > { %v5574_v44 = vsel %vm2540_vm7, %v3048_v34, %v3047_v37  ;;  %v5576_v36 = vmax.f32 %v2420_v23, 0.0  ;;  %v5580_v41 = vmax.f32 %v2430_v48, 0.0 }
 0x2bc   : > { %v5582_v16 = vmax.f32 %v2410_v12, 0.0  ;;  %v5584_v33 = vmax.f32 %v2440_v18, 0.0 }
 0x2bd   : > { %v2224_v4 = vpop.f32.mrf.mxu1  ;;  %v2792_v38 = vrot.slane %v5576_v36, 6  ;;  %v2794_v13 = vrot.slane %v5580_v41, 5  ;;  %v2589_v5 = vrot.slane %v5580_v41, 7  ;;  %v2622_v26 = vrot.slane %v5576_v36, 1 }
 0x2be   : > { %3059 = vrot.lane.b32.xlu0 %v3044_v25, %s4053_s18  ;;  %v2450_v8 = vadd.f32 %v2449_v39, %v2224_v4  ;;  %v2791_v39 = vrot.slane %v5582_v16, 7  ;;  %v2587_v4 = vrot.slane %v5582_v16, 1  ;;  %v2796_v52 = vrot.slane %v5584_v33, 4 }
 0x2bf   : > { %v2226_v9 = vpop.f32.mrf.mxu1  ;;  %v2656_v21 = vrot.slane %v5576_v36, 2  ;;  %v2655_v34 = vrot.slane %v5582_v16, 3  ;;  %v2658_v23 = vrot.slane %v5580_v41, 1  ;;  %v2689_v48 = vrot.slane %v5582_v16, 4 }
 0x2c0   : > { %v5587_v50 = vmax.f32 %v2450_v8, 0.0  ;;  %v5599_v9 = vpop.f32.mrf.mxu0  ;;  %v2793_v45 = vsel %vm2537_vm6, %v2792_v38, %v2791_v39  ;;  %v2588_v2 = vsel %vm2537_vm6, %v5576_v36, %v2587_v4  ;;  %v2690_v8 = vrot.slane %v5576_v36, 3 }
 0x2c1   : > { %v5550_v47 = vpop.f32.mrf.mxu1  ;;  %v2724_v39 = vrot.slane %v5576_v36, 4 }
 0x2c2   : > { %3093 = vrot.lane.b32.xlu0 %v3078_v0, %s4054_s19  ;;  %v2798_v58 = vrot.slane %v5587_v50, 3 }
 0x2c3   : > { %v2231_v6 = vpop.f32.mrf.mxu1 }
 0x2c4   : > { %v2795_v6 = vsel %vm2540_vm7, %v2794_v13, %v2793_v45  ;;  %v2593_v13 = vrot.slane %v5587_v50, 5 }
 0x2c5   : > { %v2234_v10 = vpop.f32.mrf.mxu1 }
 0x2c6   : > { %v2460_v27 = vadd.f32 %v2459_v51, %v2234_v10  ;;  %v2590_v51 = vsel %vm2540_vm7, %v2589_v5, %v2588_v2  ;;  %v2621_v10 = vrot.slane %v5582_v16, 2  ;;  %v2723_v5 = vrot.slane %v5582_v16, 5 }
 0x2c7   : > { %v2236_v31 = vpop.f32.mrf.mxu1 }
 0x2c8   : > { %v5591_v24 = vmax.f32 %v2460_v27, 0.0  ;;  %v2479_v31 = vpop.f32.mrf.mxu0  ;;  %v2623_v18 = vsel %vm2537_vm6, %v2622_v26, %v2621_v10 }
 0x2c9   : > { %v5571_v62 = vpop.f32.mrf.mxu1 }
 0x2ca   : > { %v2800_v29 = vrot.slane %v5591_v24, 2  ;;  %v2595_v45 = vrot.slane %v5591_v24, 4 }
 0x2cb   : > { %v2241_v22 = vpop.f32.mrf.mxu1 }
 0x2cc   : > { %v2692_v22 = vrot.slane %v5580_v41, 2 }
 0x2cd   : > { %v2244_v7 = vpop.f32.mrf.mxu1 }
 0x2ce   : > { %v2470_v25 = vadd.f32 %v2469_v11, %v2244_v7  ;;  %v2797_v11 = vsel %vm2543_vm8, %v2796_v52, %v2795_v6  ;;  %v2591_v7 = vrot.slane %v5584_v33, 6  ;;  %v2624_v52 = vsel %vm2540_vm7, %v5580_v41, %v2623_v18 }
 0x2cf   : > { %v2246_v61 = vpop.f32.mrf.mxu1  ;;  %v3080_v6 = vrot.slane %v5440_v35, 6 }
 0x2d0   : > { %v5595_v15 = vmax.f32 %v2470_v25, 0.0  ;;  %v2657_v25 = vsel %vm2537_vm6, %v2656_v21, %v2655_v34  ;;  %v2799_v61 = vsel %vm2546_vm9, %v2798_v58, %v2797_v11  ;;  %v2592_v10 = vsel %vm2543_vm8, %v2591_v7, %v2590_v51 }
 0x2d1   : > { %v5597_v63 = vpop.f32.mrf.mxu1  ;;  %v2801_v26 = vsel %vm2549_vm10, %v2800_v29, %v2799_v61  ;;  %v2625_v34 = vrot.slane %v5584_v33, 7  ;;  %v2691_v51 = vsel %vm2537_vm6, %v2690_v8, %v2689_v48  ;;  %v3082_v11 = vrot.slane %v5448_v59, 5 }
 0x2d2   : > { %v2802_v12 = vrot.slane %v5595_v15, 1  ;;  %v2597_v21 = vrot.slane %v5595_v15, 3  ;;  %v2693_v61 = vsel %vm2540_vm7, %v2692_v22, %v2691_v51  ;;  %v2445_v59 = vadd.f32 %v5457_v3, %v5482_v60 }
 0x2d3   : > { %v2251_v0 = vpop.f32.mrf.mxu1  ;;  %v2661_v8 = vrot.slane %v5587_v50, 7  ;;  %v2725_v22 = vsel %vm2537_vm6, %v2724_v39, %v2723_v5  ;;  %v2665_v60 = vrot.slane %v5595_v15, 5  ;;  %v2694_v39 = vrot.slane %v5584_v33, 1 }
 0x2d4   : > { %v2803_v2 = vsel %vm2552_vm11, %v2802_v12, %v2801_v26  ;;  %v3079_v0 = vrot.slane %v5446_v14, 7  ;;  %v2659_v12 = vsel %vm2540_vm7, %v2658_v23, %v2657_v25  ;;  %v2626_v26 = vsel %vm2543_vm8, %v2625_v34, %v2624_v52 }
 0x2d5   : > { %v2254_v37 = vpop.f32.mrf.mxu1  ;;  %v2663_v52 = vrot.slane %v5591_v24, 6  ;;  %v2660_v3 = vsel %vm2543_vm8, %v5584_v33, %v2659_v12  ;;  %v2728_v34 = vrot.slane %v5584_v33, 2  ;;  %v2697_v51 = vrot.slane %v5591_v24, 7 }
 0x2d6   : > { %v2480_v27 = vadd.f32 %v2479_v31, %v2254_v37  ;;  %v2594_v31 = vsel %vm2546_vm9, %v2593_v13, %v2592_v10  ;;  %v2627_v37 = vrot.slane %v5587_v50, 6  ;;  %v3081_v14 = vsel %vm2537_vm6, %v3080_v6, %v3079_v0 }
 0x2d7   : > { %v2256_v38 = vpop.f32.mrf.mxu1  ;;  %v2596_v18 = vsel %vm2549_vm10, %v2595_v45, %v2594_v31  ;;  %v2726_v13 = vrot.slane %v5580_v41, 3  ;;  %v2757_v0 = vrot.slane %v5582_v16, 6  ;;  %v2758_v6 = vrot.slane %v5576_v36, 5 }
 0x2d8   : > { %v5626_v4 = vmax.f32 %v2480_v27, 0.0  ;;  %v2629_v27 = vrot.slane %v5591_v24, 5  ;;  %v2598_v7 = vsel %vm2552_vm11, %v2597_v21, %v2596_v18  ;;  %v2631_v38 = vrot.slane %v5595_v15, 4 }
 0x2d9   : > { %v2628_v48 = vsel %vm2546_vm9, %v2627_v37, %v2626_v26  ;;  %v2760_v10 = vrot.slane %v5580_v41, 4  ;;  %v5679_v31 = vmax.f32 %v2445_v59, 0.0  ;;  %v2662_v37 = vsel %vm2546_vm9, %v2661_v8, %v2660_v3 }
 0x2da   : > { %v2804_v58 = vsel %vm2555_vm12, %v5626_v4, %v2803_v2  ;;  %v2599_v29 = vrot.slane %v5626_v4, 2  ;;  %v2633_v45 = vrot.slane %v5626_v4, 3  ;;  %v5658_v2 = vsel %vm2540_vm7, %v3082_v11, %v3081_v14 }
 0x2db   : > { %2807 = vrot.lane.b32.xlu1 %v2804_v58, %s4043_s6  ;;  %v2630_v21 = vsel %vm2549_vm10, %v2629_v27, %v2628_v48  ;;  %v2667_v5 = vrot.slane %v5626_v4, 4  ;;  %v2727_v12 = vsel %vm2540_vm7, %v2726_v13, %v2725_v22  ;;  %v2762_v14 = vrot.slane %v5584_v33, 3 }
 0x2dc   : > { %v2259_v35 = vpop.f32.mrf.mxu1  ;;  %v2600_v25 = vsel %vm2555_vm12, %v2599_v29, %v2598_v7  ;;  %v2632_v58 = vsel %vm2552_vm11, %v2631_v38, %v2630_v21  ;;  %v2455_v18 = vadd.f32 %v5505_v19, %v5550_v47  ;;  %v2664_v27 = vsel %vm2549_vm10, %v2663_v52, %v2662_v37 }
 0x2dd   : > { %v2634_v29 = vsel %vm2555_vm12, %v2633_v45, %v2632_v58  ;;  %v2759_v11 = vsel %vm2537_vm6, %v2758_v6, %v2757_v0  ;;  %v2666_v7 = vsel %vm2552_vm11, %v2665_v60, %v2664_v27  ;;  %v2699_v38 = vrot.slane %v5595_v15, 6 }
 0x2de   : > { %v2261_v23 = vpop.f32.mrf.mxu1  ;;  %v2668_v13 = vsel %vm2555_vm12, %v2667_v5, %v2666_v7  ;;  %v2695_v26 = vsel %vm2543_vm8, %v2694_v39, %v2693_v61  ;;  %v2701_v19 = vrot.slane %v5626_v4, 5  ;;  %v2729_v47 = vsel %vm2543_vm8, %v2728_v34, %v2727_v12 }
 0x2df   : > { %2603 = vrot.lane.b32.xlu1 %v2600_v25, %s4047_s10  ;;  %v2730_v23 = vrot.slane %v5587_v50, 1  ;;  %v2761_v25 = vsel %vm2540_vm7, %v2760_v10, %v2759_v11  ;;  %v2696_v45 = vsel %vm2546_vm9, %v5587_v50, %v2695_v26  ;;  %v2764_v48 = vrot.slane %v5587_v50, 2 }
 0x2e0   : > { %v2763_v59 = vsel %vm2543_vm8, %v2762_v14, %v2761_v25  ;;  %v2845_v8 = vrot.slane %v5679_v31, 5  ;;  %v5704_v22 = vmax.f32 %v2455_v18, 0.0  ;;  %v2465_v61 = vadd.f32 %v5548_v30, %v5571_v62 }
 0x2e1   : > { %v2475_v21 = vadd.f32 %v5569_v49, %v5597_v63  ;;  %v2698_v52 = vsel %vm2549_vm10, %v2697_v51, %v2696_v45  ;;  %v2731_v6 = vsel %vm2546_vm9, %v2730_v23, %v2729_v47  ;;  %v2733_v58 = vrot.slane %v5595_v15, 7 }
 0x2e2   : > { %v2700_v0 = vsel %vm2552_vm11, %v2699_v38, %v2698_v52  ;;  %v2735_v3 = vrot.slane %v5626_v4, 6  ;;  %v2485_v60 = vadd.f32 %v5599_v9, %v2259_v35  ;;  %v2559_v30 = vrot.slane %v5580_v41, 6 }
 0x2e3   : > { %2637 = vrot.lane.b32.xlu1 %v2634_v29, %s4048_s11  ;;  %v2702_v10 = vsel %vm2555_vm12, %v2701_v19, %v2700_v0  ;;  %v2557_v29 = vrot.slane %v5576_v36, 7  ;;  %v2732_v49 = vsel %vm2549_vm10, %v5591_v24, %v2731_v6  ;;  %v2766_v62 = vrot.slane %v5591_v24, 1 }
 0x2e4   : > { %v2561_v63 = vrot.slane %v5584_v33, 5  ;;  %v2563_v5 = vrot.slane %v5587_v50, 4  ;;  %v5725_v39 = vmax.f32 %v2465_v61, 0.0  ;;  %v5727_v9 = vmax.f32 %v2475_v21, 0.0 }
 0x2e5   : > { %v2558_v36 = vsel %vm2537_vm6, %v2557_v29, %v5582_v16  ;;  %v2565_v41 = vrot.slane %v5591_v24, 3  ;;  %v2734_v35 = vsel %vm2552_vm11, %v2733_v58, %v2732_v49  ;;  %v2769_v34 = vrot.slane %v5626_v4, 7 }
 0x2e6   : > { %v2560_v37 = vsel %vm2540_vm7, %v2559_v30, %v2558_v36  ;;  %v2567_v12 = vrot.slane %v5595_v15, 2  ;;  %v5736_v33 = vmax.f32 %v2485_v60, 0.0  ;;  %v2736_v50 = vsel %vm2555_vm12, %v2735_v3, %v2734_v35 }
 0x2e7   : > { %2671 = vrot.lane.b32.xlu1 %v2668_v13, %s4049_s14  ;;  %v2562_v14 = vsel %vm2543_vm8, %v2561_v63, %v2560_v37  ;;  %v2569_v18 = vrot.slane %v5626_v4, 1  ;;  %v2765_v16 = vsel %vm2546_vm9, %v2764_v48, %v2763_v59  ;;  %v2847_v24 = vrot.slane %v5704_v22, 4 }
 0x2e8   : > { %v2564_v27 = vsel %vm2546_vm9, %v2563_v5, %v2562_v14  ;;  %v2767_v51 = vsel %vm2549_vm10, %v2766_v62, %v2765_v16  ;;  %v2849_v11 = vrot.slane %v5725_v39, 3  ;;  %v2851_v23 = vrot.slane %v5727_v9, 2 }
 0x2e9   : > { %v2566_v7 = vsel %vm2549_vm10, %v2565_v41, %v2564_v27  ;;  %v2768_v38 = vsel %vm2552_vm11, %v5595_v15, %v2767_v51  ;;  %v2879_v4 = vrot.slane %v5679_v31, 6  ;;  %v2846_v26 = vsel %vm2543_vm8, %v2845_v8, %v5486_v56 }
 0x2ea   : > { %v2568_v25 = vsel %vm2552_vm11, %v2567_v12, %v2566_v7  ;;  %v2770_v13 = vsel %vm2555_vm12, %v2769_v34, %v2768_v38  ;;  %v2853_v19 = vrot.slane %v5736_v33, 1  ;;  %v2848_v15 = vsel %vm2546_vm9, %v2847_v24, %v2846_v26 }
 0x2eb   : > { %2705 = vrot.lane.b32.xlu1 %v2702_v10, %s4040_s28  ;;  %v5758_v47 = vsel %vm2555_vm12, %v2569_v18, %v2568_v25  ;;  %v2881_v45 = vrot.slane %v5704_v22, 5  ;;  %v2850_v59 = vsel %vm2549_vm10, %v2849_v11, %v2848_v15  ;;  %v2883_v48 = vrot.slane %v5725_v39, 4  ;;  %s3275_s28 = sshll.u32 %s5923_s13, 4 }
 0x2ec   : > { %v2852_v61 = vsel %vm2552_vm11, %v2851_v23, %v2850_v59  ;;  %v2885_v21 = vrot.slane %v5727_v9, 3  ;;  %v2880_v8 = vsel %vm2543_vm8, %v2879_v4, %v5511_v40  ;;  %v2887_v52 = vrot.slane %v5736_v33, 2  ;;  %s5893_s21 = scalar_lea.vmem %s5921_s3, %s3275_s28 }
 0x2ed   : > { %v2854_v56 = vsel %vm2555_vm12, %v2853_v19, %v2852_v61  ;;  %v2913_v0 = vrot.slane %v5679_v31, 7  ;;  %v2882_v6 = vsel %vm2546_vm9, %v2881_v45, %v2880_v8  ;;  %v2915_v58 = vrot.slane %v5704_v22, 6 }
 0x2ee   : > { %v2884_v3 = vsel %vm2549_vm10, %v2883_v48, %v2882_v6  ;;  %v2917_v60 = vrot.slane %v5725_v39, 5  ;;  %v2919_v29 = vrot.slane %v5727_v9, 4  ;;  %v2921_v49 = vrot.slane %v5736_v33, 3 }
 0x2ef   : > { %2739 = vrot.lane.b32.xlu1 %v2736_v50, %s4050_s15  ;;  %v2886_v10 = vsel %vm2552_vm11, %v2885_v21, %v2884_v3  ;;  %v2914_v30 = vsel %vm2543_vm8, %v2913_v0, %v5520_v57  ;;  %v2949_v63 = vrot.slane %v5704_v22, 7  ;;  %v2951_v36 = vrot.slane %v5725_v39, 6 }
 0x2f0   : > { %v2888_v40 = vsel %vm2555_vm12, %v2887_v52, %v2886_v10  ;;  %v2916_v62 = vsel %vm2546_vm9, %v2915_v58, %v2914_v30  ;;  %v2953_v34 = vrot.slane %v5727_v9, 5  ;;  %v2948_v37 = vsel %vm2543_vm8, %v5679_v31, %v5535_v43 }
 0x2f1   : > { %v2918_v5 = vsel %vm2549_vm10, %v2917_v60, %v2916_v62  ;;  %v2955_v12 = vrot.slane %v5736_v33, 4  ;;  %v2982_v50 = vrot.slane %v5679_v31, 1  ;;  %v2950_v14 = vsel %vm2546_vm9, %v2949_v63, %v2948_v37 }
 0x2f2   : > { %v2920_v35 = vsel %vm2552_vm11, %v2919_v29, %v2918_v5  ;;  %v2952_v18 = vsel %vm2549_vm10, %v2951_v36, %v2950_v14  ;;  %v2985_v16 = vrot.slane %v5725_v39, 7  ;;  %v2987_v51 = vrot.slane %v5727_v9, 6 }
 0x2f3   : > { %2773 = vrot.lane.b32.xlu1 %v2770_v13, %s4051_s16  ;;  %v2922_v57 = vsel %vm2555_vm12, %v2921_v49, %v2920_v35  ;;  %v2954_v27 = vsel %vm2552_vm11, %v2953_v34, %v2952_v18  ;;  %v2983_v11 = vsel %vm2543_vm8, %v2982_v50, %v5543_v55  ;;  %v2989_v7 = vrot.slane %v5736_v33, 5 }
 0x2f4   : > { %v2956_v43 = vsel %vm2555_vm12, %v2955_v12, %v2954_v27  ;;  %v3016_v38 = vrot.slane %v5679_v31, 2  ;;  %v2984_v23 = vsel %vm2546_vm9, %v5704_v22, %v2983_v11  ;;  %v3018_v4 = vrot.slane %v5704_v22, 1 }
 0x2f5   : > { %v2986_v25 = vsel %vm2549_vm10, %v2985_v16, %v2984_v23  ;;  %v3021_v19 = vrot.slane %v5727_v9, 7  ;;  %v3023_v45 = vrot.slane %v5736_v33, 6  ;;  %v3050_v59 = vrot.slane %v5679_v31, 3 }
 0x2f6   : > { %v2988_v26 = vsel %vm2552_vm11, %v2987_v51, %v2986_v25  ;;  %v3017_v15 = vsel %vm2543_vm8, %v3016_v38, %v5554_v32  ;;  %v3052_v61 = vrot.slane %v5704_v22, 2  ;;  %v3057_v6 = vrot.slane %v5736_v33, 7 }
 0x2f7   : > { %2857 = vrot.lane.b32.xlu1 %v2854_v56, %s4042_s25  ;;  %v2990_v55 = vsel %vm2555_vm12, %v2989_v7, %v2988_v26  ;;  %v3019_v48 = vsel %vm2546_vm9, %v3018_v4, %v3017_v15  ;;  %v3054_v56 = vrot.slane %v5725_v39, 1  ;;  %v3051_v0 = vsel %vm2543_vm8, %v3050_v59, %v5574_v44 }
 0x2f8   : > { %v3020_v21 = vsel %vm2549_vm10, %v5725_v39, %v3019_v48  ;;  %v3084_v58 = vrot.slane %v5679_v31, 4  ;;  %v3053_v3 = vsel %vm2546_vm9, %v3052_v61, %v3051_v0  ;;  %v3086_v60 = vrot.slane %v5704_v22, 3 }
 0x2f9   : > { %v3022_v52 = vsel %vm2552_vm11, %v3021_v19, %v3020_v21  ;;  %v3055_v10 = vsel %vm2549_vm10, %v3054_v56, %v3053_v3  ;;  %v3088_v29 = vrot.slane %v5725_v39, 2  ;;  %v3090_v44 = vrot.slane %v5727_v9, 1 }
 0x2fa   : > { %v3024_v32 = vsel %vm2555_vm12, %v3023_v45, %v3022_v52  ;;  %v3056_v30 = vsel %vm2552_vm11, %v5727_v9, %v3055_v10  ;;  %v3085_v31 = vsel %vm2543_vm8, %v3084_v58, %v5658_v2  ;;  %v2536_v35 = vrot.slane %v5205_v1, 7 }
 0x2fb   : > { %2891 = vrot.lane.b32.xlu1 %v2888_v40, %s4044_s7  ;;  %v3058_v49 = vsel %vm2555_vm12, %v3057_v6, %v3056_v30  ;;  %v3087_v62 = vsel %vm2546_vm9, %v3086_v60, %v3085_v31  ;;  %v2539_v2 = vrot.slane %v5209_v17, 6  ;;  %v2542_v34 = vrot.slane %v5211_v20, 5 }
 0x2fc   : > { %v5788_v41 = vpop.permute.xlu0 %2805  ;;  %v3089_v22 = vsel %vm2549_vm10, %v3088_v29, %v3087_v62  ;;  %v2538_v12 = vsel %vm2537_vm6, %v2536_v35, %v5207_v54  ;;  %v2548_v50 = vrot.slane %v5224_v46, 3  ;;  %v2551_v14 = vrot.slane %v5241_v42, 2 }
 0x2fd   : > { %v3091_v39 = vsel %vm2552_vm11, %v3090_v44, %v3089_v22  ;;  %v2554_v1 = vrot.slane %v5254_v28, 1  ;;  %vm3121_vm6 = vcmask 588800  }
 0x2fe   : > { %v3092_v5 = vsel %vm2555_vm12, %v5736_v33, %v3091_v39  ;;  %v2541_v33 = vsel %vm2540_vm7, %v2539_v2, %v2538_v12  ;;  %vm3124_vm7 = vcmask 654336  }
 0x2ff   : > { %2925 = vrot.lane.b32.xlu1 %v2922_v57, %s4045_s8  ;;  %v2545_v57 = vrot.slane %v5215_v53, 4  ;;  %v2544_v18 = vsel %vm2543_vm8, %v2542_v34, %v2541_v33  ;;  %vm3127_vm8 = vcmask 719872  }
 0x300   : > { %v5802_v24 = vpop.permute.xlu0 %2855 }
 0x301   : > { %v2547_v17 = vsel %vm2546_vm9, %v2545_v57, %v2544_v18  ;;  %vm3132_vm9 = vcmask 850944  }
 0x302   : > { %v2550_v20 = vsel %vm2549_vm10, %v2548_v50, %v2547_v17  ;;  %vm3135_vm10 = vcmask 916480  }
 0x303   : > { %2959 = vrot.lane.b32.xlu1 %v2956_v43, %s4046_s9  ;;  %v2553_v53 = vsel %vm2552_vm11, %v2551_v14, %v2550_v20  ;;  %vm3138_vm11 = vcmask 982016  }
 0x304   : > { %v5816_v13 = vpop.permute.xlu0 %2889  ;;  %v2556_v54 = vsel %vm2555_vm12, %v2554_v1, %v2553_v53 }
 0x307   : > { %2993 = vrot.lane.b32.xlu1 %v2990_v55, %s4041_s20 }
 0x308   : > { %v5831_v8 = vpop.permute.xlu0 %2923 }
 0x30b   : > { %3027 = vrot.lane.b32.xlu1 %v3024_v32, %s4052_s17 }
 0x30c   : > { %v2958_v40 = vpop.permute.xlu0 %2957 }
 0x30f   : > { %3061 = vrot.lane.b32.xlu1 %v3058_v49, %s4053_s18 }
 0x310   : > { %v2992_v63 = vpop.permute.xlu0 %2991 }
 0x313   : > { %3095 = vrot.lane.b32.xlu1 %v3092_v5, %s4054_s19 }
 0x314   : > { %v2602_v9 = vpop.permute.xlu0 %2601 }
 0x315   : > { %v3100_v46 = vsel %vm3099_vm13, %v2556_v54, %v2602_v9 }
 0x318   : > { %v2636_v36 = vpop.permute.xlu0 %2635 }
 0x319   : > { %v3103_v42 = vsel %vm3102_vm14, %v3100_v46, %v2636_v36 }
 0x31c   : > { %v2670_v37 = vpop.permute.xlu0 %2669 }
 0x31d   : > { %v3106_v28 = vsel %vm3105_vm15, %v3103_v42, %v2670_v37 }
 0x320   : > { %v2704_v16 = vpop.permute.xlu0 %2703 }
 0x321   : > { %v3108_v51 = vsel %vm566_vm2, %v3106_v28, %v2704_v16 }
 0x324   : > { %v2738_v27 = vpop.permute.xlu0 %2737 }
 0x325   : > { %v3111_v43 = vsel %vm3110_vm0, %v3108_v51, %v2738_v27 }
 0x328   : > { %v2772_v11 = vpop.permute.xlu0 %2771 }
 0x329   : > { %v3114_v7 = vsel %vm3113_vm1, %v3111_v43, %v2772_v11 }
 0x32a   : > { %v3117_v38 = vsel %vm3116_vm3, %v3114_v7, %v5788_v41 }
 0x32b   : > { %v3119_v23 = vsel %vm1744_vm4, %v3117_v38, %v5802_v24 }
 0x32c   : > { %v3122_v4 = vsel %vm3121_vm6, %v3119_v23, %v5816_v13  ;;  %v3026_v25 = vpop.permute.xlu0 %3025 }
 0x32d   : > { %v3125_v26 = vsel %vm3124_vm7, %v3122_v4, %v5831_v8 }
 0x32e   : > { %v3128_v19 = vsel %vm3127_vm8, %v3125_v26, %v2958_v40 }
 0x32f   : > { %v3130_v55 = vsel %vm1777_vm5, %v3128_v19, %v2992_v63 }
 0x330   : > { %v3060_v15 = vpop.permute.xlu0 %3059  ;;  %v3133_v41 = vsel %vm3132_vm9, %v3130_v55, %v3026_v25 }
 0x331   : > { %v3136_v24 = vsel %vm3135_vm10, %v3133_v41, %v3060_v15 }
 0x334   : > { %v3094_v13 = vpop.permute.xlu0 %3093 }
 0x335   : > { %v3139_v45 = vsel %vm3138_vm11, %v3136_v24, %v3094_v13 }
 0x336   : > { %3141 = vst [vmem:[%s5893_s21] sm:$0xff] %v3139_v45 }
 0x34d   : > { %v2808_v59 = vpop.permute.xlu1 %2807 }
 0x351   : > { %v2604_v48 = vpop.permute.xlu1 %2603 }
 0x352   : > { %v3101_v61 = vsel %vm3099_vm13, %v5758_v47, %v2604_v48 }
 0x355   : > { %v2638_v21 = vpop.permute.xlu1 %2637 }
 0x356   : > { %v3104_v56 = vsel %vm3102_vm14, %v3101_v61, %v2638_v21 }
 0x359   : > { %v2672_v8 = vpop.permute.xlu1 %2671 }
 0x35a   : > { %v3107_v52 = vsel %vm3105_vm15, %v3104_v56, %v2672_v8 }
 0x35d   : > { %v2706_v32 = vpop.permute.xlu1 %2705 }
 0x35e   : > { %v3109_v0 = vsel %vm566_vm2, %v3107_v52, %v2706_v32 }
 0x361   : > { %v2740_v6 = vpop.permute.xlu1 %2739 }
 0x362   : > { %v3112_v58 = vsel %vm3110_vm0, %v3109_v0, %v2740_v6 }
 0x365   : > { %v2774_v3 = vpop.permute.xlu1 %2773 }
 0x366   : > { %v3115_v60 = vsel %vm3113_vm1, %v3112_v58, %v2774_v3 }
 0x367   : > { %v3118_v10 = vsel %vm3116_vm3, %v3115_v60, %v2808_v59 }
 0x369   : > { %v2858_v29 = vpop.permute.xlu1 %2857 }
 0x36a   : > { %v3120_v31 = vsel %vm1744_vm4, %v3118_v10, %v2858_v29 }
 0x36d   : > { %v2892_v47 = vpop.permute.xlu1 %2891 }
 0x36e   : > { %v3123_v62 = vsel %vm3121_vm6, %v3120_v31, %v2892_v47 }
 0x371   : > { %v2926_v40 = vpop.permute.xlu1 %2925 }
 0x372   : > { %v3126_v22 = vsel %vm3124_vm7, %v3123_v62, %v2926_v40 }
 0x375   : > { %v2960_v30 = vpop.permute.xlu1 %2959 }
 0x376   : > { %v3129_v39 = vsel %vm3127_vm8, %v3126_v22, %v2960_v30 }
 0x379   : > { %v2994_v44 = vpop.permute.xlu1 %2993 }
 0x37a   : > { %v3131_v5 = vsel %vm1777_vm5, %v3129_v39, %v2994_v44 }
 0x37d   : > { %v3028_v49 = vpop.permute.xlu1 %3027 }
 0x37e   : > { %v3134_v9 = vsel %vm3132_vm9, %v3131_v5, %v3028_v49 }
 0x381   : > { %v3062_v63 = vpop.permute.xlu1 %3061 }
 0x382   : > { %v3137_v36 = vsel %vm3135_vm10, %v3134_v9, %v3062_v63 }
 0x385   : > { %v3096_v35 = vpop.permute.xlu1 %3095 }
 0x386   : > { %v3140_v2 = vsel %vm3138_vm11, %v3137_v36, %v3096_v35 }
 0x387   : > { %3142 = vst [vmem:[%s5893_s21 + $0x8] sm:$0xff] %v3140_v2 }
 0x388 PF: > { %s13_s12 = sadd.s32 1, %s4037_s12  }
 0x389   : > { %p10_p4 = scmp.ge.s32.totalorder %s13_s12, 4  }
 0x38b   :  { %12 = sbr.rel (!%p10_p4) target bundleno = 1 (0x1), region = 64 }

</bundles_post_ra>
